<compile_context>
chip_gen: v5e
topology: v5e:2x2
jax: 0.10.0
libtpu: 0.0.40
codegen_flags: <defaults>
</compile_context>

<pallas_src>
import functools

import jax
import jax.numpy as jnp
from jax.experimental import pallas as pl
from jax.experimental.pallas import tpu as pltpu

LN_EPS = 1e-5       # torch.nn.LayerNorm default
L2_EPS = 1e-12      # torch.nn.functional.normalize default


# ----------------------------- in-kernel math -------------------------------

def _gelu_exact(x):
    """Exact (erf-based) GELU.

    erf via Abramowitz & Stegun 7.1.26 (|err| <= 1.5e-7), built only from ops with
    guaranteed Mosaic lowerings: one EUP exp + a short VALU polynomial.  Runs in the dtype
    of `x` (bf16 on v6e/v7x, f32 on v5e and older).
    """
    a = jnp.abs(x) * 0.7071067811865476           # |x| / sqrt(2)
    t = 1.0 / (1.0 + 0.3275911 * a)
    poly = ((((1.061405429 * t - 1.453152027) * t + 1.421413741) * t
             - 0.284496736) * t + 0.254829592) * t
    erf_abs = 1.0 - poly * jnp.exp(-(a * a))
    erf = jnp.where(x < 0, -erf_abs, erf_abs)
    return x * 0.5 * (1.0 + erf)


def _proj(x, w1_bf16, b1, w2_bf16, b2, gamma, beta, ew_dtype):
    """Linear(D,2D) -> GELU(exact erf) -> Linear(2D,D) -> LayerNorm(D).

    Matmuls: bf16 operands, f32 MXU accumulation.  The (N, 2D) elementwise chain runs in
    `ew_dtype` (bf16 where the VPU supports it); LayerNorm statistics stay in f32.
    """
    h = jnp.dot(x.astype(jnp.bfloat16), w1_bf16,
                preferred_element_type=jnp.float32)
    h = _gelu_exact(h.astype(ew_dtype) + b1.astype(ew_dtype))
    y = jnp.dot(h.astype(jnp.bfloat16), w2_bf16,
                preferred_element_type=jnp.float32) + b2
    # one-pass LayerNorm stats (f32): biased var = E[y^2] - E[y]^2 (matches torch)
    m1 = jnp.mean(y, axis=-1, keepdims=True)
    m2 = jnp.mean(y * y, axis=-1, keepdims=True)
    r = jax.lax.rsqrt(m2 - m1 * m1 + LN_EPS)
    return (y - m1) * (r * gamma) + beta


def _l2norm(x):
    # F.normalize(p=2): x / max(||x||, eps)  ==  x * rsqrt(max(||x||^2, eps^2))
    ssq = jnp.sum(x * x, axis=-1, keepdims=True)
    return x * jax.lax.rsqrt(jnp.maximum(ssq, L2_EPS * L2_EPS))


def layout_pointer_kernel(
    box_ref, tag_ref, emp_ref,
    w1_ref, b1_ref, w2_ref, b2_ref, g_ref, be_ref,
    out_ref,
    *, emp_tile, emp_col, ew_dtype,
):
    box = box_ref[0]            # (TILE_NB, D) f32 (zero-padded rows allowed)
    tag = tag_ref[0]            # (Nt, D)      f32

    # weight stacks: index 0 = box branch, index 1 = tag branch
    box_p = _l2norm(_proj(box, w1_ref[0], b1_ref[0], w2_ref[0], b2_ref[0],
                          g_ref[0], be_ref[0], ew_dtype))            # (TILE_NB, D) f32
    tag_p = _l2norm(_proj(tag, w1_ref[1], b1_ref[1], w2_ref[1], b2_ref[1],
                          g_ref[1], be_ref[1], ew_dtype))            # (Nt, D) f32

    # logits^T = tag_p @ box_p^T -- contract the last axis of both operands so the MXU
    # consumes box_p directly; output is lane-dense (box axis on lanes).
    logits_t = jax.lax.dot_general(
        tag_p.astype(jnp.bfloat16), box_p.astype(jnp.bfloat16),
        dimension_numbers=(((1,), (1,)), ((), ())),
        preferred_element_type=jnp.float32)                          # (Nt, TILE_NB)

    # Batch-invariant empty-box column (projected + L2-normalized in the wrapper):
    # a tiny f32 row reduction, merged into the owning tile with a lane-index select.
    emp_logit = jnp.sum(tag_p * emp_ref[...], axis=-1, keepdims=True)   # (Nt, 1) f32
    col = jax.lax.broadcasted_iota(jnp.int32, logits_t.shape, 1)
    target_col = jnp.where(pl.program_id(1) == emp_tile, emp_col, -1)   # scalar select
    merged = jnp.where(col == target_col, emp_logit, logits_t)

    out_ref[0] = merged.astype(out_ref.dtype)


# ------------------------------- wrapper -------------------------------------

def _round_up(x, m):
    return ((x + m - 1) // m) * m


def _elementwise_dtype():
    """bf16 elementwise where the VPU/EUP supports it (v6e/v7x); f32 on older chips."""
    try:
        kind = jax.devices()[0].device_kind.lower()
    except Exception:
        return jnp.float32
    if any(v in kind for v in ("v2", "v3", "v4", "v5")):
        return jnp.float32
    return jnp.bfloat16


def _proj_norm_ref(x, p):
    """Pure-JAX f32 projection + L2 normalize (batch-invariant empty-box branch and the
    correctness reference)."""
    h = jax.nn.gelu(x @ p["w1"] + p["b1"][0], approximate=False)
    y = h @ p["w2"] + p["b2"][0]
    mu = y.mean(-1, keepdims=True)
    var = ((y - mu) ** 2).mean(-1, keepdims=True)
    y = (y - mu) / jnp.sqrt(var + LN_EPS) * p["gamma"][0] + p["beta"][0]
    n = jnp.sqrt((y * y).sum(-1, keepdims=True))
    return y / jnp.maximum(n, L2_EPS)


@jax.jit
def layout_pointer_forward(box_features, tag_features, params):
    B, Nb, D = box_features.shape
    _, Nt, _ = tag_features.shape
    dtype = box_features.dtype
    ew_dtype = _elementwise_dtype()

    # ---- batch-invariant empty-box branch: computed ONCE, outside the grid (f32) ----
    emp_p = _proj_norm_ref(params["empty_box_embedding"],
                           params["emp"]).astype(jnp.float32)          # (1, D)

    # ---- pad N_box so the lane axis of the transposed output is dense; the +1 leaves
    #      room for the empty-box column inside the padded region ----
    Nb_pad = _round_up(Nb + 1, 128)
    box_pad = jnp.pad(box_features, ((0, 0), (0, Nb_pad - Nb), (0, 0)))

    if Nb_pad <= 512:
        tile_nb = Nb_pad
    else:
        tile_nb = next(t for t in (512, 256, 128) if Nb_pad % t == 0)
    ntiles = Nb_pad // tile_nb
    emp_tile, emp_col = Nb // tile_nb, Nb % tile_nb

    # ---- stack box/tag branch weights -> 6 inputs with constant index maps ----
    def stack(name, cast=None):
        a = jnp.stack([params["box"][name], params["tag"][name]], axis=0)
        return a.astype(cast) if cast is not None else a

    w1s = stack("w1", jnp.bfloat16)     # (2, D, 2D)  bf16 (MXU operand)
    b1s = stack("b1")                   # (2, 1, 2D)  f32
    w2s = stack("w2", jnp.bfloat16)     # (2, 2D, D)  bf16
    b2s = stack("b2")                   # (2, 1, D)
    gs = stack("gamma")                 # (2, 1, D)
    bes = stack("beta")                 # (2, 1, D)
    weights = [w1s, b1s, w2s, b2s, gs, bes]
    w_bytes = sum(int(a.size) * a.dtype.itemsize for a in weights)

    # Constant-index weight specs.  NOTE: add pipeline_mode=pl.Buffered(1) here for very
    # large feature_dim to drop the unused second pipeline buffer.
    def wspec(a):
        return pl.BlockSpec(a.shape, lambda b, j: (0,) * a.ndim)

    itemsize = jnp.dtype(dtype).itemsize
    cost = pl.CostEstimate(
        flops=int(B * (8 * D * D * (Nb_pad + Nt * ntiles)
                       + 2 * Nt * Nb_pad * D + 2 * Nt * D * ntiles)),
        transcendentals=int(B * (Nb_pad + Nt * ntiles) * 2 * D),
        bytes_accessed=int(4 * B * (Nb_pad + Nt * ntiles + Nt) * D
                           + itemsize * B * Nt * Nb_pad + w_bytes),
    )

    # Explicit scoped-VMEM limit (v5e default is only 16 MiB): estimated need + headroom.
    vmem_est = (2 * (tile_nb * D * 4 + Nt * D * 4 + Nt * tile_nb * itemsize)
                + 2 * w_bytes + D * 4 + 16 * (tile_nb + Nt) * D)
    vmem_limit = int(min(64 * 1024 * 1024, max(32 * 1024 * 1024, 2 * vmem_est)))

    grid_spec = pltpu.PrefetchScalarGridSpec(
        num_scalar_prefetch=0,
        grid=(B, ntiles),
        in_specs=[
            pl.BlockSpec((1, tile_nb, D), lambda b, j: (b, j, 0)),   # padded box features
            pl.BlockSpec((1, Nt, D), lambda b, j: (b, 0, 0)),        # tag features
            pl.BlockSpec((1, D), lambda b, j: (0, 0)),               # precomputed emp_p
        ] + [wspec(a) for a in weights],
        # transposed, lane-dense logits: (B, Nt, Nb_pad)
        out_specs=pl.BlockSpec((1, Nt, tile_nb), lambda b, j: (b, 0, j)),
    )

    kernel = functools.partial(layout_pointer_kernel,
                               emp_tile=emp_tile, emp_col=emp_col, ew_dtype=ew_dtype)

    out_t = pl.pallas_call(
        kernel,
        out_shape=jax.ShapeDtypeStruct((B, Nt, Nb_pad), dtype),
        grid_spec=grid_spec,
        compiler_params=pltpu.CompilerParams(
            dimension_semantics=("parallel", "parallel"),
            vmem_limit_bytes=vmem_limit,
        ),
        cost_estimate=cost,
    )(box_pad, tag_features, emp_p, *weights)

    pointer_logits = jnp.swapaxes(out_t[:, :, :Nb], 1, 2)    # (B, Nb, Nt)
    empty_pointer_logits = out_t[:, :, Nb]                   # (B, Nt)
    return pointer_logits, empty_pointer_logits


# ------------------------------ params / test --------------------------------

def make_params(key, feature_dim, dtype=jnp.float32):
    """Deterministic synthetic parameter init (xavier-uniform style weights)."""
    D = feature_dim
    ks = jax.random.split(key, 16)

    def xavier(k, fan_in, fan_out):
        limit = jnp.sqrt(6.0 / (fan_in + fan_out))
        return jax.random.uniform(k, (fan_in, fan_out), dtype, -limit, limit)

    def branch(k0, k1):
        return dict(
            w1=xavier(k0, D, 2 * D),
            b1=jnp.zeros((1, 2 * D), dtype),
            w2=xavier(k1, 2 * D, D),
            b2=jnp.zeros((1, D), dtype),
            gamma=jnp.ones((1, D), dtype),
            beta=jnp.zeros((1, D), dtype),
        )

    return dict(
        box=branch(ks[0], ks[1]),
        tag=branch(ks[2], ks[3]),
        emp=branch(ks[4], ks[5]),
        empty_box_embedding=(0.02 * jax.random.normal(ks[6], (1, D))).astype(dtype),
    )


def _reference(box_features, tag_features, params):
    """Pure-JAX f32 reference matching the PyTorch module."""
    box_p = _proj_norm_ref(box_features, params["box"])
    tag_p = _proj_norm_ref(tag_features, params["tag"])
    emp_p = _proj_norm_ref(params["empty_box_embedding"], params["emp"])   # (1, D)
    ptr = jnp.einsum("bnd,bmd->bnm", box_p, tag_p)
    emp_ptr = jnp.einsum("d,bmd->bm", emp_p[0], tag_p)
    return ptr, emp_ptr


if __name__ == "__main__":
    # Small shapes consistent with the module (real sizes: N_box=994, N_tag=30, D=256+).
    B, N_BOX, N_TAG, D = 2, 16, 8, 32

    key = jax.random.PRNGKey(0)
    k_box, k_tag, k_par = jax.random.split(key, 3)

    box_features = jax.random.normal(k_box, (B, N_BOX, D), jnp.float32)
    tag_features = jax.random.normal(k_tag, (B, N_TAG, D), jnp.float32)
    params = make_params(k_par, D)

    ptr, emp_ptr = layout_pointer_forward(box_features, tag_features, params)
    jax.block_until_ready((ptr, emp_ptr))

    ref_ptr, ref_emp = _reference(box_features, tag_features, params)
    assert ptr.shape == (B, N_BOX, N_TAG)
    assert emp_ptr.shape == (B, N_TAG)
    # bf16 MXU operands + (on v6e/v7x) bf16 elementwise GELU chain diverge from the pure
    # f32 reference at the ~1e-2 level on cosine-similarity logits in [-1, 1]; compare
    # with a correspondingly loose tolerance.
    assert bool(jnp.all(jnp.isfinite(ptr))) and bool(jnp.all(jnp.isfinite(emp_ptr)))
    assert jnp.allclose(ptr, ref_ptr, atol=3e-2, rtol=3e-2), \
        float(jnp.max(jnp.abs(ptr - ref_ptr)))
    assert jnp.allclose(emp_ptr, ref_emp, atol=3e-2, rtol=3e-2), \
        float(jnp.max(jnp.abs(emp_ptr - ref_emp)))

    print("KERNEL_OK")
</pallas_src>

<mosaic_0001>
module attributes {stable_mosaic.version = 11 : i64} {
  func.func @layout_pointer_kernel(%arg0: i32, %arg1: i32, %arg2: memref<1x128x32xf32, #tpu.memory_space<vmem>>, %arg3: memref<1x8x32xf32, #tpu.memory_space<vmem>>, %arg4: memref<1x32xf32, #tpu.memory_space<vmem>>, %arg5: memref<2x32x64xbf16, #tpu.memory_space<vmem>>, %arg6: memref<2x1x64xf32, #tpu.memory_space<vmem>>, %arg7: memref<2x64x32xbf16, #tpu.memory_space<vmem>>, %arg8: memref<2x1x32xf32, #tpu.memory_space<vmem>>, %arg9: memref<2x1x32xf32, #tpu.memory_space<vmem>>, %arg10: memref<2x1x32xf32, #tpu.memory_space<vmem>>, %arg11: memref<1x8x128xf32, #tpu.memory_space<vmem>>) attributes {dimension_semantics = [#tpu.dimension_semantics<parallel>, #tpu.dimension_semantics<parallel>], iteration_bounds = array<i64: 2, 1>, scalar_prefetch = 0 : i64, scratch_operands = 0 : i64, tpu.core_type = #tpu.core_type<tc>, window_params = [{transform_indices = @transform_0, window_bounds = array<i64: 1, 128, 32>}, {transform_indices = @transform_1, window_bounds = array<i64: 1, 8, 32>}, {pipeline_mode = #tpu.pipeline_mode<synchronous>, transform_indices = @transform_2, window_bounds = array<i64: 1, 32>}, {pipeline_mode = #tpu.pipeline_mode<synchronous>, transform_indices = @transform_3, window_bounds = array<i64: 2, 32, 64>}, {pipeline_mode = #tpu.pipeline_mode<synchronous>, transform_indices = @transform_4, window_bounds = array<i64: 2, 1, 64>}, {pipeline_mode = #tpu.pipeline_mode<synchronous>, transform_indices = @transform_5, window_bounds = array<i64: 2, 64, 32>}, {pipeline_mode = #tpu.pipeline_mode<synchronous>, transform_indices = @transform_6, window_bounds = array<i64: 2, 1, 32>}, {pipeline_mode = #tpu.pipeline_mode<synchronous>, transform_indices = @transform_7, window_bounds = array<i64: 2, 1, 32>}, {pipeline_mode = #tpu.pipeline_mode<synchronous>, transform_indices = @transform_8, window_bounds = array<i64: 2, 1, 32>}, {transform_indices = @transform_9, window_bounds = array<i64: 1, 8, 128>}]} {
    %c0 = arith.constant 0 : index
    %c0_0 = arith.constant 0 : index
    %c0_1 = arith.constant 0 : index
    %0 = vector.load %arg2[%c0, %c0_0, %c0_1] : memref<1x128x32xf32, #tpu.memory_space<vmem>>, vector<1x128x32xf32>
    %1 = vector.shape_cast %0 : vector<1x128x32xf32> to vector<128x32xf32>
    %c0_2 = arith.constant 0 : index
    %c0_3 = arith.constant 0 : index
    %c0_4 = arith.constant 0 : index
    %2 = vector.load %arg3[%c0_2, %c0_3, %c0_4] : memref<1x8x32xf32, #tpu.memory_space<vmem>>, vector<1x8x32xf32>
    %3 = vector.shape_cast %2 : vector<1x8x32xf32> to vector<8x32xf32>
    %c0_5 = arith.constant 0 : index
    %c0_6 = arith.constant 0 : index
    %c0_7 = arith.constant 0 : index
    %4 = vector.load %arg5[%c0_5, %c0_6, %c0_7] : memref<2x32x64xbf16, #tpu.memory_space<vmem>>, vector<1x32x64xbf16>
    %5 = vector.shape_cast %4 : vector<1x32x64xbf16> to vector<32x64xbf16>
    %c0_8 = arith.constant 0 : index
    %c0_9 = arith.constant 0 : index
    %c0_10 = arith.constant 0 : index
    %6 = vector.load %arg6[%c0_8, %c0_9, %c0_10] : memref<2x1x64xf32, #tpu.memory_space<vmem>>, vector<1x1x64xf32>
    %7 = vector.shape_cast %6 : vector<1x1x64xf32> to vector<1x64xf32>
    %c0_11 = arith.constant 0 : index
    %c0_12 = arith.constant 0 : index
    %c0_13 = arith.constant 0 : index
    %8 = vector.load %arg7[%c0_11, %c0_12, %c0_13] : memref<2x64x32xbf16, #tpu.memory_space<vmem>>, vector<1x64x32xbf16>
    %9 = vector.shape_cast %8 : vector<1x64x32xbf16> to vector<64x32xbf16>
    %c0_14 = arith.constant 0 : index
    %c0_15 = arith.constant 0 : index
    %c0_16 = arith.constant 0 : index
    %10 = vector.load %arg8[%c0_14, %c0_15, %c0_16] : memref<2x1x32xf32, #tpu.memory_space<vmem>>, vector<1x1x32xf32>
    %11 = vector.shape_cast %10 : vector<1x1x32xf32> to vector<1x32xf32>
    %c0_17 = arith.constant 0 : index
    %c0_18 = arith.constant 0 : index
    %c0_19 = arith.constant 0 : index
    %12 = vector.load %arg9[%c0_17, %c0_18, %c0_19] : memref<2x1x32xf32, #tpu.memory_space<vmem>>, vector<1x1x32xf32>
    %13 = vector.shape_cast %12 : vector<1x1x32xf32> to vector<1x32xf32>
    %c0_20 = arith.constant 0 : index
    %c0_21 = arith.constant 0 : index
    %c0_22 = arith.constant 0 : index
    %14 = vector.load %arg10[%c0_20, %c0_21, %c0_22] : memref<2x1x32xf32, #tpu.memory_space<vmem>>, vector<1x1x32xf32>
    %15 = vector.shape_cast %14 : vector<1x1x32xf32> to vector<1x32xf32>
    %16 = arith.truncf %1 : vector<128x32xf32> to vector<128x32xbf16>
    %cst = arith.constant dense<0.000000e+00> : vector<128x64xf32>
    %17 = tpu.matmul %16, %5, %cst {dimension_numbers = #tpu.dot_dimension_numbers<[1], [0], [0], [1], [0, 0, 1, 1], [], []>} : vector<128x32xbf16>, vector<32x64xbf16>, vector<128x64xf32> -> vector<128x64xf32>
    %18 = arith.truncf %17 : vector<128x64xf32> to vector<128x64xbf16>
    %19 = arith.truncf %7 : vector<1x64xf32> to vector<1x64xbf16>
    %20 = vector.broadcast %19 : vector<1x64xbf16> to vector<128x64xbf16>
    %21 = arith.addf %18, %20 : vector<128x64xbf16>
    %22 = math.absf %21 : vector<128x64xbf16>
    %cst_23 = arith.constant 7.070310e-01 : bf16
    %23 = vector.broadcast %cst_23 : bf16 to vector<128x64xbf16>
    %24 = arith.mulf %22, %23 : vector<128x64xbf16>
    %cst_24 = arith.constant 3.281250e-01 : bf16
    %25 = vector.broadcast %cst_24 : bf16 to vector<128x64xbf16>
    %26 = arith.mulf %25, %24 : vector<128x64xbf16>
    %cst_25 = arith.constant 1.000000e+00 : bf16
    %27 = vector.broadcast %cst_25 : bf16 to vector<128x64xbf16>
    %28 = arith.addf %27, %26 : vector<128x64xbf16>
    %cst_26 = arith.constant 1.000000e+00 : bf16
    %29 = vector.broadcast %cst_26 : bf16 to vector<128x64xbf16>
    %30 = arith.divf %29, %28 : vector<128x64xbf16>
    %cst_27 = arith.constant 1.062500e+00 : bf16
    %31 = vector.broadcast %cst_27 : bf16 to vector<128x64xbf16>
    %32 = arith.mulf %31, %30 : vector<128x64xbf16>
    %cst_28 = arith.constant 1.453130e+00 : bf16
    %33 = vector.broadcast %cst_28 : bf16 to vector<128x64xbf16>
    %34 = arith.subf %32, %33 : vector<128x64xbf16>
    %35 = arith.mulf %34, %30 : vector<128x64xbf16>
    %cst_29 = arith.constant 1.421880e+00 : bf16
    %36 = vector.broadcast %cst_29 : bf16 to vector<128x64xbf16>
    %37 = arith.addf %35, %36 : vector<128x64xbf16>
    %38 = arith.mulf %37, %30 : vector<128x64xbf16>
    %cst_30 = arith.constant 2.851560e-01 : bf16
    %39 = vector.broadcast %cst_30 : bf16 to vector<128x64xbf16>
    %40 = arith.subf %38, %39 : vector<128x64xbf16>
    %41 = arith.mulf %40, %30 : vector<128x64xbf16>
    %cst_31 = arith.constant 2.539060e-01 : bf16
    %42 = vector.broadcast %cst_31 : bf16 to vector<128x64xbf16>
    %43 = arith.addf %41, %42 : vector<128x64xbf16>
    %44 = arith.mulf %43, %30 : vector<128x64xbf16>
    %45 = arith.mulf %24, %24 : vector<128x64xbf16>
    %cst_32 = arith.constant 0.000000e+00 : bf16
    %46 = vector.broadcast %cst_32 : bf16 to vector<128x64xbf16>
    %47 = arith.subf %46, %45 : vector<128x64xbf16>
    %48 = math.exp %47 : vector<128x64xbf16>
    %49 = arith.mulf %44, %48 : vector<128x64xbf16>
    %cst_33 = arith.constant 1.000000e+00 : bf16
    %50 = vector.broadcast %cst_33 : bf16 to vector<128x64xbf16>
    %51 = arith.subf %50, %49 : vector<128x64xbf16>
    %cst_34 = arith.constant 0.000000e+00 : bf16
    %52 = vector.broadcast %cst_34 : bf16 to vector<128x64xbf16>
    %53 = arith.cmpf olt, %21, %52 : vector<128x64xbf16>
    %cst_35 = arith.constant 0.000000e+00 : bf16
    %54 = vector.broadcast %cst_35 : bf16 to vector<128x64xbf16>
    %55 = arith.subf %54, %51 : vector<128x64xbf16>
    %56 = arith.select %53, %55, %51 : vector<128x64xi1>, vector<128x64xbf16>
    %cst_36 = arith.constant 5.000000e-01 : bf16
    %57 = vector.broadcast %cst_36 : bf16 to vector<128x64xbf16>
    %58 = arith.mulf %21, %57 : vector<128x64xbf16>
    %cst_37 = arith.constant 1.000000e+00 : bf16
    %59 = vector.broadcast %cst_37 : bf16 to vector<128x64xbf16>
    %60 = arith.addf %59, %56 : vector<128x64xbf16>
    %61 = arith.mulf %58, %60 : vector<128x64xbf16>
    %cst_38 = arith.constant dense<0.000000e+00> : vector<128x32xf32>
    %62 = tpu.matmul %61, %9, %cst_38 {dimension_numbers = #tpu.dot_dimension_numbers<[1], [0], [0], [1], [0, 0, 1, 1], [], []>} : vector<128x64xbf16>, vector<64x32xbf16>, vector<128x32xf32> -> vector<128x32xf32>
    %63 = vector.broadcast %11 : vector<1x32xf32> to vector<128x32xf32>
    %64 = arith.addf %62, %63 : vector<128x32xf32>
    %cst_39 = arith.constant dense<0.000000e+00> : vector<128xf32>
    %65 = vector.multi_reduction <add>, %64, %cst_39 [1] : vector<128x32xf32> to vector<128xf32>
    %66 = vector.shape_cast %65 : vector<128xf32> to vector<128x1xf32>
    %cst_40 = arith.constant 3.200000e+01 : f32
    %67 = vector.broadcast %cst_40 : f32 to vector<128x1xf32>
    %68 = arith.divf %66, %67 : vector<128x1xf32>
    %69 = arith.mulf %64, %64 : vector<128x32xf32>
    %cst_41 = arith.constant dense<0.000000e+00> : vector<128xf32>
    %70 = vector.multi_reduction <add>, %69, %cst_41 [1] : vector<128x32xf32> to vector<128xf32>
    %71 = vector.shape_cast %70 : vector<128xf32> to vector<128x1xf32>
    %cst_42 = arith.constant 3.200000e+01 : f32
    %72 = vector.broadcast %cst_42 : f32 to vector<128x1xf32>
    %73 = arith.divf %71, %72 : vector<128x1xf32>
    %74 = arith.mulf %68, %68 : vector<128x1xf32>
    %75 = arith.subf %73, %74 : vector<128x1xf32>
    %cst_43 = arith.constant 9.99999974E-6 : f32
    %76 = vector.broadcast %cst_43 : f32 to vector<128x1xf32>
    %77 = arith.addf %75, %76 : vector<128x1xf32>
    %78 = math.rsqrt %77 : vector<128x1xf32>
    %79 = vector.broadcast %68 : vector<128x1xf32> to vector<128x32xf32>
    %80 = arith.subf %64, %79 : vector<128x32xf32>
    %81 = vector.broadcast %78 : vector<128x1xf32> to vector<128x32xf32>
    %82 = vector.broadcast %13 : vector<1x32xf32> to vector<128x32xf32>
    %83 = arith.mulf %81, %82 : vector<128x32xf32>
    %84 = arith.mulf %80, %83 : vector<128x32xf32>
    %85 = vector.broadcast %15 : vector<1x32xf32> to vector<128x32xf32>
    %86 = arith.addf %84, %85 : vector<128x32xf32>
    %87 = arith.mulf %86, %86 : vector<128x32xf32>
    %cst_44 = arith.constant dense<0.000000e+00> : vector<128xf32>
    %88 = vector.multi_reduction <add>, %87, %cst_44 [1] : vector<128x32xf32> to vector<128xf32>
    %89 = vector.shape_cast %88 : vector<128xf32> to vector<128x1xf32>
    %cst_45 = arith.constant 1.000000e-24 : f32
    %90 = vector.broadcast %cst_45 : f32 to vector<128x1xf32>
    %91 = arith.maximumf %89, %90 : vector<128x1xf32>
    %92 = math.rsqrt %91 : vector<128x1xf32>
    %93 = vector.broadcast %92 : vector<128x1xf32> to vector<128x32xf32>
    %94 = arith.mulf %86, %93 : vector<128x32xf32>
    %c1 = arith.constant 1 : index
    %c0_46 = arith.constant 0 : index
    %c0_47 = arith.constant 0 : index
    %95 = vector.load %arg5[%c1, %c0_46, %c0_47] : memref<2x32x64xbf16, #tpu.memory_space<vmem>>, vector<1x32x64xbf16>
    %96 = vector.shape_cast %95 : vector<1x32x64xbf16> to vector<32x64xbf16>
    %c1_48 = arith.constant 1 : index
    %c0_49 = arith.constant 0 : index
    %c0_50 = arith.constant 0 : index
    %97 = vector.load %arg6[%c1_48, %c0_49, %c0_50] : memref<2x1x64xf32, #tpu.memory_space<vmem>>, vector<1x1x64xf32>
    %98 = vector.shape_cast %97 : vector<1x1x64xf32> to vector<1x64xf32>
    %c1_51 = arith.constant 1 : index
    %c0_52 = arith.constant 0 : index
    %c0_53 = arith.constant 0 : index
    %99 = vector.load %arg7[%c1_51, %c0_52, %c0_53] : memref<2x64x32xbf16, #tpu.memory_space<vmem>>, vector<1x64x32xbf16>
    %100 = vector.shape_cast %99 : vector<1x64x32xbf16> to vector<64x32xbf16>
    %c1_54 = arith.constant 1 : index
    %c0_55 = arith.constant 0 : index
    %c0_56 = arith.constant 0 : index
    %101 = vector.load %arg8[%c1_54, %c0_55, %c0_56] : memref<2x1x32xf32, #tpu.memory_space<vmem>>, vector<1x1x32xf32>
    %102 = vector.shape_cast %101 : vector<1x1x32xf32> to vector<1x32xf32>
    %c1_57 = arith.constant 1 : index
    %c0_58 = arith.constant 0 : index
    %c0_59 = arith.constant 0 : index
    %103 = vector.load %arg9[%c1_57, %c0_58, %c0_59] : memref<2x1x32xf32, #tpu.memory_space<vmem>>, vector<1x1x32xf32>
    %104 = vector.shape_cast %103 : vector<1x1x32xf32> to vector<1x32xf32>
    %c1_60 = arith.constant 1 : index
    %c0_61 = arith.constant 0 : index
    %c0_62 = arith.constant 0 : index
    %105 = vector.load %arg10[%c1_60, %c0_61, %c0_62] : memref<2x1x32xf32, #tpu.memory_space<vmem>>, vector<1x1x32xf32>
    %106 = vector.shape_cast %105 : vector<1x1x32xf32> to vector<1x32xf32>
    %107 = arith.truncf %3 : vector<8x32xf32> to vector<8x32xbf16>
    %cst_63 = arith.constant dense<0.000000e+00> : vector<8x64xf32>
    %108 = tpu.matmul %107, %96, %cst_63 {dimension_numbers = #tpu.dot_dimension_numbers<[1], [0], [0], [1], [0, 0, 1, 1], [], []>} : vector<8x32xbf16>, vector<32x64xbf16>, vector<8x64xf32> -> vector<8x64xf32>
    %109 = arith.truncf %108 : vector<8x64xf32> to vector<8x64xbf16>
    %110 = arith.truncf %98 : vector<1x64xf32> to vector<1x64xbf16>
    %111 = vector.broadcast %110 : vector<1x64xbf16> to vector<8x64xbf16>
    %112 = arith.addf %109, %111 : vector<8x64xbf16>
    %113 = math.absf %112 : vector<8x64xbf16>
    %cst_64 = arith.constant 7.070310e-01 : bf16
    %114 = vector.broadcast %cst_64 : bf16 to vector<8x64xbf16>
    %115 = arith.mulf %113, %114 : vector<8x64xbf16>
    %cst_65 = arith.constant 3.281250e-01 : bf16
    %116 = vector.broadcast %cst_65 : bf16 to vector<8x64xbf16>
    %117 = arith.mulf %116, %115 : vector<8x64xbf16>
    %cst_66 = arith.constant 1.000000e+00 : bf16
    %118 = vector.broadcast %cst_66 : bf16 to vector<8x64xbf16>
    %119 = arith.addf %118, %117 : vector<8x64xbf16>
    %cst_67 = arith.constant 1.000000e+00 : bf16
    %120 = vector.broadcast %cst_67 : bf16 to vector<8x64xbf16>
    %121 = arith.divf %120, %119 : vector<8x64xbf16>
    %cst_68 = arith.constant 1.062500e+00 : bf16
    %122 = vector.broadcast %cst_68 : bf16 to vector<8x64xbf16>
    %123 = arith.mulf %122, %121 : vector<8x64xbf16>
    %cst_69 = arith.constant 1.453130e+00 : bf16
    %124 = vector.broadcast %cst_69 : bf16 to vector<8x64xbf16>
    %125 = arith.subf %123, %124 : vector<8x64xbf16>
    %126 = arith.mulf %125, %121 : vector<8x64xbf16>
    %cst_70 = arith.constant 1.421880e+00 : bf16
    %127 = vector.broadcast %cst_70 : bf16 to vector<8x64xbf16>
    %128 = arith.addf %126, %127 : vector<8x64xbf16>
    %129 = arith.mulf %128, %121 : vector<8x64xbf16>
    %cst_71 = arith.constant 2.851560e-01 : bf16
    %130 = vector.broadcast %cst_71 : bf16 to vector<8x64xbf16>
    %131 = arith.subf %129, %130 : vector<8x64xbf16>
    %132 = arith.mulf %131, %121 : vector<8x64xbf16>
    %cst_72 = arith.constant 2.539060e-01 : bf16
    %133 = vector.broadcast %cst_72 : bf16 to vector<8x64xbf16>
    %134 = arith.addf %132, %133 : vector<8x64xbf16>
    %135 = arith.mulf %134, %121 : vector<8x64xbf16>
    %136 = arith.mulf %115, %115 : vector<8x64xbf16>
    %cst_73 = arith.constant 0.000000e+00 : bf16
    %137 = vector.broadcast %cst_73 : bf16 to vector<8x64xbf16>
    %138 = arith.subf %137, %136 : vector<8x64xbf16>
    %139 = math.exp %138 : vector<8x64xbf16>
    %140 = arith.mulf %135, %139 : vector<8x64xbf16>
    %cst_74 = arith.constant 1.000000e+00 : bf16
    %141 = vector.broadcast %cst_74 : bf16 to vector<8x64xbf16>
    %142 = arith.subf %141, %140 : vector<8x64xbf16>
    %cst_75 = arith.constant 0.000000e+00 : bf16
    %143 = vector.broadcast %cst_75 : bf16 to vector<8x64xbf16>
    %144 = arith.cmpf olt, %112, %143 : vector<8x64xbf16>
    %cst_76 = arith.constant 0.000000e+00 : bf16
    %145 = vector.broadcast %cst_76 : bf16 to vector<8x64xbf16>
    %146 = arith.subf %145, %142 : vector<8x64xbf16>
    %147 = arith.select %144, %146, %142 : vector<8x64xi1>, vector<8x64xbf16>
    %cst_77 = arith.constant 5.000000e-01 : bf16
    %148 = vector.broadcast %cst_77 : bf16 to vector<8x64xbf16>
    %149 = arith.mulf %112, %148 : vector<8x64xbf16>
    %cst_78 = arith.constant 1.000000e+00 : bf16
    %150 = vector.broadcast %cst_78 : bf16 to vector<8x64xbf16>
    %151 = arith.addf %150, %147 : vector<8x64xbf16>
    %152 = arith.mulf %149, %151 : vector<8x64xbf16>
    %cst_79 = arith.constant dense<0.000000e+00> : vector<8x32xf32>
    %153 = tpu.matmul %152, %100, %cst_79 {dimension_numbers = #tpu.dot_dimension_numbers<[1], [0], [0], [1], [0, 0, 1, 1], [], []>} : vector<8x64xbf16>, vector<64x32xbf16>, vector<8x32xf32> -> vector<8x32xf32>
    %154 = vector.broadcast %102 : vector<1x32xf32> to vector<8x32xf32>
    %155 = arith.addf %153, %154 : vector<8x32xf32>
    %cst_80 = arith.constant dense<0.000000e+00> : vector<8xf32>
    %156 = vector.multi_reduction <add>, %155, %cst_80 [1] : vector<8x32xf32> to vector<8xf32>
    %157 = vector.shape_cast %156 : vector<8xf32> to vector<8x1xf32>
    %cst_81 = arith.constant 3.200000e+01 : f32
    %158 = vector.broadcast %cst_81 : f32 to vector<8x1xf32>
    %159 = arith.divf %157, %158 : vector<8x1xf32>
    %160 = arith.mulf %155, %155 : vector<8x32xf32>
    %cst_82 = arith.constant dense<0.000000e+00> : vector<8xf32>
    %161 = vector.multi_reduction <add>, %160, %cst_82 [1] : vector<8x32xf32> to vector<8xf32>
    %162 = vector.shape_cast %161 : vector<8xf32> to vector<8x1xf32>
    %cst_83 = arith.constant 3.200000e+01 : f32
    %163 = vector.broadcast %cst_83 : f32 to vector<8x1xf32>
    %164 = arith.divf %162, %163 : vector<8x1xf32>
    %165 = arith.mulf %159, %159 : vector<8x1xf32>
    %166 = arith.subf %164, %165 : vector<8x1xf32>
    %cst_84 = arith.constant 9.99999974E-6 : f32
    %167 = vector.broadcast %cst_84 : f32 to vector<8x1xf32>
    %168 = arith.addf %166, %167 : vector<8x1xf32>
    %169 = math.rsqrt %168 : vector<8x1xf32>
    %170 = vector.broadcast %159 : vector<8x1xf32> to vector<8x32xf32>
    %171 = arith.subf %155, %170 : vector<8x32xf32>
    %172 = vector.broadcast %169 : vector<8x1xf32> to vector<8x32xf32>
    %173 = vector.broadcast %104 : vector<1x32xf32> to vector<8x32xf32>
    %174 = arith.mulf %172, %173 : vector<8x32xf32>
    %175 = arith.mulf %171, %174 : vector<8x32xf32>
    %176 = vector.broadcast %106 : vector<1x32xf32> to vector<8x32xf32>
    %177 = arith.addf %175, %176 : vector<8x32xf32>
    %178 = arith.mulf %177, %177 : vector<8x32xf32>
    %cst_85 = arith.constant dense<0.000000e+00> : vector<8xf32>
    %179 = vector.multi_reduction <add>, %178, %cst_85 [1] : vector<8x32xf32> to vector<8xf32>
    %180 = vector.shape_cast %179 : vector<8xf32> to vector<8x1xf32>
    %cst_86 = arith.constant 1.000000e-24 : f32
    %181 = vector.broadcast %cst_86 : f32 to vector<8x1xf32>
    %182 = arith.maximumf %180, %181 : vector<8x1xf32>
    %183 = math.rsqrt %182 : vector<8x1xf32>
    %184 = vector.broadcast %183 : vector<8x1xf32> to vector<8x32xf32>
    %185 = arith.mulf %177, %184 : vector<8x32xf32>
    %186 = arith.truncf %185 : vector<8x32xf32> to vector<8x32xbf16>
    %187 = arith.truncf %94 : vector<128x32xf32> to vector<128x32xbf16>
    %cst_87 = arith.constant dense<0.000000e+00> : vector<8x128xf32>
    %188 = tpu.matmul %186, %187, %cst_87 {dimension_numbers = #tpu.dot_dimension_numbers<[1], [1], [0], [0], [0, 0, 1, 0], [], []>} : vector<8x32xbf16>, vector<128x32xbf16>, vector<8x128xf32> -> vector<8x128xf32>
    %c0_88 = arith.constant 0 : index
    %c0_89 = arith.constant 0 : index
    %189 = vector.load %arg4[%c0_88, %c0_89] : memref<1x32xf32, #tpu.memory_space<vmem>>, vector<1x32xf32>
    %190 = vector.broadcast %189 : vector<1x32xf32> to vector<8x32xf32>
    %191 = arith.mulf %185, %190 : vector<8x32xf32>
    %cst_90 = arith.constant dense<0.000000e+00> : vector<8xf32>
    %192 = vector.multi_reduction <add>, %191, %cst_90 [1] : vector<8x32xf32> to vector<8xf32>
    %193 = vector.shape_cast %192 : vector<8xf32> to vector<8x1xf32>
    %194 = tpu.iota {dimensions = array<i32: 1>} : vector<8x128xi32>
    %c0_i32 = arith.constant 0 : i32
    %195 = arith.cmpi eq, %arg1, %c0_i32 : i32
    %c16_i32 = arith.constant 16 : i32
    %c-1_i32 = arith.constant -1 : i32
    %196 = arith.select %195, %c16_i32, %c-1_i32 : i32
    %197 = vector.broadcast %196 : i32 to vector<8x128xi32>
    %198 = arith.cmpi eq, %194, %197 : vector<8x128xi32>
    %199 = vector.shape_cast %193 : vector<8x1xf32> to vector<8x1xf32>
    %200 = vector.broadcast %199 : vector<8x1xf32> to vector<8x128xf32>
    %201 = arith.select %198, %200, %188 : vector<8x128xi1>, vector<8x128xf32>
    %c0_91 = arith.constant 0 : index
    %c0_92 = arith.constant 0 : index
    %c0_93 = arith.constant 0 : index
    %202 = vector.load %arg11[%c0_91, %c0_92, %c0_93] : memref<1x8x128xf32, #tpu.memory_space<vmem>>, vector<1x8x128xf32>
    %203 = vector.shape_cast %202 : vector<1x8x128xf32> to vector<8x128xf32>
    %204 = vector.shape_cast %201 : vector<8x128xf32> to vector<1x8x128xf32>
    tpu.vector_store %arg11[%c0_91, %c0_92, %c0_93], %204 {strides = array<i32>} : memref<1x8x128xf32, #tpu.memory_space<vmem>>, vector<1x8x128xf32>,
    return
  }
  func.func @transform_0(%arg0: i32, %arg1: i32) -> (i32, i32, i32) {
    %c0_i32 = arith.constant 0 : i32
    %c0_i32_0 = arith.constant 0 : i32
    return %arg0, %arg1, %c0_i32 : i32, i32, i32
  }
  func.func @transform_1(%arg0: i32, %arg1: i32) -> (i32, i32, i32) {
    %c0_i32 = arith.constant 0 : i32
    %c0_i32_0 = arith.constant 0 : i32
    %c0_i32_1 = arith.constant 0 : i32
    return %arg0, %c0_i32, %c0_i32_0 : i32, i32, i32
  }
  func.func @transform_2(%arg0: i32, %arg1: i32) -> (i32, i32) {
    %c0_i32 = arith.constant 0 : i32
    %c0_i32_0 = arith.constant 0 : i32
    %c0_i32_1 = arith.constant 0 : i32
    return %c0_i32, %c0_i32_0 : i32, i32
  }
  func.func @transform_3(%arg0: i32, %arg1: i32) -> (i32, i32, i32) {
    %c0_i32 = arith.constant 0 : i32
    %c0_i32_0 = arith.constant 0 : i32
    %c0_i32_1 = arith.constant 0 : i32
    %c0_i32_2 = arith.constant 0 : i32
    return %c0_i32, %c0_i32_0, %c0_i32_1 : i32, i32, i32
  }
  func.func @transform_4(%arg0: i32, %arg1: i32) -> (i32, i32, i32) {
    %c0_i32 = arith.constant 0 : i32
    %c0_i32_0 = arith.constant 0 : i32
    %c0_i32_1 = arith.constant 0 : i32
    %c0_i32_2 = arith.constant 0 : i32
    return %c0_i32, %c0_i32_0, %c0_i32_1 : i32, i32, i32
  }
  func.func @transform_5(%arg0: i32, %arg1: i32) -> (i32, i32, i32) {
    %c0_i32 = arith.constant 0 : i32
    %c0_i32_0 = arith.constant 0 : i32
    %c0_i32_1 = arith.constant 0 : i32
    %c0_i32_2 = arith.constant 0 : i32
    return %c0_i32, %c0_i32_0, %c0_i32_1 : i32, i32, i32
  }
  func.func @transform_6(%arg0: i32, %arg1: i32) -> (i32, i32, i32) {
    %c0_i32 = arith.constant 0 : i32
    %c0_i32_0 = arith.constant 0 : i32
    %c0_i32_1 = arith.constant 0 : i32
    %c0_i32_2 = arith.constant 0 : i32
    return %c0_i32, %c0_i32_0, %c0_i32_1 : i32, i32, i32
  }
  func.func @transform_7(%arg0: i32, %arg1: i32) -> (i32, i32, i32) {
    %c0_i32 = arith.constant 0 : i32
    %c0_i32_0 = arith.constant 0 : i32
    %c0_i32_1 = arith.constant 0 : i32
    %c0_i32_2 = arith.constant 0 : i32
    return %c0_i32, %c0_i32_0, %c0_i32_1 : i32, i32, i32
  }
  func.func @transform_8(%arg0: i32, %arg1: i32) -> (i32, i32, i32) {
    %c0_i32 = arith.constant 0 : i32
    %c0_i32_0 = arith.constant 0 : i32
    %c0_i32_1 = arith.constant 0 : i32
    %c0_i32_2 = arith.constant 0 : i32
    return %c0_i32, %c0_i32_0, %c0_i32_1 : i32, i32, i32
  }
  func.func @transform_9(%arg0: i32, %arg1: i32) -> (i32, i32, i32) {
    %c0_i32 = arith.constant 0 : i32
    %c0_i32_0 = arith.constant 0 : i32
    return %arg0, %c0_i32, %arg1 : i32, i32, i32
  }
}

</mosaic_0001>

<bundles_post_ra>
// kernel: layout_pointer_forward.1
= control target key start
LH: loop header
LB: loop body
LE: loop exit
PB: predicated region body
PF: predicated region fallthrough
CT: control target
= control target key end

     0   :  { %s3389_s30 = smov 0   ;;  %s3391_s10 = smov 0   ;;  %s4827_s0 = inlined_call_operand.vmem [shape: f32[2,128,32], index: 0, kind: input, shape index: {}]   ;;  %s4828_s1 = inlined_call_operand.vmem [shape: f32[2,8,32], index: 1, kind: input, shape index: {}]   ;;  %s4829_s2 = inlined_call_operand.vmem [shape: f32[1,32], index: 2, kind: input, shape index: {}]   ;;  %s4830_s3 = inlined_call_operand.vmem [shape: bf16[2,32,64], index: 3, kind: input, shape index: {}]   ;;  %s4831_s4 = inlined_call_operand.vmem [shape: f32[2,1,64], index: 4, kind: input, shape index: {}]   ;;  %s4832_s5 = inlined_call_operand.vmem [shape: bf16[2,64,32], index: 5, kind: input, shape index: {}]   ;;  %s4833_s6 = inlined_call_operand.vmem [shape: f32[2,1,32], index: 6, kind: input, shape index: {}]   ;;  %s4834_s7 = inlined_call_operand.vmem [shape: f32[2,1,32], index: 7, kind: input, shape index: {}]   ;;  %s4835_s8 = inlined_call_operand.vmem [shape: f32[2,1,32], index: 8, kind: input, shape index: {}]   ;;  %s4836_s9 = inlined_call_operand.vmem [shape: f32[2,8,128], index: 9, kind: output, shape index: {}]  }
   0x1   :  { %s3393_s11 = smov 0  }
   0x2 LB: > { %s31_s12 = sadd.s32 1, %s3331_s10  ;;  %p2965_p0 = scmp.ge.s32.totalorder %s3335_s11, 1  ;;  %s3335_s11 = sphi %s3393_s11, %s19_s11   ;;  %s3331_s10 = sphi %s3391_s10, %s4996_s10   ;;  %s3327_s30 = sphi %s3389_s30, %s4995_s30  }
   0x3   : > { %p33_p1 = scmp.ge.s32.totalorder %s31_s12, 2  ;;  %p317_p2 = scmp.lt.s32.totalorder %s3335_s11, 3 }
   0x5   : > { %s4998_s12 = smov (%p33_p1, %s31_s12), 0  ;;  %p318_p3 = pnand %p2965_p0, %p317_p2 }
   0x7   : > { %321 = sbr.rel (%p318_p3) target bundleno = 1158 (0x486), region = 56 }
   0xc   : > { %v3091_v0 = vld [vmem:[%s4830_s3 + $0x8] sm:$0xff]  ;;  %p364_p4 = scmp.lt.s32.totalorder %s3327_s30, 1  ;;  %v3097_v1 = vld [vmem:[%s4830_s3 + $0x18] sm:$0xff]  ;;  %v3090_v2 = vld [vmem:[%s4830_s3] sm:$0xff]  ;;  %vm439_vm0 = vcmask 261120   ;;  %vm1820_vm10 = vcmask 523264  }
   0xd   : > { %470 = vmatpush.bf16.msra.mxu0 %v3091_v0  ;;  %3102 = vmatpush.bf16.msra.mxu3 %v3091_v0  ;;  %v3096_v3 = vld [vmem:[%s4830_s3 + $0x10] sm:$0xff]  ;;  %v407_v30 = vld [vmem:[%s4831_s4] sm:$0x1] }
   0xe   : > { %s5000_s30 = smov (!%p364_p4, %s3327_s30), 1  ;;  %2623 = vmatpush.bf16.msra.mxu2 %v3097_v1  ;;  %v529_v31 = vpack.c.bf16 %v407_v30, %v407_v30 }
   0xf   : > { %s3089_s21 = sshll.u32 %s5000_s30, 7  ;;  %s2968_s22 = sshll.u32 %s5000_s30, 3 }
  0x10   : > { %s3426_s25 = scalar_lea.vmem %s4827_s0, %s3089_s21  ;;  %s376_s28 = scalar_lea.vmem %s4828_s1, %s2968_s22  ;;  %v531_v33 = vpack.i.b16 %v529_v31, %v529_v31 }
  0x11   : > { %471 = vmatpush.bf16.msra.mxu0 %v3090_v2  ;;  %3103 = vmatpush.bf16.msra.mxu3 %v3090_v2  ;;  %v386_v4 = vld [vmem:[%s3426_s25] sm:$0xff]  ;;  %v387_v5 = vld [vmem:[%s3426_s25 + $0x8] sm:$0xff]  ;;  %v388_v12 = vld [vmem:[%s3426_s25 + $0x10] sm:$0xff]  ;;  %s383_s16 = scalar_lea.vmem %s4836_s9, %s2968_s22 }
  0x12   : > { %v398_v6 = vld [vmem:[%s3426_s25 + $0x60] sm:$0xff]  ;;  %v419_v7 = vpack.c.bf16 %v387_v5, %v386_v4  ;;  %v399_v8 = vld [vmem:[%s3426_s25 + $0x68] sm:$0xff]  ;;  %2624 = vmatpush.bf16.msra.mxu2 %v3096_v3  ;;  %v389_v13 = vld [vmem:[%s3426_s25 + $0x18] sm:$0xff]  ;;  %v533_v34 = vperm.slane %v531_v33, 0 }
  0x13   : > { %v425_v9 = vpack.c.bf16 %v399_v8, %v398_v6  ;;  %v402_v10 = vld [vmem:[%s376_s28] sm:$0xff]  ;;  %v400_v14 = vld [vmem:[%s3426_s25 + $0x70] sm:$0xff]  ;;  %v401_v15 = vld [vmem:[%s3426_s25 + $0x78] sm:$0xff]  ;;  %v420_v16 = vpack.c.bf16 %v389_v13, %v388_v12 }
  0x14   : > { %2978 = vmatmul.msk.bf16.vlgmr.msra.gmra.mxu0 %vm439_vm0, %v419_v7  ;;  %v2601_v11 = vpack.c.bf16 %v402_v10, %v402_v10  ;;  %v426_v17 = vpack.c.bf16 %v401_v15, %v400_v14  ;;  %v390_v18 = vld [vmem:[%s3426_s25 + $0x20] sm:$0xff]  ;;  %v391_v19 = vld [vmem:[%s3426_s25 + $0x28] sm:$0xff]  ;;  %v392_v21 = vld [vmem:[%s3426_s25 + $0x30] sm:$0xff]  ;;  %v3461_v37 = vunpack.c.l.bf16 %v533_v34 }
  0x15   : > { %2984 = vmatmul.msk.bf16.vlgmr.msra.gmra.mxu3 %vm439_vm0, %v425_v9  ;;  %v421_v20 = vpack.c.bf16 %v391_v19, %v390_v18  ;;  %v393_v22 = vld [vmem:[%s3426_s25 + $0x38] sm:$0xff]  ;;  %v394_v24 = vld [vmem:[%s3426_s25 + $0x40] sm:$0xff]  ;;  %v395_v25 = vld [vmem:[%s3426_s25 + $0x48] sm:$0xff] }
  0x16   : > { %3066 = vmatmul.msk.bf16.vlgmr.msra.gmra.mxu2 %vm439_vm0, %v2601_v11  ;;  %v422_v23 = vpack.c.bf16 %v393_v22, %v392_v21  ;;  %v423_v26 = vpack.c.bf16 %v395_v25, %v394_v24  ;;  %v396_v27 = vld [vmem:[%s3426_s25 + $0x50] sm:$0xff]  ;;  %v397_v28 = vld [vmem:[%s3426_s25 + $0x58] sm:$0xff]  ;;  %v3337_v22 = vmov 1065369472  }
  0x17   : > { %v424_v29 = vpack.c.bf16 %v397_v28, %v396_v27  ;;  %v3487_v27 = vunpack.c.l.bf16 %v3337_v22 }
  0x24   : > { %2979 = vmatmul.msk.bf16.gmra.mxu0 %vm439_vm0, %v420_v16 }
  0x25   : > { %2985 = vmatmul.msk.bf16.gmra.mxu3 %vm439_vm0, %v426_v17 }
  0x34   : > { %2980 = vmatmul.msk.bf16.gmra.mxu0 %vm439_vm0, %v421_v20 }
  0x44   : > { %2981 = vmatmul.msk.bf16.gmra.mxu0 %vm439_vm0, %v422_v23  ;;  %v3485_v23 = vunpack.c.h.bf16 %v3337_v22 }
  0x54   : > { %2982 = vmatmul.msk.bf16.gmra.mxu0 %vm439_vm0, %v423_v26 }
  0x64   : > { %2983 = vmatmul.msk.bf16.gmra.mxu0 %vm439_vm0, %v424_v29 }
  0x91   : > { %v473_v32 = vpop.f32.mrf.mxu0 }
  0x92   : > { %v513_v39 = vpack.c.bf16 %v473_v32, %v473_v32 }
  0x94   : > { %v534_v45 = vunpack.c.l.bf16 %v513_v39 }
  0x96   : > { %v551_v51 = vadd.f32 %v3461_v37, %v534_v45 }
  0x98   : > { %v503_v35 = vpop.f32.mrf.mxu3  ;;  %v3472_v57 = vpack.c.bf16 %v551_v51, %v551_v51 }
  0x99   : > { %v525_v36 = vpack.c.bf16 %v503_v35, %v503_v35  ;;  %v475_v41 = vpop.f32.mrf.mxu0 }
  0x9a   : > { %v514_v43 = vpack.c.bf16 %v475_v41, %v475_v41  ;;  %v583_v63 = vand.u32 2147450879, %v3472_v57 }
  0x9b   : > { %v546_v38 = vunpack.c.l.bf16 %v525_v36 }
  0x9c   : > { %v535_v50 = vunpack.c.l.bf16 %v514_v43  ;;  %v599_v5 = vunpack.c.l.bf16 %v583_v63 }
  0x9d   : > { %v563_v40 = vadd.f32 %v3461_v37, %v546_v38 }
  0x9e   : > { %v552_v56 = vadd.f32 %v3461_v37, %v535_v50  ;;  %v615_v12 = vmul.f32 0.70703125, %v599_v5 }
  0x9f   : > { %v3464_v42 = vpack.c.bf16 %v563_v40, %v563_v40 }
  0xa0   : > { %v505_v44 = vpop.f32.mrf.mxu3  ;;  %v3478_v62 = vpack.c.bf16 %v552_v56, %v552_v56  ;;  %v631_v18 = vpack.c.bf16 %v615_v12, %v615_v12 }
  0xa1   : > { %v595_v46 = vand.u32 2147450879, %v3464_v42  ;;  %v526_v47 = vpack.c.bf16 %v505_v44, %v505_v44  ;;  %v478_v8 = vpop.f32.mrf.mxu0 }
  0xa2   : > { %v584_v4 = vand.u32 2147450879, %v3478_v62  ;;  %v515_v15 = vpack.c.bf16 %v478_v8, %v478_v8  ;;  %v647_v26 = vunpack.c.l.bf16 %v631_v18  ;;  %v4838_v18 = vunpack.c.l.bf16 %v3478_v62 }
  0xa3   : > { %v611_v48 = vunpack.c.l.bf16 %v595_v46  ;;  %v547_v49 = vunpack.c.l.bf16 %v526_v47 }
  0xa4   : > { %v600_v10 = vunpack.c.l.bf16 %v584_v4  ;;  %v536_v20 = vunpack.c.l.bf16 %v515_v15  ;;  %v663_v36 = vmul.f32 0.328125, %v647_v26  ;;  %v1289_v43 = vmul.f32 %v647_v26, %v647_v26 }
  0xa5   : > { %v627_v52 = vmul.f32 0.70703125, %v611_v48  ;;  %v564_v53 = vadd.f32 %v3461_v37, %v547_v49 }
  0xa6   : > { %v616_v17 = vmul.f32 0.70703125, %v600_v10  ;;  %v553_v29 = vadd.f32 %v3461_v37, %v536_v20  ;;  %v679_v46 = vpack.c.bf16 %v663_v36, %v663_v36  ;;  %v3524_v36 = vmul.f32 0.5, %v4838_v18 }
  0xa7   : > { %v643_v54 = vpack.c.bf16 %v627_v52, %v627_v52  ;;  %v3469_v55 = vpack.c.bf16 %v564_v53, %v564_v53  ;;  %v1305_v52 = vpack.c.bf16 %v1289_v43, %v1289_v43 }
  0xa8   : > { %v632_v24 = vpack.c.bf16 %v616_v17, %v616_v17  ;;  %v3492_v39 = vpack.c.bf16 %v553_v29, %v553_v29  ;;  %v508_v40 = vpop.f32.mrf.mxu3 }
  0xa9   : > { %v3474_v58 = vunpack.c.l.bf16 %v643_v54  ;;  %v596_v59 = vand.u32 2147450879, %v3469_v55  ;;  %v527_v45 = vpack.c.bf16 %v508_v40, %v508_v40  ;;  %v1321_v5 = vunpack.c.l.bf16 %v1305_v52  ;;  %v480_v10 = vpop.f32.mrf.mxu0 }
  0xaa   : > { %v648_v35 = vunpack.c.l.bf16 %v632_v24  ;;  %4868 = vst [vmem:[#allocation2_spill] sm:$0xff] %v3492_v39  ;;  %v585_v48 = vand.u32 2147450879, %v3492_v39  ;;  %v516_v20 = vpack.c.bf16 %v480_v10, %v480_v10 }
  0xab   : > { %v675_v60 = vmul.f32 0.328125, %v3474_v58  ;;  %v612_v61 = vunpack.c.l.bf16 %v596_v59  ;;  %v548_v56 = vunpack.c.l.bf16 %v527_v45  ;;  %v695_v59 = vunpack.c.l.bf16 %v679_v46 }
  0xac   : > { %v664_v44 = vmul.f32 0.328125, %v648_v35  ;;  %v601_v63 = vunpack.c.l.bf16 %v585_v48  ;;  %v1290_v8 = vmul.f32 %v648_v35, %v648_v35  ;;  %v537_v40 = vunpack.c.l.bf16 %v516_v20 }
  0xad   : > { %v691_v0 = vpack.c.bf16 %v675_v60, %v675_v60  ;;  %v628_v1 = vmul.f32 0.70703125, %v612_v61 }
  0xae   : > { %v680_v53 = vpack.c.bf16 %v664_v44, %v664_v44  ;;  %v1306_v24 = vpack.c.bf16 %v1290_v8, %v1290_v8 }
  0xaf   : > { %v707_v2 = vunpack.c.l.bf16 %v691_v0  ;;  %v644_v3 = vpack.c.bf16 %v628_v1, %v628_v1  ;;  %v3500_v0 = vpop.f32.mrf.mxu2  ;;  %v4839_v1 = vunpack.c.l.bf16 %v3472_v57 }
  0xb0   : > { %v510_v43 = vpop.f32.mrf.mxu3  ;;  %v1322_v46 = vunpack.c.l.bf16 %v1306_v24 }
  0xb1   : > { %v723_v6 = vadd.f32 1.0, %v707_v2  ;;  %v3482_v7 = vunpack.c.l.bf16 %v644_v3  ;;  %v1301_v2 = vmul.f32 %v3474_v58, %v3474_v58  ;;  %v3510_v15 = vmul.f32 0.5, %v4839_v1 }
  0xb3   : > { %v739_v9 = vpack.c.bf16 %v723_v6, %v723_v6  ;;  %v676_v11 = vmul.f32 0.328125, %v3482_v7  ;;  %v696_v6 = vunpack.c.l.bf16 %v680_v53  ;;  %v1302_v58 = vmul.f32 %v3482_v7, %v3482_v7 }
  0xb5   : > { %v829_v13 = vunpack.c.h.bf16 %v739_v9  ;;  %v830_v14 = vunpack.c.l.bf16 %v739_v9  ;;  %v692_v16 = vpack.c.bf16 %v676_v11, %v676_v11  ;;  %v565_v9 = vadd.f32 %v3461_v37, %v548_v56 }
  0xb6   : > { %v711_v11 = vadd.f32 1.0, %v695_v59  ;;  %v712_v22 = vadd.f32 1.0, %v696_v6  ;;  %v528_v56 = vpack.c.bf16 %v510_v43, %v510_v43 }
  0xb7   : > { %3141 = vrcp.f32 %v829_v13  ;;  %v708_v19 = vunpack.c.l.bf16 %v692_v16  ;;  %v1317_v16 = vpack.c.bf16 %v1301_v2, %v1301_v2 }
  0xb8   : > { %3143 = vrcp.f32 %v830_v14  ;;  %v617_v14 = vmul.f32 0.70703125, %v601_v63  ;;  %v727_v26 = vpack.c.bf16 %v711_v11, %v711_v11  ;;  %v728_v45 = vpack.c.bf16 %v712_v22, %v712_v22 }
  0xb9   : > { %v724_v21 = vadd.f32 1.0, %v708_v19  ;;  %v554_v63 = vadd.f32 %v3461_v37, %v537_v40 }
  0xba   : > { %v745_v48 = vunpack.c.h.bf16 %v727_v26  ;;  %v746_v59 = vunpack.c.l.bf16 %v727_v26  ;;  %v753_v11 = vunpack.c.l.bf16 %v728_v45 }
  0xbb   : > { %v740_v28 = vpack.c.bf16 %v724_v21, %v724_v21  ;;  %v1337_v21 = vsub.f32 0.0, %v1321_v5 }
  0xbd   : > { %v3142_v25 = vpop.eup %3141  ;;  %v836_v33 = vunpack.c.h.bf16 %v740_v28  ;;  %v837_v34 = vunpack.c.l.bf16 %v740_v28  ;;  %v1353_v44 = vpack.c.bf16 %v1337_v21, %v1337_v21 }
  0xbe   : > { %v3144_v30 = vpop.eup %3143  ;;  %v832_v31 = vmul.f32 %v3142_v25, %v3485_v23  ;;  %v3516_v25 = vpack.c.bf16 %v565_v9, %v565_v9 }
  0xbf   : > { %v834_v32 = vmul.f32 %v3144_v30, %v3487_v27  ;;  %3145 = vrcp.f32 %v836_v33  ;;  %v633_v30 = vpack.c.bf16 %v617_v14, %v617_v14  ;;  %v4844_v33 = vunpack.c.l.bf16 %v3464_v42 }
  0xc0   : > { %3147 = vrcp.f32 %v837_v34  ;;  %4869 = vst [vmem:[#allocation3_spill] sm:$0xff] %v3516_v25  ;;  %v1318_v34 = vpack.c.bf16 %v1302_v58, %v1302_v58  ;;  %v1369_v2 = vunpack.c.l.bf16 %v1353_v44  ;;  %v549_v14 = vunpack.c.l.bf16 %v528_v56 }
  0xc1   : > { %v835_v38 = vpack.c.bf16 %v832_v31, %v834_v32  ;;  %v2628_v31 = vpop.f32.mrf.mxu2  ;;  %v1333_v32 = vunpack.c.l.bf16 %v1317_v16  ;;  %3149 = vrcp.f32 %v745_v48 }
  0xc2   : > { %v1334_v53 = vunpack.c.l.bf16 %v1318_v34  ;;  %3151 = vrcp.f32 %v746_v59  ;;  %v566_v31 = vadd.f32 %v3461_v37, %v549_v14 }
  0xc3   : > { %v3494_v41 = vunpack.c.l.bf16 %v835_v38  ;;  %v1349_v52 = vsub.f32 0.0, %v1333_v32 }
  0xc5   : > { %v885_v47 = vmul.f32 1.0625, %v3494_v41  ;;  %v3146_v49 = vpop.eup %3145  ;;  %v1365_v10 = vpack.c.bf16 %v1349_v52, %v1349_v52  ;;  %v483_v52 = vpop.f32.mrf.mxu0 }
  0xc6   : > { %v3148_v51 = vpop.eup %3147  ;;  %v839_v54 = vmul.f32 %v3146_v49, %v3485_v23 }
  0xc7   : > { %v901_v50 = vpack.c.bf16 %v885_v47, %v885_v47  ;;  %v841_v61 = vmul.f32 %v3148_v51, %v3487_v27  ;;  %v597_v47 = vand.u32 2147450879, %v3516_v25  ;;  %v649_v51 = vunpack.c.l.bf16 %v633_v30  ;;  %v3150_v32 = vpop.eup %3149 }
  0xc9   : > { %v917_v60 = vunpack.c.l.bf16 %v901_v50  ;;  %v842_v4 = vpack.c.bf16 %v839_v54, %v841_v61  ;;  %v4842_v54 = vunpack.c.l.bf16 %v3469_v55  ;;  %v613_v5 = vunpack.c.l.bf16 %v597_v47  ;;  %v3152_v47 = vpop.eup %3151 }
  0xca   : > { %v665_v9 = vmul.f32 0.328125, %v649_v51 }
  0xcb   : > { %v2998_v3 = vadd.f32 -1.453125, %v917_v60  ;;  %v3506_v13 = vunpack.c.l.bf16 %v842_v4  ;;  %v1338_v4 = vsub.f32 0.0, %v1322_v46  ;;  %v629_v21 = vmul.f32 0.70703125, %v613_v5 }
  0xcc   : > { %v681_v26 = vpack.c.bf16 %v665_v9, %v665_v9  ;;  %v750_v5 = vmul.f32 %v3152_v47, %v3487_v27  ;;  %v517_v9 = vpack.c.bf16 %v483_v52, %v483_v52 }
  0xcd   : > { %v949_v12 = vpack.c.bf16 %v2998_v3, %v2998_v3  ;;  %v886_v19 = vmul.f32 1.0625, %v3506_v13  ;;  %v752_v3 = vunpack.c.h.bf16 %v728_v45  ;;  %v1354_v20 = vpack.c.bf16 %v1338_v4, %v1338_v4 }
  0xce   : > { %v1670_v45 = vmul.f32 0.5, %v4842_v54  ;;  %v645_v46 = vpack.c.bf16 %v629_v21, %v629_v21 }
  0xcf   : > { %v965_v17 = vunpack.c.l.bf16 %v949_v12  ;;  %v902_v29 = vpack.c.bf16 %v886_v19, %v886_v19  ;;  %v1350_v12 = vsub.f32 0.0, %v1334_v53  ;;  %v1385_v19 = vmul.f32 1.442695, %v1369_v2 }
  0xd0   : > { %3153 = vrcp.f32 %v752_v3  ;;  %v1370_v43 = vunpack.c.l.bf16 %v1354_v20 }
  0xd1   : > { %v981_v28 = vmul.f32 %v965_v17, %v3494_v41  ;;  %v918_v38 = vunpack.c.l.bf16 %v902_v29  ;;  %v3530_v17 = vpack.c.bf16 %v554_v63, %v554_v63  ;;  %v1381_v29 = vunpack.c.l.bf16 %v1365_v10 }
  0xd2   : > { %3155 = vrcp.f32 %v753_v11  ;;  %v1366_v30 = vpack.c.bf16 %v1350_v12, %v1350_v12 }
  0xd3   : > { %v997_v35 = vpack.c.bf16 %v981_v28, %v981_v28  ;;  %v2999_v50 = vadd.f32 -1.453125, %v918_v38  ;;  %4870 = vst [vmem:[#allocation4_spill] sm:$0xff] %v3530_v17  ;;  %v1291_v28 = vmul.f32 %v649_v51, %v649_v51  ;;  %v586_v40 = vand.u32 2147450879, %v3530_v17 }
  0xd4   : > { %3157 = vpow2.f32 %v1385_v19  ;;  %v1409_v56 = vmul.f32 1.442695, %v1381_v29  ;;  %v1382_v59 = vunpack.c.l.bf16 %v1366_v30  ;;  %v538_v30 = vunpack.c.l.bf16 %v517_v9 }
  0xd5   : > { %v1013_v49 = vunpack.c.l.bf16 %v997_v35  ;;  %v950_v61 = vpack.c.bf16 %v2999_v50, %v2999_v50  ;;  %v1669_v35 = vmul.f32 0.5, %v4844_v33  ;;  %v697_v50 = vunpack.c.l.bf16 %v681_v26 }
  0xd6   : > { %v1307_v51 = vpack.c.bf16 %v1291_v28, %v1291_v28  ;;  %v3154_v53 = vpop.eup %3153  ;;  %v602_v3 = vunpack.c.l.bf16 %v586_v40  ;;  %3159 = vpow2.f32 %v1409_v56  ;;  %v4837_v40 = vunpack.c.l.bf16 %v3492_v39 }
  0xd7   : > { %v1029_v60 = vadd.f32 1.421875, %v1013_v49  ;;  %v966_v8 = vunpack.c.l.bf16 %v950_v61  ;;  %v748_v61 = vmul.f32 %v3150_v32, %v3485_v23  ;;  %v1685_v63 = vpack.c.bf16 %v1669_v35, %v1669_v35 }
  0xd8   : > { %v3156_v4 = vpop.eup %3155  ;;  %v713_v12 = vadd.f32 1.0, %v697_v50  ;;  %v1323_v14 = vunpack.c.l.bf16 %v1307_v51  ;;  %v755_v20 = vmul.f32 %v3154_v53, %v3485_v23  ;;  %v555_v53 = vadd.f32 %v3461_v37, %v538_v30 }
  0xd9   : > { %v1045_v6 = vpack.c.bf16 %v1029_v60, %v1029_v60  ;;  %v982_v58 = vmul.f32 %v966_v8, %v3506_v13  ;;  %v3541_v60 = vpack.c.bf16 %v566_v31, %v566_v31  ;;  %v661_v8 = vunpack.c.l.bf16 %v645_v46 }
  0xda   : > { %v757_v21 = vmul.f32 %v3156_v4, %v3487_v27  ;;  %v3158_v26 = vpop.eup %3157  ;;  %v751_v28 = vpack.c.bf16 %v748_v61, %v750_v5  ;;  %v1339_v35 = vsub.f32 0.0, %v1323_v14  ;;  %v3559_v4 = vmul.f32 0.5, %v4837_v40  ;;  %v3565_v14 = vpop.f32.mrf.mxu0 }
  0xdb   : > { %v1061_v16 = vunpack.c.l.bf16 %v1045_v6  ;;  %v998_v24 = vpack.c.bf16 %v982_v58, %v982_v58  ;;  %4871 = vst [vmem:[#allocation5_spill] sm:$0xff] %v3541_v60  ;;  %v1387_v6 = vmul.f32 1.442695, %v1370_v43  ;;  %v1686_v58 = vpack.c.bf16 %v1670_v45, %v1670_v45 }
  0xdc   : > { %v598_v19 = vand.u32 2147450879, %v3541_v60  ;;  %v677_v29 = vmul.f32 0.328125, %v661_v8  ;;  %v1417_v45 = vpack.c.bf16 %v3158_v26, %v3158_v26  ;;  %v758_v46 = vpack.c.bf16 %v755_v20, %v757_v21 }
  0xdd   : > { %v1077_v22 = vmul.f32 %v1061_v16, %v3494_v41  ;;  %v1014_v38 = vunpack.c.l.bf16 %v998_v24  ;;  %v1411_v16 = vmul.f32 1.442695, %v1382_v59  ;;  %v618_v24 = vmul.f32 0.70703125, %v602_v3 }
  0xde   : > { %3161 = vpow2.f32 %v1387_v6  ;;  %v614_v43 = vunpack.c.l.bf16 %v598_v19  ;;  %v3552_v50 = vunpack.c.l.bf16 %v751_v28  ;;  %v3554_v51 = vunpack.c.l.bf16 %v1686_v58 }
  0xdf   : > { %v1093_v34 = vpack.c.bf16 %v1077_v22, %v1077_v22  ;;  %v1030_v49 = vadd.f32 1.421875, %v1014_v38  ;;  %v3549_v38 = vunpack.c.l.bf16 %v1685_v63  ;;  %3163 = vpow2.f32 %v1411_v16 }
  0xe0   : > { %v693_v52 = vpack.c.bf16 %v677_v29, %v677_v29  ;;  %v1355_v63 = vpack.c.bf16 %v1339_v35, %v1339_v35  ;;  %v1303_v5 = vmul.f32 %v661_v8, %v661_v8  ;;  %v630_v6 = vmul.f32 0.70703125, %v614_v43  ;;  %v3046_v35 = vld [vmem:[%s4831_s4 + $0x1] sm:$0x1] }
  0xe1   : > { %v1109_v48 = vunpack.c.l.bf16 %v1093_v34  ;;  %v1046_v2 = vpack.c.bf16 %v1030_v49, %v1030_v49  ;;  %v729_v34 = vpack.c.bf16 %v713_v12, %v713_v12  ;;  %v3160_v49 = vpop.eup %3159  ;;  %v3561_v9 = vunpack.c.l.bf16 %v1417_v45 }
  0xe2   : > { %v3568_v58 = vmul.f32 1.0625, %v3552_v50  ;;  %v1429_v19 = vpack.c.bf16 %v3160_v49, %v3160_v49  ;;  %v709_v20 = vunpack.c.l.bf16 %v693_v52  ;;  %v3570_v21 = vpack.c.bf16 %v555_v53, %v555_v53 }
  0xe3   : > { %v3014_v10 = vadd.f32 -0.28515625, %v1109_v48  ;;  %v1062_v11 = vunpack.c.l.bf16 %v1046_v2  ;;  %v634_v48 = vpack.c.bf16 %v618_v24, %v618_v24  ;;  %v759_v61 = vunpack.c.h.bf16 %v729_v34 }
  0xe4   : > { %v3162_v2 = vpop.eup %3161  ;;  %v760_v3 = vunpack.c.l.bf16 %v729_v34  ;;  %4872 = vst [vmem:[#allocation6_spill] sm:$0xff] %v3570_v21  ;;  %v1371_v24 = vunpack.c.l.bf16 %v1355_v63  ;;  %v1319_v28 = vpack.c.bf16 %v1303_v5, %v1303_v5  ;;  %v646_v29 = vpack.c.bf16 %v630_v6, %v630_v6 }
  0xe5   : > { %v1078_v22 = vmul.f32 %v1062_v11, %v3506_v13  ;;  %v1141_v31 = vpack.c.bf16 %v3014_v10, %v3014_v10  ;;  %v3563_v10 = vunpack.c.l.bf16 %v758_v46  ;;  %v650_v12 = vunpack.c.l.bf16 %v634_v48  ;;  %v3164_v16 = vpop.eup %3163 }
  0xe6   : > { %3165 = vrcp.f32 %v759_v61  ;;  %v3583_v45 = vunpack.c.l.bf16 %v1429_v19  ;;  %v725_v46 = vadd.f32 1.0, %v709_v20  ;;  %v1389_v52 = vmul.f32 1.442695, %v1371_v24 }
  0xe7   : > { %v1094_v32 = vpack.c.bf16 %v1078_v22, %v1078_v22  ;;  %v1157_v56 = vunpack.c.l.bf16 %v1141_v31  ;;  %3167 = vrcp.f32 %v760_v3  ;;  %v3576_v30 = vmul.f32 1.0625, %v3563_v10 }
  0xe8   : > { %v1418_v31 = vpack.c.bf16 %v3162_v2, %v3162_v2  ;;  %v666_v34 = vmul.f32 0.328125, %v650_v12  ;;  %v4840_v53 = vunpack.c.l.bf16 %v3516_v25  ;;  %v2630_v61 = vpack.c.bf16 %v3500_v0, %v3500_v0 }
  0xe9   : > { %v1110_v47 = vunpack.c.l.bf16 %v1094_v32  ;;  %v1173_v22 = vmul.f32 %v1157_v56, %v3494_v41  ;;  %v1430_v32 = vpack.c.bf16 %v3164_v16, %v3164_v16  ;;  %v1335_v56 = vunpack.c.l.bf16 %v1319_v28 }
  0xea   : > { %v2631_v63 = vpack.c.bf16 %v3046_v35, %v3046_v35  ;;  %v3592_v5 = vunpack.c.l.bf16 %v1418_v31  ;;  %v741_v19 = vpack.c.bf16 %v725_v46, %v725_v46  ;;  %v1292_v20 = vmul.f32 %v650_v12, %v650_v12 }
  0xeb   : > { %v3015_v59 = vadd.f32 -0.28515625, %v1110_v47  ;;  %v587_v47 = vand.u32 2147450879, %v3570_v21  ;;  %v1189_v48 = vpack.c.bf16 %v1173_v22, %v1173_v22  ;;  %v3594_v6 = vunpack.c.l.bf16 %v1430_v32 }
  0xec   : > { %v3166_v2 = vpop.eup %3165  ;;  %3169 = vpow2.f32 %v1389_v52  ;;  %v3598_v0 = vmul.f32 0.5, %v4840_v53  ;;  %v1351_v35 = vsub.f32 0.0, %v1335_v56  ;;  %v2636_v18 = vunpack.c.l.bf16 %v2630_v61 }
  0xed   : > { %v1142_v11 = vpack.c.bf16 %v3015_v59, %v3015_v59  ;;  %v662_v59 = vunpack.c.l.bf16 %v646_v29  ;;  %v3168_v16 = vpop.eup %3167  ;;  %v603_v22 = vunpack.c.l.bf16 %v587_v47  ;;  %v1205_v24 = vunpack.c.l.bf16 %v1189_v48  ;;  %v488_v29 = vpop.f32.mrf.mxu0 }
  0xee   : > { %4873 = vst [vmem:[#allocation7_spill] sm:$0xff] %v3598_v0  ;;  %v762_v32 = vmul.f32 %v3166_v2, %v3485_v23  ;;  %v4841_v12 = vunpack.c.l.bf16 %v3530_v17  ;;  %v843_v47 = vunpack.c.h.bf16 %v741_v19  ;;  %v1308_v48 = vpack.c.bf16 %v1292_v20, %v1292_v20 }
  0xef   : > { %v1158_v8 = vunpack.c.l.bf16 %v1142_v11  ;;  %v682_v11 = vpack.c.bf16 %v666_v34, %v666_v34  ;;  %v678_v40 = vmul.f32 0.328125, %v662_v59  ;;  %v764_v34 = vmul.f32 %v3168_v16, %v3487_v27 }
  0xf0   : > { %v1304_v53 = vmul.f32 %v662_v59, %v662_v59  ;;  %v518_v56 = vpack.c.bf16 %v3565_v14, %v3565_v14  ;;  %v844_v26 = vunpack.c.l.bf16 %v741_v19  ;;  %v3609_v20 = vmul.f32 0.5, %v4841_v12 }
  0xf1   : > { %v1174_v49 = vmul.f32 %v1158_v8, %v3506_v13  ;;  %v2633_v8 = vpack.i.b16 %v2631_v63, %v2631_v63  ;;  %v698_v46 = vunpack.c.l.bf16 %v682_v11  ;;  %v1221_v63 = vadd.f32 0.25390625, %v1205_v24 }
  0xf2   : > { %v694_v61 = vpack.c.bf16 %v678_v40, %v678_v40  ;;  %v3170_v2 = vpop.eup %3169  ;;  %v765_v7 = vpack.c.bf16 %v762_v32, %v764_v34  ;;  %3171 = vrcp.f32 %v843_v47  ;;  %v539_v40 = vunpack.c.l.bf16 %v518_v56 }
  0xf3   : > { %v1190_v28 = vpack.c.bf16 %v1174_v49, %v1174_v49  ;;  %v2635_v31 = vperm.slane %v2633_v8, 0  ;;  %v619_v49 = vmul.f32 0.70703125, %v603_v22  ;;  %v1367_v8 = vpack.c.bf16 %v1351_v35, %v1351_v35 }
  0xf4   : > { %v714_v16 = vadd.f32 1.0, %v698_v46  ;;  %v1324_v22 = vunpack.c.l.bf16 %v1308_v48  ;;  %v1237_v14 = vpack.c.bf16 %v1221_v63, %v1221_v63  ;;  %3173 = vrcp.f32 %v844_v26 }
  0xf5   : > { %v2637_v52 = vunpack.c.l.bf16 %v2635_v31  ;;  %v1206_v1 = vunpack.c.l.bf16 %v1190_v28  ;;  %v635_v59 = vpack.c.bf16 %v619_v49, %v619_v49  ;;  %v1320_v28 = vpack.c.bf16 %v1304_v53, %v1304_v53  ;;  %v490_v11 = vpop.f32.mrf.mxu0 }
  0xf6   : > { %v710_v35 = vunpack.c.l.bf16 %v694_v61  ;;  %v3614_v32 = vunpack.c.l.bf16 %v765_v7  ;;  %v1419_v34 = vpack.c.bf16 %v3170_v2, %v3170_v2  ;;  %v730_v46 = vpack.c.bf16 %v714_v16, %v714_v16 }
  0xf7   : > { %v2638_v44 = vadd.f32 %v2637_v52, %v2636_v18  ;;  %v1222_v19 = vadd.f32 0.25390625, %v1206_v1  ;;  %v1383_v18 = vunpack.c.l.bf16 %v1367_v8  ;;  %v519_v52 = vpack.c.bf16 %v488_v29, %v488_v29 }
  0xf8   : > { %v1340_v47 = vsub.f32 0.0, %v1324_v22  ;;  %v651_v48 = vunpack.c.l.bf16 %v635_v59  ;;  %v1253_v1 = vunpack.c.l.bf16 %v1237_v14  ;;  %v1336_v63 = vunpack.c.l.bf16 %v1320_v28  ;;  %v3172_v56 = vpop.eup %3171 }
  0xf9   : > { %v3611_v24 = vpack.c.bf16 %v2638_v44, %v2638_v44  ;;  %v1238_v53 = vpack.c.bf16 %v1222_v19, %v1222_v19  ;;  %v556_v26 = vadd.f32 %v3461_v37, %v539_v40  ;;  %v1413_v8 = vmul.f32 1.442695, %v1383_v18 }
  0xfa   : > { %v726_v61 = vadd.f32 1.0, %v710_v35  ;;  %v520_v12 = vpack.c.bf16 %v490_v11, %v490_v11  ;;  %v3620_v2 = vmul.f32 1.0625, %v3614_v32  ;;  %v3622_v29 = vunpack.c.l.bf16 %v1419_v34  ;;  %v3174_v44 = vpop.eup %3173 }
  0xfb   : > { %v2640_v31 = vand.u32 2147450879, %v3611_v24  ;;  %v766_v16 = vunpack.c.h.bf16 %v730_v46  ;;  %v540_v22 = vunpack.c.l.bf16 %v519_v52  ;;  %v767_v59 = vunpack.c.l.bf16 %v730_v46 }
  0xfc   : > { %v667_v14 = vmul.f32 0.328125, %v651_v48  ;;  %v1269_v28 = vmul.f32 %v1253_v1, %v3494_v41  ;;  %v1254_v40 = vunpack.c.l.bf16 %v1238_v53  ;;  %v1352_v3 = vsub.f32 0.0, %v1336_v63 }
  0xfd   : > { %v2641_v49 = vunpack.c.l.bf16 %v2640_v31  ;;  %v1356_v31 = vpack.c.bf16 %v1340_v47, %v1340_v47  ;;  %v3625_v18 = vpack.c.bf16 %v556_v26, %v556_v26  ;;  %3175 = vpow2.f32 %v1413_v8 }
  0xfe   : > { %v742_v11 = vpack.c.bf16 %v726_v61, %v726_v61  ;;  %v846_v34 = vmul.f32 %v3172_v56, %v3485_v23  ;;  %v848_v52 = vmul.f32 %v3174_v44, %v3487_v27  ;;  %3177 = vrcp.f32 %v766_v16 }
  0xff   : > { %v2642_v7 = vmul.f32 0.70703125, %v2641_v49  ;;  %4874 = vst [vmem:[#allocation8_spill] sm:$0xff] %v3625_v18  ;;  %v541_v49 = vunpack.c.l.bf16 %v520_v12  ;;  %v557_v46 = vadd.f32 %v3461_v37, %v540_v22  ;;  %3179 = vrcp.f32 %v767_v59 }
 0x100   : > { %v1372_v47 = vunpack.c.l.bf16 %v1356_v31  ;;  %v1285_v1 = vpack.c.bf16 %v1269_v28, %v1269_v28  ;;  %v1270_v53 = vmul.f32 %v1254_v40, %v3506_v13  ;;  %v1368_v63 = vpack.c.bf16 %v1352_v3, %v1352_v3  ;;  %v493_v28 = vpop.f32.mrf.mxu0 }
 0x101   : > { %v2643_v19 = vpack.c.bf16 %v2642_v7, %v2642_v7  ;;  %v683_v7 = vpack.c.bf16 %v667_v14, %v667_v14  ;;  %v588_v26 = vand.u32 2147450879, %v3625_v18  ;;  %v850_v8 = vunpack.c.h.bf16 %v742_v11 }
 0x102   : > { %v1293_v12 = vmul.f32 %v651_v48, %v651_v48  ;;  %v558_v56 = vadd.f32 %v3461_v37, %v541_v49  ;;  %v849_v44 = vpack.c.bf16 %v846_v34, %v848_v52  ;;  %v851_v16 = vunpack.c.l.bf16 %v742_v11 }
 0x103   : > { %v3627_v35 = vunpack.c.l.bf16 %v2643_v19  ;;  %v4843_v22 = vunpack.c.l.bf16 %v3541_v60  ;;  %v3637_v59 = vpack.c.bf16 %v557_v46, %v557_v46  ;;  %v3176_v31 = vpop.eup %3175  ;;  %v1391_v19 = vmul.f32 1.442695, %v1372_v47 }
 0x104   : > { %v699_v13 = vunpack.c.l.bf16 %v683_v7  ;;  %v3178_v40 = vpop.eup %3177  ;;  %v1445_v43 = vunpack.c.l.bf16 %v1285_v1  ;;  %v1286_v48 = vpack.c.bf16 %v1270_v53, %v1270_v53  ;;  %v604_v54 = vunpack.c.l.bf16 %v588_v26 }
 0x105   : > { %v2645_v41 = vmul.f32 0.328125, %v3627_v35  ;;  %4875 = vst [vmem:[#allocation9_spill] sm:$0xff] %v3637_v59  ;;  %v3180_v49 = vpop.eup %3179  ;;  %3181 = vrcp.f32 %v850_v8  ;;  %v1309_v11 = vpack.c.bf16 %v1293_v12, %v1293_v12  ;;  %v3641_v52 = vpack.c.bf16 %v558_v56, %v558_v56 }
 0x106   : > { %v3643_v46 = vunpack.c.l.bf16 %v849_v44  ;;  %3183 = vrcp.f32 %v851_v16  ;;  %v3647_v47 = vmul.f32 0.5, %v4843_v22  ;;  %v589_v7 = vand.u32 2147450879, %v3637_v59 }
 0x107   : > { %v2646_v61 = vpack.c.bf16 %v2645_v41, %v2645_v41  ;;  %v1384_v41 = vunpack.c.l.bf16 %v1368_v63  ;;  %4876 = vst [vmem:[#allocation10_spill] sm:$0xff] %v3641_v52  ;;  %3185 = vpow2.f32 %v1391_v19  ;;  %v715_v1 = vadd.f32 1.0, %v699_v13 }
 0x108   : > { %4877 = vst [vmem:[#allocation11_spill] sm:$0xff] %v3647_v47  ;;  %v1477_v63 = vmul.f32 %v3583_v45, %v1445_v43  ;;  %v1446_v26 = vunpack.c.l.bf16 %v1286_v48  ;;  %v620_v12 = vmul.f32 0.70703125, %v604_v54  ;;  %v1325_v56 = vunpack.c.l.bf16 %v1309_v11 }
 0x109   : > { %v2647_v3 = vunpack.c.l.bf16 %v2646_v61  ;;  %v1431_v61 = vpack.c.bf16 %v3176_v31, %v3176_v31  ;;  %v1415_v8 = vmul.f32 1.442695, %v1384_v41  ;;  %v590_v16 = vand.u32 2147450879, %v3641_v52 }
 0x10a   : > { %v3653_v14 = vmul.f32 1.0625, %v3643_v46  ;;  %v769_v22 = vmul.f32 %v3178_v40, %v3485_v23  ;;  %v771_v31 = vmul.f32 %v3180_v49, %v3487_v27  ;;  %v605_v19 = vunpack.c.l.bf16 %v589_v7  ;;  %v495_v7 = vpop.f32.mrf.mxu0 }
 0x10b   : > { %v2648_v34 = vadd.f32 1.0, %v2647_v3  ;;  %v3182_v13 = vpop.eup %3181  ;;  %v731_v45 = vpack.c.bf16 %v715_v1, %v715_v1  ;;  %v1493_v41 = vpack.c.bf16 %v1477_v63, %v1477_v63  ;;  %v1478_v11 = vmul.f32 %v3594_v6, %v1446_v26 }
 0x10c   : > { %v3184_v48 = vpop.eup %3183  ;;  %v3661_v33 = vunpack.c.l.bf16 %v1431_v61  ;;  %v1341_v40 = vsub.f32 0.0, %v1325_v56  ;;  %v606_v49 = vunpack.c.l.bf16 %v590_v16  ;;  %v772_v1 = vpack.c.bf16 %v769_v22, %v771_v31 }
 0x10d   : > { %v2649_v53 = vpack.c.bf16 %v2648_v34, %v2648_v34  ;;  %v636_v34 = vpack.c.bf16 %v620_v12, %v620_v12  ;;  %v621_v52 = vmul.f32 0.70703125, %v605_v19  ;;  %v521_v54 = vpack.c.bf16 %v493_v28, %v493_v28 }
 0x10e   : > { %4878 = vst [vmem:[#allocation12_spill] sm:$0xff] %v3661_v33  ;;  %v855_v63 = vmul.f32 %v3184_v48, %v3487_v27  ;;  %v773_v6 = vunpack.c.h.bf16 %v731_v45  ;;  %v4879_v26 = vunpack.c.l.bf16 %v3570_v21  ;;  %v1509_v61 = vunpack.c.l.bf16 %v1493_v41 }
 0x10f   : > { %v2650_v3 = vunpack.c.h.bf16 %v2649_v53  ;;  %v2651_v44 = vunpack.c.l.bf16 %v2649_v53  ;;  %v3186_v53 = vpop.eup %3185  ;;  %v652_v56 = vunpack.c.l.bf16 %v636_v34  ;;  %v774_v47 = vunpack.c.l.bf16 %v731_v45 }
 0x110   : > { %v3669_v12 = vmul.f32 0.5, %v4879_v26  ;;  %v1420_v59 = vpack.c.bf16 %v3186_v53, %v3186_v53  ;;  %v1357_v43 = vpack.c.bf16 %v1341_v40, %v1341_v40  ;;  %v622_v22 = vmul.f32 0.70703125, %v606_v49 }
 0x111   : > { %3187 = vrcp.f32 %v2650_v3  ;;  %v853_v3 = vmul.f32 %v3182_v13, %v3485_v23  ;;  %v3671_v28 = vunpack.c.l.bf16 %v772_v1  ;;  %v637_v13 = vpack.c.bf16 %v621_v52, %v621_v52 }
 0x112   : > { %3189 = vrcp.f32 %v2651_v44  ;;  %4880 = vst [vmem:[#allocation13_spill] sm:$0xff] %v3669_v12  ;;  %v542_v44 = vunpack.c.l.bf16 %v521_v54  ;;  %v1525_v54 = vsub.f32 1.0, %v1509_v61  ;;  %v668_v53 = vmul.f32 0.328125, %v652_v56 }
 0x113   : > { %3191 = vpow2.f32 %v1415_v8  ;;  %v1494_v8 = vpack.c.bf16 %v1478_v11, %v1478_v11  ;;  %v856_v26 = vpack.c.bf16 %v853_v3, %v855_v63  ;;  %v522_v11 = vpack.c.bf16 %v495_v7, %v495_v7 }
 0x114   : > { %v559_v48 = vadd.f32 %v3461_v37, %v542_v44  ;;  %3193 = vrcp.f32 %v773_v6  ;;  %v1373_v40 = vunpack.c.l.bf16 %v1357_v43  ;;  %v638_v1 = vpack.c.bf16 %v622_v22, %v622_v22  ;;  %v498_v44 = vpop.f32.mrf.mxu0 }
 0x115   : > { %v1510_v34 = vunpack.c.l.bf16 %v1494_v8  ;;  %3195 = vrcp.f32 %v774_v47  ;;  %v653_v63 = vunpack.c.l.bf16 %v637_v13  ;;  %v1294_v7 = vmul.f32 %v652_v56, %v652_v56 }
 0x116   : > { %v3676_v45 = vpack.c.bf16 %v559_v48, %v559_v48  ;;  %v543_v8 = vunpack.c.l.bf16 %v522_v11  ;;  %v3688_v43 = vunpack.c.l.bf16 %v856_v26  ;;  %v684_v22 = vpack.c.bf16 %v668_v53, %v668_v53 }
 0x117   : > { %v3188_v16 = vpop.eup %3187  ;;  %v1526_v47 = vsub.f32 1.0, %v1510_v34  ;;  %v3690_v48 = vunpack.c.l.bf16 %v1420_v59  ;;  %v654_v13 = vunpack.c.l.bf16 %v638_v1  ;;  %v669_v11 = vmul.f32 0.328125, %v653_v63 }
 0x118   : > { %v3190_v31 = vpop.eup %3189  ;;  %v2653_v19 = vmul.f32 %v3188_v16, %v3485_v23  ;;  %4881 = vst [vmem:[#allocation14_spill] sm:$0xff] %v3676_v45  ;;  %v3679_v16 = vmul.f32 1.0625, %v3671_v28  ;;  %v591_v61 = vand.u32 2147450879, %v3676_v45  ;;  %v523_v3 = vpack.c.bf16 %v498_v44, %v498_v44 }
 0x119   : > { %v3192_v21 = vpop.eup %3191  ;;  %v2655_v41 = vmul.f32 %v3190_v31, %v3487_v27  ;;  %v3686_v31 = vpack.c.bf16 %v1525_v54, %v1525_v54  ;;  %4882 = vst [vmem:[#allocation15_spill] sm:$0xff] %v3690_v48  ;;  %v1310_v34 = vpack.c.bf16 %v1294_v7, %v1294_v7  ;;  %v560_v53 = vadd.f32 %v3461_v37, %v543_v8 }
 0x11a   : > { %v1432_v52 = vpack.c.bf16 %v3192_v21, %v3192_v21  ;;  %v1393_v21 = vmul.f32 1.442695, %v1373_v40  ;;  %v607_v26 = vunpack.c.l.bf16 %v591_v61  ;;  %v3699_v12 = vpack.c.bf16 %v1526_v47, %v1526_v47 }
 0x11b   : > { %v2656_v49 = vpack.c.bf16 %v2653_v19, %v2655_v41  ;;  %v3194_v19 = vpop.eup %3193  ;;  %v1589_v59 = vunpack.c.l.bf16 %v3686_v31  ;;  %v3702_v40 = vmul.f32 1.0625, %v3688_v43  ;;  %v700_v1 = vunpack.c.l.bf16 %v684_v22 }
 0x11c   : > { %v3196_v54 = vpop.eup %3195  ;;  %v776_v56 = vmul.f32 %v3194_v19, %v3485_v23  ;;  %3197 = vpow2.f32 %v1393_v21  ;;  %v670_v60 = vmul.f32 0.328125, %v654_v13  ;;  %v4884_v44 = vunpack.c.l.bf16 %v3464_v42 }
 0x11d   : > { %v3683_v6 = vunpack.c.l.bf16 %v2656_v49  ;;  %v3695_v49 = vunpack.c.l.bf16 %v1432_v52  ;;  %v778_v61 = vmul.f32 %v3196_v54, %v3487_v27  ;;  %v685_v8 = vpack.c.bf16 %v669_v11, %v669_v11 }
 0x11e   : > { %vm3707_vm1 = vcmp.lt.f32.partialorder %v4884_v44, 0.0  ;;  %v1295_v47 = vmul.f32 %v653_v63, %v653_v63  ;;  %v1326_v25 = vunpack.c.l.bf16 %v1310_v34  ;;  %v623_v0 = vmul.f32 0.70703125, %v607_v26 }
 0x11f   : > { %v2658_v41 = vmul.f32 1.0625, %v3683_v6  ;;  %4883 = vst [vmem:[#allocation16_spill] sm:$0xff] %v3695_v49  ;;  %v3712_v22 = vpack.c.bf16 %v560_v53, %v560_v53  ;;  %v1605_v19 = vsub.f32 0.0, %v1589_v59  ;;  %v1590_v42 = vunpack.c.l.bf16 %v3699_v12  ;;  %vm1637_vm3 = vmpackc.low %vm3707_vm1, %vm3707_vm1 }
 0x120   : > { %v716_v44 = vadd.f32 1.0, %v700_v1  ;;  %v686_v11 = vpack.c.bf16 %v670_v60, %v670_v60  ;;  %v779_v26 = vpack.c.bf16 %v776_v56, %v778_v61  ;;  %v701_v53 = vunpack.c.l.bf16 %v685_v8 }
 0x121   : > { %v2659_v45 = vpack.c.bf16 %v2658_v41, %v2658_v41  ;;  %v544_v41 = vunpack.c.l.bf16 %v523_v3  ;;  %4887 = vst [vmem:[#allocation17_spill] sm:$0xff] %v3712_v22  ;;  %v592_v34 = vand.u32 2147450879, %v3712_v22  ;;  %v1311_v59 = vpack.c.bf16 %v1295_v47, %v1295_v47  ;;  %v500_v47 = vpop.f32.mrf.mxu0 }
 0x122   : > { %v1342_v17 = vsub.f32 0.0, %v1326_v25  ;;  %v639_v33 = vpack.c.bf16 %v623_v0, %v623_v0  ;;  %v1621_v48 = vpack.c.bf16 %v1605_v19, %v1605_v19  ;;  %v1606_v54 = vsub.f32 0.0, %v1590_v42 }
 0x123   : > { %v2660_v52 = vunpack.c.l.bf16 %v2659_v45  ;;  %v4888_v45 = vunpack.c.l.bf16 %v3469_v55  ;;  %v561_v55 = vadd.f32 %v3461_v37, %v544_v41  ;;  %v608_v1 = vunpack.c.l.bf16 %v592_v34 }
 0x124   : > { %v732_v39 = vpack.c.bf16 %v716_v44, %v716_v44  ;;  %v4891_v3 = vunpack.c.l.bf16 %v3625_v18  ;;  %v702_v56 = vunpack.c.l.bf16 %v686_v11  ;;  %v1296_v61 = vmul.f32 %v654_v13, %v654_v13 }
 0x125   : > { %v3067_v49 = vadd.f32 -1.453125, %v2660_v52  ;;  %vm3716_vm2 = vcmp.lt.f32.partialorder %v4888_v45, 0.0  ;;  %v3726_v52 = vpop.eup %3197  ;;  %v624_v8 = vmul.f32 0.70703125, %v608_v1  ;;  %v3733_v41 = vunpack.c.l.bf16 %v779_v26 }
 0x126   : > { %v717_v0 = vadd.f32 1.0, %v701_v53  ;;  %v1358_v42 = vpack.c.bf16 %v1342_v17, %v1342_v17  ;;  %v1327_v44 = vunpack.c.l.bf16 %v1311_v59  ;;  %v3739_v34 = vunpack.c.l.bf16 %v639_v33  ;;  %vm1638_vm4 = vmpackc.low %vm3716_vm2, %vm3716_vm2 }
 0x127   : > { %v2662_v63 = vpack.c.bf16 %v3067_v49, %v3067_v49  ;;  %v3730_v49 = vmul.f32 0.5, %v4891_v3  ;;  %v1622_v3 = vpack.c.bf16 %v1606_v54, %v1606_v54  ;;  %v780_v22 = vunpack.c.h.bf16 %v732_v39 }
 0x128   : > { %v524_v11 = vpack.c.bf16 %v500_v47, %v500_v47  ;;  %v2684_v26 = vmul.f32 %v3627_v35, %v3627_v35  ;;  %v718_v53 = vadd.f32 1.0, %v702_v56  ;;  %v1653_v1 = vsel %vm1637_vm3, %v1621_v48, %v3686_v31 }
 0x129   : > { %v2663_v45 = vunpack.c.l.bf16 %v2662_v63  ;;  %4892 = vst [vmem:[#allocation18_spill] sm:$0xff] %v3730_v49  ;;  %v3737_v63 = vpack.c.bf16 %v561_v55, %v561_v55  ;;  %v1312_v55 = vpack.c.bf16 %v1296_v61, %v1296_v61  ;;  %v781_v17 = vunpack.c.l.bf16 %v732_v39 }
 0x12a   : > { %v733_v59 = vpack.c.bf16 %v717_v0, %v717_v0  ;;  %v1374_v7 = vunpack.c.l.bf16 %v1358_v42  ;;  %v1654_v47 = vsel %vm1638_vm4, %v1622_v3, %v3699_v12  ;;  %3199 = vrcp.f32 %v780_v22  ;;  %v3095_v12 = vld [vmem:[%s4832_s5 + $0x18] sm:$0xff] }
 0x12b   : > { %v2664_v60 = vmul.f32 %v2663_v45, %v3683_v6  ;;  %4893 = vst [vmem:[#allocation19_spill] sm:$0xff] %v3737_v63  ;;  %v640_v45 = vpack.c.bf16 %v624_v8, %v624_v8  ;;  %v593_v33 = vand.u32 2147450879, %v3737_v63  ;;  %v671_v8 = vmul.f32 0.328125, %v3739_v34  ;;  %1849 = vmatpush.bf16.msra.mxu1 %v3095_v12  ;;  %3104 = vmatpush.bf16.msrb.mxu3 %v3095_v12 }
 0x12c   : > { %v545_v56 = vunpack.c.l.bf16 %v524_v11  ;;  %v2685_v39 = vpack.c.bf16 %v2684_v26, %v2684_v26  ;;  %v734_v48 = vpack.c.bf16 %v718_v53, %v718_v53  ;;  %v1328_v61 = vunpack.c.l.bf16 %v1312_v55 }
 0x12d   : > { %v2665_v19 = vpack.c.bf16 %v2664_v60, %v2664_v60  ;;  %v1343_v60 = vsub.f32 0.0, %v1327_v44  ;;  %v3753_v35 = vunpack.c.l.bf16 %v640_v45  ;;  %v1701_v0 = vunpack.c.l.bf16 %v1653_v1 }
 0x12e   : > { %3201 = vrcp.f32 %v781_v17  ;;  %v787_v21 = vunpack.c.h.bf16 %v733_v59  ;;  %v687_v44 = vpack.c.bf16 %v671_v8, %v671_v8  ;;  %v1702_v22 = vunpack.c.l.bf16 %v1654_v47 }
 0x12f   : > { %v2666_v13 = vunpack.c.l.bf16 %v2665_v19  ;;  %v609_v19 = vunpack.c.l.bf16 %v593_v33  ;;  %v1359_v42 = vpack.c.bf16 %v1343_v60, %v1343_v60  ;;  %v788_v3 = vunpack.c.l.bf16 %v733_v59 }
 0x130   : > { %v672_v45 = vmul.f32 0.328125, %v3753_v35  ;;  %v562_v11 = vadd.f32 %v3461_v37, %v545_v56  ;;  %v2686_v53 = vunpack.c.l.bf16 %v2685_v39  ;;  %v794_v55 = vunpack.c.h.bf16 %v734_v48  ;;  %v3200_v17 = vpop.eup %3199  ;;  %v3094_v37 = vld [vmem:[%s4832_s5 + $0x10] sm:$0xff] }
 0x131   : > { %v2667_v54 = vadd.f32 1.421875, %v2666_v13  ;;  %v1395_v13 = vmul.f32 1.442695, %v1374_v7  ;;  %v1344_v1 = vsub.f32 0.0, %v1328_v61  ;;  %3203 = vrcp.f32 %v787_v21  ;;  %1850 = vmatpush.bf16.msra.mxu1 %v3094_v37  ;;  %3105 = vmatpush.bf16.msrb.mxu3 %v3094_v37 }
 0x132   : > { %v795_v33 = vunpack.c.l.bf16 %v734_v48  ;;  %v3761_v7 = vpack.c.bf16 %v562_v11, %v562_v11  ;;  %v1375_v59 = vunpack.c.l.bf16 %v1359_v42  ;;  %v703_v8 = vunpack.c.l.bf16 %v687_v44 }
 0x133   : > { %v2668_v31 = vpack.c.bf16 %v2667_v54, %v2667_v54  ;;  %v625_v54 = vmul.f32 0.70703125, %v609_v19  ;;  %3205 = vpow2.f32 %v1395_v13  ;;  %v3766_v47 = vadd.f32 1.0, %v1701_v0 }
 0x134   : > { %4894 = vst [vmem:[#allocation20_spill] sm:$0xff] %v3761_v7  ;;  %v3769_v56 = vmul.f32 1.0625, %v3733_v41  ;;  %3207 = vrcp.f32 %v788_v3  ;;  %v3771_v39 = vadd.f32 1.0, %v1702_v22  ;;  %v2687_v48 = vsub.f32 0.0, %v2686_v53  ;;  %v3093_v22 = vld [vmem:[%s4832_s5 + $0x8] sm:$0xff] }
 0x135   : > { %v2669_v25 = vunpack.c.l.bf16 %v2668_v31  ;;  %v688_v31 = vpack.c.bf16 %v672_v45, %v672_v45  ;;  %3209 = vrcp.f32 %v794_v55  ;;  %v1360_v61 = vpack.c.bf16 %v1344_v1, %v1344_v1  ;;  %1851 = vmatpush.bf16.msra.mxu1 %v3093_v22  ;;  %3106 = vmatpush.bf16.msrb.mxu3 %v3093_v22 }
 0x136   : > { %3211 = vrcp.f32 %v795_v33  ;;  %v641_v19 = vpack.c.bf16 %v625_v54, %v625_v54  ;;  %v594_v13 = vand.u32 2147450879, %v3761_v7  ;;  %v783_v0 = vmul.f32 %v3200_v17, %v3485_v23 }
 0x137   : > { %v2670_v26 = vmul.f32 %v2669_v25, %v3683_v6  ;;  %v3202_v25 = vpop.eup %3201  ;;  %v1397_v44 = vmul.f32 1.442695, %v1375_v59  ;;  %v719_v12 = vadd.f32 1.0, %v703_v8  ;;  %v4895_v11 = vpack.c.bf16 %v3726_v52, %v3726_v52 }
 0x138   : > { %v785_v42 = vmul.f32 %v3202_v25, %v3487_v27  ;;  %v3204_v3 = vpop.eup %3203  ;;  %v704_v55 = vunpack.c.l.bf16 %v688_v31  ;;  %v2688_v54 = vpack.c.bf16 %v2687_v48, %v2687_v48  ;;  %v3792_v52 = vunpack.c.l.bf16 %v641_v19  ;;  %v3092_v48 = vld [vmem:[%s4832_s5] sm:$0xff] }
 0x139   : > { %v2671_v60 = vpack.c.bf16 %v2670_v26, %v2670_v26  ;;  %v3784_v26 = vunpack.c.l.bf16 %v4895_v11  ;;  %v3206_v1 = vpop.eup %3205  ;;  %v610_v37 = vunpack.c.l.bf16 %v594_v13  ;;  %v4897_v25 = vpack.c.bf16 %v3568_v58, %v3568_v58  ;;  %1852 = vmatpush.bf16.msra.mxu1 %v3092_v48  ;;  %3107 = vmatpush.bf16.msrb.mxu3 %v3092_v48 }
 0x13a   : > { %v3208_v59 = vpop.eup %3207  ;;  %v786_v53 = vpack.c.bf16 %v783_v0, %v785_v42  ;;  %v790_v17 = vmul.f32 %v3204_v3, %v3485_v23  ;;  %3213 = vpow2.f32 %v1397_v44  ;;  %v735_v45 = vpack.c.bf16 %v719_v12, %v719_v12 }
 0x13b   : > { %v2672_v21 = vunpack.c.l.bf16 %v2671_v60  ;;  %4896 = vst [vmem:[#allocation21_spill] sm:$0xff] %v3784_v26  ;;  %v1376_v60 = vunpack.c.l.bf16 %v1360_v61  ;;  %v905_v31 = vunpack.c.l.bf16 %v4897_v25  ;;  %v3210_v11 = vpop.eup %3209  ;;  %v1422_v22 = vpack.c.bf16 %v3206_v1, %v3206_v1 }
 0x13c   : > { %v3212_v61 = vpop.eup %3211  ;;  %v626_v19 = vmul.f32 0.70703125, %v610_v37  ;;  %v4898_v13 = vpack.c.bf16 %v3576_v30, %v3576_v30  ;;  %v2689_v58 = vunpack.c.l.bf16 %v2688_v54  ;;  %v792_v25 = vmul.f32 %v3208_v59, %v3487_v27 }
 0x13d   : > { %v3068_v8 = vadd.f32 -0.28515625, %v2672_v21  ;;  %v720_v21 = vadd.f32 1.0, %v704_v55  ;;  %v1399_v0 = vmul.f32 1.442695, %v1376_v60  ;;  %v1297_v42 = vmul.f32 %v3739_v34, %v3739_v34 }
 0x13e   : > { %v906_v33 = vunpack.c.l.bf16 %v4898_v13  ;;  %v673_v12 = vmul.f32 0.328125, %v3792_v52  ;;  %v642_v3 = vpack.c.bf16 %v626_v19, %v626_v19  ;;  %v2986_v1 = vadd.f32 -1.453125, %v905_v31 }
 0x13f   : > { %v2674_v44 = vpack.c.bf16 %v3068_v8, %v3068_v8  ;;  %v3808_v55 = vunpack.c.l.bf16 %v786_v53  ;;  %v797_v37 = vmul.f32 %v3210_v11, %v3485_v23  ;;  %v799_v30 = vmul.f32 %v3212_v61, %v3487_v27 }
 0x140   : > { %v801_v54 = vunpack.c.h.bf16 %v735_v45  ;;  %v802_v13 = vunpack.c.l.bf16 %v735_v45  ;;  %v736_v59 = vpack.c.bf16 %v720_v21, %v720_v21  ;;  %v3812_v60 = vunpack.c.l.bf16 %v642_v3  ;;  %v3814_v34 = vpop.eup %3213 }
 0x141   : > { %v2987_v63 = vadd.f32 -1.453125, %v906_v33  ;;  %v2690_v48 = vmul.f32 1.442695, %v2689_v58  ;;  %v793_v8 = vpack.c.bf16 %v790_v17, %v792_v25  ;;  %3215 = vpow2.f32 %v1399_v0 }
 0x142   : > { %v1313_v7 = vpack.c.bf16 %v1297_v42, %v1297_v42  ;;  %v2675_v19 = vunpack.c.l.bf16 %v2674_v44  ;;  %v689_v31 = vpack.c.bf16 %v673_v12, %v673_v12  ;;  %v674_v53 = vmul.f32 0.328125, %v3812_v60 }
 0x143   : > { %v937_v49 = vpack.c.bf16 %v2986_v1, %v2986_v1  ;;  %v800_v11 = vpack.c.bf16 %v797_v37, %v799_v30  ;;  %3217 = vrcp.f32 %v801_v54  ;;  %v1298_v45 = vmul.f32 %v3753_v35, %v3753_v35 }
 0x144   : > { %v938_v61 = vpack.c.bf16 %v2987_v63, %v2987_v63  ;;  %3219 = vrcp.f32 %v802_v13  ;;  %v808_v21 = vunpack.c.h.bf16 %v736_v59  ;;  %v690_v33 = vpack.c.bf16 %v674_v53, %v674_v53 }
 0x145   : > { %v953_v3 = vunpack.c.l.bf16 %v937_v49  ;;  %v3819_v18 = vunpack.c.l.bf16 %v1422_v22  ;;  %v1329_v17 = vunpack.c.l.bf16 %v1313_v7  ;;  %v809_v58 = vunpack.c.l.bf16 %v736_v59 }
 0x146   : > { %v954_v25 = vunpack.c.l.bf16 %v938_v61  ;;  %v2676_v0 = vmul.f32 %v2675_v19, %v3683_v6  ;;  %v705_v42 = vunpack.c.l.bf16 %v689_v31  ;;  %v706_v44 = vunpack.c.l.bf16 %v690_v33 }
 0x147   : > { %4899 = vst [vmem:[#allocation22_spill] sm:$0xff] %v3819_v18  ;;  %v969_v12 = vmul.f32 %v953_v3, %v3552_v50  ;;  %v3216_v1 = vpop.eup %3215  ;;  %3221 = vpow2.f32 %v2690_v48  ;;  %v3823_v37 = vunpack.c.l.bf16 %v793_v8  ;;  %v3825_v63 = vunpack.c.l.bf16 %v800_v11 }
 0x148   : > { %v970_v35 = vmul.f32 %v954_v25, %v3563_v10  ;;  %3223 = vrcp.f32 %v808_v21  ;;  %v1314_v49 = vpack.c.bf16 %v1298_v45, %v1298_v45  ;;  %v722_v22 = vadd.f32 1.0, %v706_v44 }
 0x149   : > { %v985_v7 = vpack.c.bf16 %v969_v12, %v969_v12  ;;  %v3218_v30 = vpop.eup %3217  ;;  %v1423_v54 = vpack.c.bf16 %v3814_v34, %v3814_v34  ;;  %v1345_v13 = vsub.f32 0.0, %v1329_v17  ;;  %3225 = vrcp.f32 %v809_v58 }
 0x14a   : > { %v986_v59 = vpack.c.bf16 %v970_v35, %v970_v35  ;;  %v3220_v19 = vpop.eup %3219  ;;  %v2677_v31 = vpack.c.bf16 %v2676_v0, %v2676_v0  ;;  %v721_v48 = vadd.f32 1.0, %v705_v42  ;;  %v738_v8 = vpack.c.bf16 %v722_v22, %v722_v22 }
 0x14b   : > { %v1001_v53 = vunpack.c.l.bf16 %v985_v7  ;;  %v3831_v11 = vmul.f32 1.0625, %v3808_v55  ;;  %v3834_v61 = vmul.f32 1.0625, %v3823_v37  ;;  %v1424_v45 = vpack.c.bf16 %v3216_v1, %v3216_v1 }
 0x14c   : > { %v1002_v21 = vunpack.c.l.bf16 %v986_v59  ;;  %v3837_v33 = vmul.f32 1.0625, %v3825_v63  ;;  %v1330_v34 = vunpack.c.l.bf16 %v1314_v49  ;;  %v822_v3 = vunpack.c.h.bf16 %v738_v8 }
 0x14d   : > { %v823_v17 = vunpack.c.l.bf16 %v738_v8  ;;  %v3222_v58 = vpop.eup %3221  ;;  %v804_v25 = vmul.f32 %v3218_v30, %v3485_v23  ;;  %v806_v0 = vmul.f32 %v3220_v19, %v3487_v27  ;;  %v1017_v42 = vadd.f32 1.421875, %v1001_v53 }
 0x14e   : > { %v1018_v44 = vadd.f32 1.421875, %v1002_v21  ;;  %v3224_v12 = vpop.eup %3223  ;;  %v2678_v35 = vunpack.c.l.bf16 %v2677_v31  ;;  %v1361_v22 = vpack.c.bf16 %v1345_v13, %v1345_v13  ;;  %v737_v7 = vpack.c.bf16 %v721_v48, %v721_v48 }
 0x14f   : > { %3227 = vrcp.f32 %v822_v3  ;;  %v3226_v1 = vpop.eup %3225  ;;  %v3841_v59 = vunpack.c.l.bf16 %v1423_v54  ;;  %v1033_v18 = vpack.c.bf16 %v1017_v42, %v1017_v42  ;;  %v2692_v26 = vpack.c.bf16 %v3222_v58, %v3222_v58 }
 0x150   : > { %3229 = vrcp.f32 %v823_v17  ;;  %v1034_v49 = vpack.c.bf16 %v1018_v44, %v1018_v44  ;;  %v1346_v19 = vsub.f32 0.0, %v1330_v34  ;;  %v3847_v53 = vunpack.c.l.bf16 %v1424_v45 }
 0x151   : > { %v807_v31 = vpack.c.bf16 %v804_v25, %v806_v0  ;;  %v1049_v13 = vunpack.c.l.bf16 %v1033_v18  ;;  %v2679_v21 = vadd.f32 0.25390625, %v2678_v35  ;;  %v1377_v3 = vunpack.c.l.bf16 %v1361_v22 }
 0x152   : > { %4900 = vst [vmem:[#allocation23_spill] sm:$0xff] %v3847_v53  ;;  %v1050_v48 = vunpack.c.l.bf16 %v1034_v49  ;;  %v815_v17 = vunpack.c.h.bf16 %v737_v7  ;;  %v811_v58 = vmul.f32 %v3224_v12, %v3485_v23  ;;  %v813_v42 = vmul.f32 %v3226_v1, %v3487_v27 }
 0x153   : > { %v1065_v44 = vmul.f32 %v1049_v13, %v3552_v50  ;;  %v3855_v45 = vunpack.c.l.bf16 %v2692_v26  ;;  %v4865_v18 = vunpack.c.l.bf16 %v3611_v24  ;;  %v1362_v25 = vpack.c.bf16 %v1346_v19, %v1346_v19 }
 0x154   : > { %v1066_v30 = vmul.f32 %v1050_v48, %v3563_v10  ;;  %v816_v0 = vunpack.c.l.bf16 %v737_v7  ;;  %v3858_v49 = vunpack.c.l.bf16 %v807_v31  ;;  %v2680_v8 = vpack.c.bf16 %v2679_v21, %v2679_v21 }
 0x155   : > { %v3228_v34 = vpop.eup %3227  ;;  %v1081_v54 = vpack.c.bf16 %v1065_v44, %v1065_v44  ;;  %3231 = vrcp.f32 %v815_v17  ;;  %v3863_v1 = vmul.f32 %v3792_v52, %v3792_v52  ;;  %v2707_v13 = vmul.f32 0.5, %v4865_v18 }
 0x156   : > { %v3230_v35 = vpop.eup %3229  ;;  %v825_v22 = vmul.f32 %v3228_v34, %v3485_v23  ;;  %v1082_v12 = vpack.c.bf16 %v1066_v30, %v1066_v30  ;;  %v814_v19 = vpack.c.bf16 %v811_v58, %v813_v42  ;;  %v1378_v31 = vunpack.c.l.bf16 %v1362_v25 }
 0x157   : > { %4901 = vst [vmem:[#allocation24_spill] sm:$0xff] %v3863_v1  ;;  %v827_v26 = vmul.f32 %v3230_v35, %v3487_v27  ;;  %v1097_v7 = vunpack.c.l.bf16 %v1081_v54  ;;  %3233 = vrcp.f32 %v816_v0  ;;  %v4902_v30 = vpack.c.bf16 %v3620_v2, %v3620_v2 }
 0x158   : > { %v1098_v48 = vunpack.c.l.bf16 %v1082_v12  ;;  %v3872_v17 = vmul.f32 1.0625, %v3858_v49  ;;  %v1300_v52 = vmul.f32 %v3812_v60, %v3812_v60  ;;  %v2681_v35 = vunpack.c.l.bf16 %v2680_v8 }
 0x159   : > { %v828_v53 = vpack.c.bf16 %v825_v22, %v827_v26  ;;  %v907_v21 = vunpack.c.l.bf16 %v4902_v30  ;;  %v3002_v44 = vadd.f32 -0.28515625, %v1097_v7  ;;  %v3876_v18 = vmul.f32 1.442695, %v1377_v3 }
 0x15a   : > { %v3003_v34 = vadd.f32 -0.28515625, %v1098_v48  ;;  %v2708_v42 = vpack.c.bf16 %v2707_v13, %v2707_v13  ;;  %v3880_v25 = vunpack.c.l.bf16 %v814_v19  ;;  %v3882_v12 = vmul.f32 1.442695, %v1378_v31 }
 0x15b   : > { %4903 = vst [vmem:[#allocation25_spill] sm:$0xff] %v3876_v18  ;;  %v3878_v54 = vunpack.c.l.bf16 %v828_v53  ;;  %v2988_v58 = vadd.f32 -1.453125, %v907_v21  ;;  %v1129_v0 = vpack.c.bf16 %v3002_v44, %v3002_v44  ;;  %v3232_v22 = vpop.eup %3231  ;;  %v1316_v53 = vpack.c.bf16 %v1300_v52, %v1300_v52 }
 0x15c   : > { %v1130_v2 = vpack.c.bf16 %v3003_v34, %v3003_v34  ;;  %4904 = vst [vmem:[#allocation26_spill] sm:$0xff] %v3882_v12  ;;  %v2682_v19 = vmul.f32 %v2681_v35, %v3683_v6  ;;  %v4905_v31 = vpack.c.bf16 %v3653_v14, %v3653_v14  ;;  %v3893_v34 = vunpack.c.l.bf16 %v2708_v42 }
 0x15d   : > { %v884_v60 = vmul.f32 1.0625, %v3878_v54  ;;  %v939_v7 = vpack.c.bf16 %v2988_v58, %v2988_v58  ;;  %v1145_v3 = vunpack.c.l.bf16 %v1129_v0  ;;  %v3234_v13 = vpop.eup %3233  ;;  %v3896_v26 = vmul.f32 1.0625, %v3880_v25 }
 0x15e   : > { %v1146_v48 = vunpack.c.l.bf16 %v1130_v2  ;;  %v919_v44 = vunpack.c.l.bf16 %v4905_v31  ;;  %v818_v0 = vmul.f32 %v3232_v22, %v3485_v23  ;;  %v4906_v6 = vpack.c.bf16 %v3679_v16, %v3679_v16 }
 0x15f   : > { %v900_v30 = vpack.c.bf16 %v884_v60, %v884_v60  ;;  %v955_v21 = vunpack.c.l.bf16 %v939_v7  ;;  %v1161_v58 = vmul.f32 %v1145_v3, %v3552_v50  ;;  %v820_v14 = vmul.f32 %v3234_v13, %v3487_v27 }
 0x160   : > { %v1162_v52 = vmul.f32 %v1146_v48, %v3563_v10  ;;  %v908_v35 = vunpack.c.l.bf16 %v4906_v6  ;;  %v3000_v31 = vadd.f32 -1.453125, %v919_v44  ;;  %v2683_v8 = vpack.c.bf16 %v2682_v19, %v2682_v19 }
 0x161   : > { %v916_v2 = vunpack.c.l.bf16 %v900_v30  ;;  %v971_v60 = vmul.f32 %v955_v21, %v3614_v32  ;;  %v1177_v42 = vpack.c.bf16 %v1161_v58, %v1161_v58  ;;  %v1332_v1 = vunpack.c.l.bf16 %v1316_v53 }
 0x162   : > { %v1178_v7 = vpack.c.bf16 %v1162_v52, %v1162_v52  ;;  %v2989_v12 = vadd.f32 -1.453125, %v908_v35  ;;  %v951_v30 = vpack.c.bf16 %v3000_v31, %v3000_v31  ;;  %v4907_v16 = vpack.c.bf16 %v3510_v15, %v3510_v15 }
 0x163   : > { %v987_v3 = vpack.c.bf16 %v971_v60, %v971_v60  ;;  %v1193_v23 = vunpack.c.l.bf16 %v1177_v42  ;;  %v2997_v18 = vadd.f32 -1.453125, %v916_v2  ;;  %v821_v58 = vpack.c.bf16 %v818_v0, %v820_v14 }
 0x164   : > { %v1194_v22 = vunpack.c.l.bf16 %v1178_v7  ;;  %v3911_v21 = vunpack.c.l.bf16 %v4907_v16  ;;  %v940_v27 = vpack.c.bf16 %v2989_v12, %v2989_v12  ;;  %v967_v53 = vunpack.c.l.bf16 %v951_v30 }
 0x165   : > { %v1003_v13 = vunpack.c.l.bf16 %v987_v3  ;;  %v1209_v44 = vadd.f32 0.25390625, %v1193_v23  ;;  %v2693_v52 = vunpack.c.l.bf16 %v2683_v8  ;;  %v1348_v6 = vsub.f32 0.0, %v1332_v1 }
 0x166   : > { %v1210_v19 = vadd.f32 0.25390625, %v1194_v22  ;;  %v956_v35 = vunpack.c.l.bf16 %v940_v27  ;;  %v4908_v2 = vpack.c.bf16 %v3702_v40, %v3702_v40  ;;  %v983_v15 = vmul.f32 %v967_v53, %v3643_v46 }
 0x167   : > { %v1019_v60 = vadd.f32 1.421875, %v1003_v13  ;;  %v1225_v48 = vpack.c.bf16 %v1209_v44, %v1209_v44  ;;  %v948_v31 = vpack.c.bf16 %v2997_v18, %v2997_v18  ;;  %v4909_v12 = vpack.c.bf16 %v3524_v36, %v3524_v36 }
 0x168   : > { %v1226_v42 = vpack.c.bf16 %v1210_v19, %v1210_v19  ;;  %v920_v7 = vunpack.c.l.bf16 %v4908_v2  ;;  %v972_v14 = vmul.f32 %v956_v35, %v3671_v28  ;;  %v999_v22 = vpack.c.bf16 %v983_v15, %v983_v15 }
 0x169   : > { %v3920_v0 = vunpack.c.l.bf16 %v4909_v12  ;;  %v1035_v8 = vpack.c.bf16 %v1019_v60, %v1019_v60  ;;  %v1241_v1 = vunpack.c.l.bf16 %v1225_v48  ;;  %v2695_v30 = vmul.f32 %v3855_v45, %v2693_v52 }
 0x16a   : > { %v1242_v3 = vunpack.c.l.bf16 %v1226_v42  ;;  %v3001_v23 = vadd.f32 -1.453125, %v920_v7  ;;  %v3924_v16 = vunpack.c.l.bf16 %v821_v58  ;;  %v988_v40 = vpack.c.bf16 %v972_v14, %v972_v14 }
 0x16b   : > { %v1051_v27 = vunpack.c.l.bf16 %v1035_v8  ;;  %v1257_v18 = vmul.f32 %v1241_v1, %v3552_v50  ;;  %v1015_v44 = vunpack.c.l.bf16 %v999_v22  ;;  %v964_v19 = vunpack.c.l.bf16 %v948_v31 }
 0x16c   : > { %v1258_v13 = vmul.f32 %v1242_v3, %v3563_v10  ;;  %v952_v36 = vpack.c.bf16 %v3001_v23, %v3001_v23  ;;  %v3928_v53 = vpack.c.bf16 %v1348_v6, %v1348_v6  ;;  %v1004_v35 = vunpack.c.l.bf16 %v988_v40 }
 0x16d   : > { %v1067_v48 = vmul.f32 %v1051_v27, %v3614_v32  ;;  %v1273_v60 = vpack.c.bf16 %v1257_v18, %v1257_v18  ;;  %v1031_v45 = vadd.f32 1.421875, %v1015_v44  ;;  %v2696_v58 = vpack.c.bf16 %v2695_v30, %v2695_v30 }
 0x16e   : > { %v1274_v42 = vpack.c.bf16 %v1258_v13, %v1258_v13  ;;  %v968_v2 = vunpack.c.l.bf16 %v952_v36  ;;  %v1020_v52 = vadd.f32 1.421875, %v1004_v35  ;;  %v4910_v50 = vpack.c.bf16 %v3559_v4, %v3559_v4 }
 0x16f   : > { %v1083_v7 = vpack.c.bf16 %v1067_v48, %v1067_v48  ;;  %v1433_v10 = vunpack.c.l.bf16 %v1273_v60  ;;  %v1047_v31 = vpack.c.bf16 %v1031_v45, %v1031_v45  ;;  %v3938_v14 = vmul.f32 1.0625, %v3924_v16 }
 0x170   : > { %v3934_v15 = vunpack.c.l.bf16 %v4910_v50  ;;  %v1434_v12 = vunpack.c.l.bf16 %v1274_v42  ;;  %v984_v6 = vmul.f32 %v968_v2, %v3688_v43  ;;  %v980_v8 = vmul.f32 %v964_v19, %v3878_v54 }
 0x171   : > { %v1036_v1 = vpack.c.bf16 %v1020_v52, %v1020_v52  ;;  %v1099_v3 = vunpack.c.l.bf16 %v1083_v7  ;;  %v1465_v23 = vmul.f32 %v3561_v9, %v1433_v10  ;;  %v1063_v4 = vunpack.c.l.bf16 %v1047_v31 }
 0x172   : > { %v1466_v22 = vmul.f32 %v3592_v5, %v1434_v12  ;;  %v1000_v30 = vpack.c.bf16 %v984_v6, %v984_v6  ;;  %v2697_v40 = vunpack.c.l.bf16 %v2696_v58  ;;  %v4911_v13 = vpack.c.bf16 %v3769_v56, %v3769_v56 }
 0x173   : > { %v1052_v27 = vunpack.c.l.bf16 %v1036_v1  ;;  %v3004_v18 = vadd.f32 -0.28515625, %v1099_v3  ;;  %v1481_v44 = vpack.c.bf16 %v1465_v23, %v1465_v23  ;;  %v1079_v19 = vmul.f32 %v1063_v4, %v3643_v46 }
 0x174   : > { %v909_v36 = vunpack.c.l.bf16 %v4911_v13  ;;  %v1482_v35 = vpack.c.bf16 %v1466_v22, %v1466_v22  ;;  %v1016_v48 = vunpack.c.l.bf16 %v1000_v30  ;;  %v4912_v60 = vunpack.c.l.bf16 %v3472_v57 }
 0x175   : > { %v996_v5 = vpack.c.bf16 %v980_v8, %v980_v8  ;;  %v1068_v42 = vmul.f32 %v1052_v27, %v3671_v28  ;;  %v1131_v2 = vpack.c.bf16 %v3004_v18, %v3004_v18  ;;  %v4915_v45 = vpack.c.bf16 %v3831_v11, %v3831_v11 }
 0x176   : > { %vm3949_vm5 = vcmp.lt.f32.partialorder %v4912_v60, 0.0  ;;  %v4916_v58 = vunpack.c.l.bf16 %v3478_v62  ;;  %v1497_v7 = vunpack.c.l.bf16 %v1481_v44  ;;  %v1498_v57 = vunpack.c.l.bf16 %v1482_v35 }
 0x177   : > { %v910_v56 = vunpack.c.l.bf16 %v4915_v45  ;;  %v1032_v50 = vadd.f32 1.421875, %v1016_v48  ;;  %v1095_v10 = vpack.c.bf16 %v1079_v19, %v1079_v19  ;;  %v2698_v12 = vsub.f32 1.0, %v2697_v40  ;;  %vm1625_vm7 = vmpackc.low %vm3949_vm5, %vm3949_vm5 }
 0x178   : > { %vm3959_vm6 = vcmp.lt.f32.partialorder %v4916_v58, 0.0  ;;  %v1084_v6 = vpack.c.bf16 %v1068_v42, %v1068_v42  ;;  %v1147_v31 = vunpack.c.l.bf16 %v1131_v2  ;;  %v2990_v8 = vadd.f32 -1.453125, %v909_v36 }
 0x179   : > { %v1513_v1 = vsub.f32 1.0, %v1497_v7  ;;  %v1514_v3 = vsub.f32 1.0, %v1498_v57  ;;  %v1048_v23 = vpack.c.bf16 %v1032_v50, %v1032_v50  ;;  %v1111_v22 = vunpack.c.l.bf16 %v1095_v10  ;;  %vm1626_vm8 = vmpackc.low %vm3959_vm6, %vm3959_vm6 }
 0x17a   : > { %v1012_v11 = vunpack.c.l.bf16 %v996_v5  ;;  %v1100_v30 = vunpack.c.l.bf16 %v1084_v6  ;;  %v1163_v62 = vmul.f32 %v1147_v31, %v3614_v32  ;;  %v2991_v4 = vadd.f32 -1.453125, %v910_v56 }
 0x17b   : > { %v1529_v27 = vpack.c.bf16 %v1513_v1, %v1513_v1  ;;  %v1530_v18 = vpack.c.bf16 %v1514_v3, %v1514_v3  ;;  %v1064_v13 = vunpack.c.l.bf16 %v1048_v23  ;;  %v3016_v44 = vadd.f32 -0.28515625, %v1111_v22 }
 0x17c   : > { %v3964_v35 = vpack.c.bf16 %v2698_v12, %v2698_v12  ;;  %v3005_v48 = vadd.f32 -0.28515625, %v1100_v30  ;;  %v1179_v40 = vpack.c.bf16 %v1163_v62, %v1163_v62  ;;  %v941_v19 = vpack.c.bf16 %v2990_v8, %v2990_v8 }
 0x17d   : > { %v1577_v60 = vunpack.c.l.bf16 %v1529_v27  ;;  %v1578_v36 = vunpack.c.l.bf16 %v1530_v18  ;;  %v1080_v42 = vmul.f32 %v1064_v13, %v3688_v43  ;;  %v1143_v2 = vpack.c.bf16 %v3016_v44, %v3016_v44 }
 0x17e   : > { %v1028_v45 = vadd.f32 1.421875, %v1012_v11  ;;  %v1132_v5 = vpack.c.bf16 %v3005_v48, %v3005_v48  ;;  %v1195_v58 = vunpack.c.l.bf16 %v1179_v40  ;;  %v942_v7 = vpack.c.bf16 %v2991_v4, %v2991_v4 }
 0x17f   : > { %v1593_v57 = vsub.f32 0.0, %v1577_v60  ;;  %v1594_v56 = vsub.f32 0.0, %v1578_v36  ;;  %v1096_v50 = vpack.c.bf16 %v1080_v42, %v1080_v42  ;;  %v1159_v10 = vunpack.c.l.bf16 %v1143_v2 }
 0x180   : > { %v1148_v6 = vunpack.c.l.bf16 %v1132_v5  ;;  %v1211_v31 = vadd.f32 0.25390625, %v1195_v58  ;;  %v4919_v12 = vpack.c.bf16 %v3609_v20, %v3609_v20  ;;  %v957_v8 = vunpack.c.l.bf16 %v941_v19 }
 0x181   : > { %v1609_v3 = vpack.c.bf16 %v1593_v57, %v1593_v57  ;;  %v1610_v23 = vpack.c.bf16 %v1594_v56, %v1594_v56  ;;  %v1112_v22 = vunpack.c.l.bf16 %v1096_v50  ;;  %v1175_v11 = vmul.f32 %v1159_v10, %v3643_v46 }
 0x182   : > { %v3970_v1 = vunpack.c.l.bf16 %v4919_v12  ;;  %v2702_v30 = vunpack.c.l.bf16 %v3964_v35  ;;  %v1164_v20 = vmul.f32 %v1148_v6, %v3671_v28  ;;  %v1227_v62 = vpack.c.bf16 %v1211_v31, %v1211_v31 }
 0x183   : > { %v958_v4 = vunpack.c.l.bf16 %v942_v7  ;;  %v1044_v13 = vpack.c.bf16 %v1028_v45, %v1028_v45  ;;  %v1641_v44 = vsel %vm1625_vm7, %v1609_v3, %v1529_v27  ;;  %v1642_v9 = vsel %vm1626_vm8, %v1610_v23, %v1530_v18 }
 0x184   : > { %v3017_v48 = vadd.f32 -0.28515625, %v1112_v22  ;;  %v1689_v40 = vunpack.c.l.bf16 %v1641_v44  ;;  %v1690_v19 = vunpack.c.l.bf16 %v1642_v9  ;;  %v1191_v60 = vpack.c.bf16 %v1175_v11, %v1175_v11 }
 0x185   : > { %v973_v36 = vmul.f32 %v957_v8, %v3733_v41  ;;  %v4920_v52 = vpack.c.bf16 %v3766_v47, %v3766_v47  ;;  %v4921_v2 = vpack.c.bf16 %v3771_v39, %v3771_v39  ;;  %v1180_v58 = vpack.c.bf16 %v1164_v20, %v1164_v20 }
 0x186   : > { %v1243_v57 = vunpack.c.l.bf16 %v1227_v62  ;;  %v1705_v7 = vadd.f32 1.0, %v1689_v40  ;;  %v1706_v45 = vadd.f32 1.0, %v1690_v19  ;;  %v1144_v27 = vpack.c.bf16 %v3017_v48, %v3017_v48 }
 0x187   : > { %v1765_v42 = vunpack.c.l.bf16 %v4920_v52  ;;  %v1766_v5 = vunpack.c.l.bf16 %v4921_v2  ;;  %v974_v18 = vmul.f32 %v958_v4, %v3808_v55  ;;  %v1196_v10 = vunpack.c.l.bf16 %v1180_v58 }
 0x188   : > { %v1259_v6 = vmul.f32 %v1243_v57, %v3614_v32  ;;  %v4922_v47 = vunpack.c.l.bf16 %v3611_v24  ;;  %v1721_v39 = vpack.c.bf16 %v1705_v7, %v1705_v7  ;;  %v1722_v12 = vpack.c.bf16 %v1706_v45, %v1706_v45 }
 0x189   : > { %v1781_v56 = vmul.f32 %v1765_v42, %v3549_v38  ;;  %v1782_v50 = vmul.f32 %v1766_v5, %v3554_v51  ;;  %v1160_v8 = vunpack.c.l.bf16 %v1144_v27  ;;  %v989_v3 = vpack.c.bf16 %v973_v36, %v973_v36 }
 0x18a   : > { %vm3994_vm9 = vcmp.lt.f32.partialorder %v4922_v47, 0.0  ;;  %v1212_v22 = vadd.f32 0.25390625, %v1196_v10  ;;  %v1275_v11 = vpack.c.bf16 %v1259_v6, %v1259_v6  ;;  %v1207_v20 = vunpack.c.l.bf16 %v1191_v60  ;;  %v3099_v10 = vld [vmem:[%s4832_s5 + $0x28] sm:$0xff] }
 0x18b   : > { %v1791_v23 = vpack.c.bf16 %v1782_v50, %v1781_v56  ;;  %v1753_v38 = vunpack.c.l.bf16 %v1721_v39  ;;  %v1754_v62 = vunpack.c.l.bf16 %v1722_v12  ;;  %v1176_v51 = vmul.f32 %v1160_v8, %v3688_v43  ;;  %v4926_v50 = vld [vmem:[#allocation2_spill] sm:$0xff]  ;;  %vm2705_vm12 = vmpackc.low %vm3994_vm9, %vm3994_vm9 }
 0x18c   : > { %v1228_v24 = vpack.c.bf16 %v1212_v22, %v1212_v22  ;;  %v1435_v32 = vunpack.c.l.bf16 %v1275_v11  ;;  %v1223_v4 = vadd.f32 0.25390625, %v1207_v20  ;;  %v990_v44 = vpack.c.bf16 %v974_v18, %v974_v18 }
 0x18d   : > { %3040 = vmatmul.msk.bf16.vlgmr.msrb.gmra.mxu3 %vm1820_vm10, %v1791_v23  ;;  %v1060_v9 = vunpack.c.l.bf16 %v1044_v13  ;;  %v1769_v48 = vmul.f32 %v1753_v38, %v3911_v21  ;;  %v1770_v40 = vmul.f32 %v1754_v62, %v3920_v0  ;;  %v1192_v19 = vpack.c.bf16 %v1176_v51, %v1176_v51 }
 0x18e   : > { %v1244_v36 = vunpack.c.l.bf16 %v1228_v24  ;;  %v1467_v60 = vmul.f32 %v3622_v29, %v1435_v32  ;;  %v1239_v52 = vpack.c.bf16 %v1223_v4, %v1223_v4  ;;  %v1005_v42 = vunpack.c.l.bf16 %v989_v3  ;;  %v4931_v32 = vld [vmem:[#allocation15_spill] sm:$0xff] }
 0x18f   : > { %v2703_v2 = vsub.f32 0.0, %v2702_v30  ;;  %v1785_v5 = vpack.c.bf16 %v1770_v40, %v1769_v48  ;;  %v1208_v58 = vunpack.c.l.bf16 %v1192_v19  ;;  %v1006_v57 = vunpack.c.l.bf16 %v990_v44 }
 0x190   : > { %v1260_v7 = vmul.f32 %v1244_v36, %v3671_v28  ;;  %v1483_v45 = vpack.c.bf16 %v1467_v60, %v1467_v60  ;;  %v1255_v27 = vunpack.c.l.bf16 %v1239_v52  ;;  %v1021_v18 = vadd.f32 1.421875, %v1005_v42  ;;  %v4932_v52 = vld [vmem:[#allocation12_spill] sm:$0xff] }
 0x191   : > { %v1076_v13 = vmul.f32 %v1060_v9, %v3878_v54  ;;  %3034 = vmatmul.msk.bf16.vlgmr.msra.gmra.mxu1 %vm1820_vm10, %v1785_v5  ;;  %v1224_v21 = vadd.f32 0.25390625, %v1208_v58  ;;  %v1022_v0 = vadd.f32 1.421875, %v1006_v57  ;;  %v4925_v29 = vpack.c.bf16 %v3834_v61, %v3834_v61 }
 0x192   : > { %v4927_v30 = vunpack.c.l.bf16 %v4926_v50  ;;  %v1276_v28 = vpack.c.bf16 %v1260_v7, %v1260_v7  ;;  %v1499_v6 = vunpack.c.l.bf16 %v1483_v45  ;;  %v1271_v47 = vmul.f32 %v1255_v27, %v3643_v46  ;;  %v4933_v45 = vld [vmem:[#allocation4_spill] sm:$0xff] }
 0x193   : > { %v911_v56 = vunpack.c.l.bf16 %v4925_v29  ;;  %v1037_v39 = vpack.c.bf16 %v1021_v18, %v1021_v18  ;;  %v2704_v12 = vpack.c.bf16 %v2703_v2, %v2703_v2  ;;  %v1240_v8 = vpack.c.bf16 %v1224_v21, %v1224_v21  ;;  %v3101_v21 = vld [vmem:[%s4832_s5 + $0x38] sm:$0xff] }
 0x194   : > { %vm4011_vm11 = vcmp.lt.f32.partialorder %v4927_v30, 0.0  ;;  %v1038_v3 = vpack.c.bf16 %v1022_v0, %v1022_v0  ;;  %v4930_v23 = vpack.c.bf16 %v3837_v33, %v3837_v33  ;;  %v1436_v61 = vunpack.c.l.bf16 %v1276_v28  ;;  %2750 = vmatpush.bf16.msra.mxu3 %v3101_v21  ;;  %v4948_v21 = vld [vmem:[#allocation11_spill] sm:$0xff] }
 0x195   : > { %v1515_v11 = vsub.f32 1.0, %v1499_v6  ;;  %v1287_v20 = vpack.c.bf16 %v1271_v47, %v1271_v47  ;;  %v1053_v38 = vunpack.c.l.bf16 %v1037_v39  ;;  %v1092_v62 = vpack.c.bf16 %v1076_v13, %v1076_v13  ;;  %v4939_v47 = vld [vmem:[#allocation3_spill] sm:$0xff]  ;;  %vm1627_vm15 = vmpackc.low %vm4011_vm11, %vm4011_vm11 }
 0x196   : > { %v912_v22 = vunpack.c.l.bf16 %v4930_v23  ;;  %v1256_v51 = vunpack.c.l.bf16 %v1240_v8  ;;  %v1054_v24 = vunpack.c.l.bf16 %v1038_v3  ;;  %v2992_v46 = vadd.f32 -1.453125, %v911_v56  ;;  %v4937_v56 = vld [vmem:[#allocation7_spill] sm:$0xff] }
 0x197   : > { %v1468_v4 = vmul.f32 %v4931_v32, %v1436_v61  ;;  %v1531_v44 = vpack.c.bf16 %v1515_v11, %v1515_v11  ;;  %v1447_v9 = vunpack.c.l.bf16 %v1287_v20  ;;  %v1069_v48 = vmul.f32 %v1053_v38, %v3733_v41  ;;  %v4943_v20 = vld [vmem:[#allocation16_spill] sm:$0xff] }
 0x198   : > { %v4025_v33 = vsel %vm2705_vm12, %v2704_v12, %v3964_v35  ;;  %v1272_v31 = vmul.f32 %v1256_v51, %v3688_v43  ;;  %v1070_v40 = vmul.f32 %v1054_v24, %v3808_v55  ;;  %v2993_v19 = vadd.f32 -1.453125, %v912_v22  ;;  %v3100_v22 = vld [vmem:[%s4832_s5 + $0x30] sm:$0xff] }
 0x199   : > { %v1484_v36 = vpack.c.bf16 %v1468_v4, %v1468_v4  ;;  %v1579_v60 = vunpack.c.l.bf16 %v1531_v44  ;;  %v1479_v42 = vmul.f32 %v4932_v52, %v1447_v9  ;;  %v1085_v2 = vpack.c.bf16 %v1069_v48, %v1069_v48  ;;  %2751 = vmatpush.bf16.msra.mxu3 %v3100_v22 }
 0x19a   : > { %v1108_v5 = vunpack.c.l.bf16 %v1092_v62  ;;  %v1288_v58 = vpack.c.bf16 %v1272_v31, %v1272_v31  ;;  %v1086_v57 = vpack.c.bf16 %v1070_v40, %v1070_v40  ;;  %v943_v7 = vpack.c.bf16 %v2992_v46, %v2992_v46 }
 0x19b   : > { %v4934_v27 = vunpack.c.l.bf16 %v4933_v45  ;;  %v1500_v35 = vunpack.c.l.bf16 %v1484_v36  ;;  %v1595_v43 = vsub.f32 0.0, %v1579_v60  ;;  %v1495_v13 = vpack.c.bf16 %v1479_v42, %v1479_v42  ;;  %v4944_v42 = vld [vmem:[#allocation5_spill] sm:$0xff] }
 0x19c   : > { %v1101_v0 = vunpack.c.l.bf16 %v1085_v2  ;;  %v1448_v29 = vunpack.c.l.bf16 %v1288_v58  ;;  %v4938_v50 = vpack.c.bf16 %v4937_v56, %v4937_v56  ;;  %v1102_v28 = vunpack.c.l.bf16 %v1086_v57 }
 0x19d   : > { %vm4032_vm13 = vcmp.lt.f32.partialorder %v4934_v27, 0.0  ;;  %v944_v6 = vpack.c.bf16 %v2993_v19, %v2993_v19  ;;  %v4940_v39 = vunpack.c.l.bf16 %v4939_v47  ;;  %v1516_v8 = vsub.f32 1.0, %v1500_v35  ;;  %2752 = vmatpush.bf16.msra.mxu3 %v3099_v10 }
 0x19e   : > { %v4042_v30 = vunpack.c.l.bf16 %v4938_v50  ;;  %v1611_v3 = vpack.c.bf16 %v1595_v43, %v1595_v43  ;;  %v1511_v23 = vunpack.c.l.bf16 %v1495_v13  ;;  %v3006_v61 = vadd.f32 -0.28515625, %v1101_v0  ;;  %vm1628_vm2 = vmpackc.low %vm4032_vm13, %vm4032_vm13 }
 0x19f   : > { %vm4046_vm14 = vcmp.lt.f32.partialorder %v4940_v39, 0.0  ;;  %v3013_v11 = vadd.f32 -0.28515625, %v1108_v5  ;;  %v1480_v38 = vmul.f32 %v4943_v20, %v1448_v29  ;;  %v3007_v62 = vadd.f32 -0.28515625, %v1102_v28 }
 0x1a0   : > { %v959_v51 = vunpack.c.l.bf16 %v943_v7  ;;  %v1532_v24 = vpack.c.bf16 %v1516_v8, %v1516_v8  ;;  %v1643_v46 = vsel %vm1627_vm15, %v1611_v3, %v1531_v44  ;;  %v1527_v32 = vsub.f32 1.0, %v1511_v23  ;;  %vm1639_vm3 = vmpackc.low %vm4046_vm14, %vm4046_vm14 }
 0x1a1   : > { %v1133_v4 = vpack.c.bf16 %v3006_v61, %v3006_v61  ;;  %v2709_v9 = vunpack.c.l.bf16 %v4025_v33  ;;  %v1691_v48 = vunpack.c.l.bf16 %v1643_v46  ;;  %v1496_v31 = vpack.c.bf16 %v1480_v38, %v1480_v38 }
 0x1a2   : > { %v1134_v40 = vpack.c.bf16 %v3007_v62, %v3007_v62  ;;  %v1580_v19 = vunpack.c.l.bf16 %v1532_v24  ;;  %v1543_v36 = vpack.c.bf16 %v1527_v32, %v1527_v32  ;;  %v960_v52 = vunpack.c.l.bf16 %v944_v6 }
 0x1a3   : > { %v1149_v60 = vunpack.c.l.bf16 %v1133_v4  ;;  %v4945_v2 = vunpack.c.l.bf16 %v4944_v42  ;;  %v1140_v5 = vpack.c.bf16 %v3013_v11, %v3013_v11  ;;  %v1707_v33 = vadd.f32 1.0, %v1691_v48 }
 0x1a4   : > { %v1512_v58 = vunpack.c.l.bf16 %v1496_v31  ;;  %v1150_v57 = vunpack.c.l.bf16 %v1134_v40  ;;  %v1596_v7 = vsub.f32 0.0, %v1580_v19  ;;  %v1591_v45 = vunpack.c.l.bf16 %v1543_v36 }
 0x1a5   : > { %vm4063_vm1 = vcmp.lt.f32.partialorder %v4945_v2, 0.0  ;;  %v1165_v27 = vmul.f32 %v1149_v60, %v3733_v41  ;;  %v975_v35 = vmul.f32 %v959_v51, %v3823_v37  ;;  %v1723_v43 = vpack.c.bf16 %v1707_v33, %v1707_v33 }
 0x1a6   : > { %v1528_v13 = vsub.f32 1.0, %v1512_v58  ;;  %v4949_v0 = vpack.c.bf16 %v4948_v21, %v4948_v21  ;;  %v1166_v56 = vmul.f32 %v1150_v57, %v3808_v55  ;;  %v1612_v50 = vpack.c.bf16 %v1596_v7, %v1596_v7  ;;  %vm1640_vm4 = vmpackc.low %vm4063_vm1, %vm4063_vm1 }
 0x1a7   : > { %v1607_v28 = vsub.f32 0.0, %v1591_v45  ;;  %v1181_v6 = vpack.c.bf16 %v1165_v27, %v1165_v27  ;;  %v976_v47 = vmul.f32 %v960_v52, %v3825_v63  ;;  %v4079_v39 = vadd.f32 1.0, %v2709_v9 }
 0x1a8   : > { %v4072_v29 = vunpack.c.l.bf16 %v4949_v0  ;;  %v1156_v8 = vunpack.c.l.bf16 %v1140_v5  ;;  %v1544_v3 = vpack.c.bf16 %v1528_v13, %v1528_v13  ;;  %v1182_v23 = vpack.c.bf16 %v1166_v56, %v1166_v56 }
 0x1a9   : > { %v1644_v22 = vsel %vm1628_vm2, %v1612_v50, %v1532_v24  ;;  %v1623_v61 = vpack.c.bf16 %v1607_v28, %v1607_v28  ;;  %v1197_v11 = vunpack.c.l.bf16 %v1181_v6  ;;  %v991_v20 = vpack.c.bf16 %v975_v35, %v975_v35 }
 0x1aa   : > { %v1692_v38 = vunpack.c.l.bf16 %v1644_v22  ;;  %v1755_v62 = vunpack.c.l.bf16 %v1723_v43  ;;  %v1592_v51 = vunpack.c.l.bf16 %v1544_v3  ;;  %v1198_v46 = vunpack.c.l.bf16 %v1182_v23 }
 0x1ab   : > { %v1655_v18 = vsel %vm1639_vm3, %v1623_v61, %v1543_v36  ;;  %v1213_v32 = vadd.f32 0.25390625, %v1197_v11  ;;  %v992_v4 = vpack.c.bf16 %v976_v47, %v976_v47  ;;  %v1007_v9 = vunpack.c.l.bf16 %v991_v20 }
 0x1ac   : > { %v1708_v48 = vadd.f32 1.0, %v1692_v38  ;;  %v1608_v31 = vsub.f32 0.0, %v1592_v51  ;;  %v1703_v40 = vunpack.c.l.bf16 %v1655_v18  ;;  %v1214_v19 = vadd.f32 0.25390625, %v1198_v46 }
 0x1ad   : > { %v1229_v24 = vpack.c.bf16 %v1213_v32, %v1213_v32  ;;  %v1008_v10 = vunpack.c.l.bf16 %v992_v4  ;;  %v1023_v60 = vadd.f32 1.421875, %v1007_v9  ;;  %v4950_v12 = vpack.c.bf16 %v3872_v17, %v3872_v17  ;;  %v4952_v4 = vld [vmem:[#allocation21_spill] sm:$0xff] }
 0x1ae   : > { %v1724_v42 = vpack.c.bf16 %v1708_v48, %v1708_v48  ;;  %v1624_v2 = vpack.c.bf16 %v1608_v31, %v1608_v31  ;;  %v1719_v5 = vadd.f32 1.0, %v1703_v40  ;;  %v1230_v33 = vpack.c.bf16 %v1214_v19, %v1214_v19  ;;  %v4953_v19 = vld [vmem:[#allocation22_spill] sm:$0xff] }
 0x1af   : > { %v913_v52 = vunpack.c.l.bf16 %v4950_v12  ;;  %v1245_v36 = vunpack.c.l.bf16 %v1229_v24  ;;  %v1024_v58 = vadd.f32 1.421875, %v1008_v10  ;;  %v1039_v57 = vpack.c.bf16 %v1023_v60, %v1023_v60 }
 0x1b0   : > { %v4951_v7 = vpack.c.bf16 %v3896_v26, %v3896_v26  ;;  %v1756_v27 = vunpack.c.l.bf16 %v1724_v42  ;;  %v1656_v35 = vsel %vm1640_vm4, %v1624_v2, %v1544_v3  ;;  %v1735_v43 = vpack.c.bf16 %v1719_v5, %v1719_v5 }
 0x1b1   : > { %v1246_v17 = vunpack.c.l.bf16 %v1230_v33  ;;  %v1704_v13 = vunpack.c.l.bf16 %v1656_v35  ;;  %v1261_v21 = vmul.f32 %v1245_v36, %v3733_v41  ;;  %v1040_v0 = vpack.c.bf16 %v1024_v58, %v1024_v58  ;;  %v4954_v58 = vld [vmem:[#allocation6_spill] sm:$0xff] }
 0x1b2   : > { %v914_v45 = vunpack.c.l.bf16 %v4951_v7  ;;  %v1055_v56 = vunpack.c.l.bf16 %v1039_v57  ;;  %v1771_v44 = vmul.f32 %v1755_v62, %v3934_v15  ;;  %v1772_v50 = vmul.f32 %v1756_v27, %v3970_v1  ;;  %v3098_v15 = vld [vmem:[%s4832_s5 + $0x20] sm:$0xff] }
 0x1b3   : > { %v1262_v28 = vmul.f32 %v1246_v17, %v3808_v55  ;;  %v2994_v6 = vadd.f32 -1.453125, %v913_v52  ;;  %v1720_v47 = vadd.f32 1.0, %v1704_v13  ;;  %v1277_v23 = vpack.c.bf16 %v1261_v21, %v1261_v21  ;;  %2753 = vmatpush.bf16.msra.mxu3 %v3098_v15 }
 0x1b4   : > { %v1056_v26 = vunpack.c.l.bf16 %v1040_v0  ;;  %v1071_v22 = vmul.f32 %v1055_v56, %v3823_v37  ;;  %v1786_v3 = vpack.c.bf16 %v1772_v50, %v1771_v44  ;;  %v1767_v61 = vunpack.c.l.bf16 %v1735_v43 }
 0x1b5   : > { %v1278_v11 = vpack.c.bf16 %v1262_v28, %v1262_v28  ;;  %v2995_v20 = vadd.f32 -1.453125, %v914_v45  ;;  %v1736_v38 = vpack.c.bf16 %v1720_v47, %v1720_v47  ;;  %v1437_v41 = vunpack.c.l.bf16 %v1277_v23 }
 0x1b6   : > { %v1072_v1 = vmul.f32 %v1056_v26, %v3825_v63  ;;  %v1087_v62 = vpack.c.bf16 %v1071_v22, %v1071_v22  ;;  %v1172_v55 = vmul.f32 %v1156_v8, %v3878_v54  ;;  %3035 = vmatmul.msk.bf16.gmra.mxu1 %vm1820_vm10, %v1786_v3  ;;  %v945_v46 = vpack.c.bf16 %v2994_v6, %v2994_v6 }
 0x1b7   : > { %v1438_v51 = vunpack.c.l.bf16 %v1278_v11  ;;  %v946_v18 = vpack.c.bf16 %v2995_v20, %v2995_v20  ;;  %v1768_v32 = vunpack.c.l.bf16 %v1736_v38  ;;  %v1469_v9 = vmul.f32 %v4952_v4, %v1437_v41 }
 0x1b8   : > { %v1088_v48 = vpack.c.bf16 %v1072_v1, %v1072_v1  ;;  %v1103_v31 = vunpack.c.l.bf16 %v1087_v62  ;;  %v1783_v40 = vmul.f32 %v1767_v61, %v4042_v30  ;;  %v961_v10 = vunpack.c.l.bf16 %v945_v46 }
 0x1b9   : > { %v1470_v24 = vmul.f32 %v4953_v19, %v1438_v51  ;;  %v962_v60 = vunpack.c.l.bf16 %v946_v18  ;;  %v1784_v12 = vmul.f32 %v1768_v32, %v4072_v29  ;;  %v1485_v8 = vpack.c.bf16 %v1469_v9, %v1469_v9  ;;  %v4958_v29 = vld [vmem:[#allocation8_spill] sm:$0xff]  ;;  %v4962_v9 = vld [vmem:[#allocation13_spill] sm:$0xff] }
 0x1ba   : > { %v1104_v52 = vunpack.c.l.bf16 %v1088_v48  ;;  %v3008_v42 = vadd.f32 -0.28515625, %v1103_v31  ;;  %v1188_v2 = vpack.c.bf16 %v1172_v55, %v1172_v55  ;;  %v977_v33 = vmul.f32 %v961_v10, %v3858_v49 }
 0x1bb   : > { %v1486_v5 = vpack.c.bf16 %v1470_v24, %v1470_v24  ;;  %v978_v36 = vmul.f32 %v962_v60, %v3880_v25  ;;  %v4955_v57 = vunpack.c.l.bf16 %v4954_v58  ;;  %v1792_v30 = vpack.c.bf16 %v1784_v12, %v1783_v40 }
 0x1bc   : > { %v1501_v45 = vunpack.c.l.bf16 %v1485_v8  ;;  %v3009_v27 = vadd.f32 -0.28515625, %v1104_v52  ;;  %v1135_v35 = vpack.c.bf16 %v3008_v42, %v3008_v42  ;;  %v4959_v43 = vunpack.c.l.bf16 %v4958_v29 }
 0x1bd   : > { %vm4112_vm5 = vcmp.lt.f32.partialorder %v4955_v57, 0.0  ;;  %v1380_v13 = vunpack.c.l.bf16 %v3928_v53  ;;  %v1502_v21 = vunpack.c.l.bf16 %v1486_v5  ;;  %v993_v0 = vpack.c.bf16 %v977_v33, %v977_v33  ;;  %3041 = vmatmul.msk.bf16.gmra.mxu3 %vm1820_vm10, %v1792_v30 }
 0x1be   : > { %vm4118_vm6 = vcmp.lt.f32.partialorder %v4959_v43, 0.0  ;;  %v994_v56 = vpack.c.bf16 %v978_v36, %v978_v36  ;;  %v2711_v44 = vpack.c.bf16 %v4079_v39, %v4079_v39  ;;  %v1517_v50 = vsub.f32 1.0, %v1501_v45  ;;  %vm1629_vm7 = vmpackc.low %vm4112_vm5, %vm4112_vm5 }
 0x1bf   : > { %v1136_v28 = vpack.c.bf16 %v3009_v27, %v3009_v27  ;;  %v1151_v6 = vunpack.c.l.bf16 %v1135_v35  ;;  %v1204_v47 = vunpack.c.l.bf16 %v1188_v2  ;;  %v1518_v23 = vsub.f32 1.0, %v1502_v21  ;;  %vm1630_vm8 = vmpackc.low %vm4118_vm6, %vm4118_vm6 }
 0x1c0   : > { %v1009_v26 = vunpack.c.l.bf16 %v993_v0  ;;  %v1010_v22 = vunpack.c.l.bf16 %v994_v56  ;;  %v899_v3 = vpack.c.bf16 %v3938_v14, %v3938_v14  ;;  %v1533_v61 = vpack.c.bf16 %v1517_v50, %v1517_v50 }
 0x1c1   : > { %v1152_v53 = vunpack.c.l.bf16 %v1136_v28  ;;  %v1167_v11 = vmul.f32 %v1151_v6, %v3823_v37  ;;  %v1407_v20 = vmul.f32 1.442695, %v1380_v13  ;;  %v1534_v38 = vpack.c.bf16 %v1518_v23, %v1518_v23 }
 0x1c2   : > { %v1025_v41 = vadd.f32 1.421875, %v1009_v26  ;;  %v1026_v39 = vadd.f32 1.421875, %v1010_v22  ;;  %v2713_v15 = vunpack.c.l.bf16 %v2711_v44  ;;  %v1581_v1 = vunpack.c.l.bf16 %v1533_v61 }
 0x1c3   : > { %v1168_v62 = vmul.f32 %v1152_v53, %v3825_v63  ;;  %v1183_v55 = vpack.c.bf16 %v1167_v11, %v1167_v11  ;;  %v1220_v51 = vadd.f32 0.25390625, %v1204_v47  ;;  %v1582_v46 = vunpack.c.l.bf16 %v1534_v38 }
 0x1c4   : > { %v1041_v18 = vpack.c.bf16 %v1025_v41, %v1025_v41  ;;  %v1042_v32 = vpack.c.bf16 %v1026_v39, %v1026_v39  ;;  %v1597_v4 = vsub.f32 0.0, %v1581_v1  ;;  %v4963_v14 = vpack.c.bf16 %v4962_v9, %v4962_v9 }
 0x1c5   : > { %v1184_v31 = vpack.c.bf16 %v1168_v62, %v1168_v62  ;;  %v1199_v40 = vunpack.c.l.bf16 %v1183_v55  ;;  %3235 = vpow2.f32 %v1407_v20  ;;  %v1598_v19 = vsub.f32 0.0, %v1582_v46 }
 0x1c6   : > { %v1741_v48 = vunpack.c.l.bf16 %v4963_v14  ;;  %v1057_v24 = vunpack.c.l.bf16 %v1041_v18  ;;  %v1058_v10 = vunpack.c.l.bf16 %v1042_v32  ;;  %v2714_v60 = vmul.f32 %v2713_v15, %v3893_v34 }
 0x1c7   : > { %v1613_v12 = vpack.c.bf16 %v1597_v4, %v1597_v4  ;;  %v1200_v8 = vunpack.c.l.bf16 %v1184_v31  ;;  %v1215_v52 = vadd.f32 0.25390625, %v1199_v40  ;;  %v1236_v42 = vpack.c.bf16 %v1220_v51, %v1220_v51 }
 0x1c8   : > { %v1614_v2 = vpack.c.bf16 %v1598_v19, %v1598_v19  ;;  %v1073_v5 = vmul.f32 %v1057_v24, %v3858_v49  ;;  %v1074_v33 = vmul.f32 %v1058_v10, %v3880_v25  ;;  %v915_v57 = vunpack.c.l.bf16 %v899_v3  ;;  %v4966_v19 = vld [vmem:[#allocation9_spill] sm:$0xff] }
 0x1c9   : > { %v1645_v36 = vsel %vm1629_vm7, %v1613_v12, %v1533_v61  ;;  %v1216_v58 = vadd.f32 0.25390625, %v1200_v8  ;;  %v1231_v34 = vpack.c.bf16 %v1215_v52, %v1215_v52  ;;  %v2715_v0 = vpack.c.bf16 %v2714_v60, %v2714_v60  ;;  %v4967_v10 = vld [vmem:[#allocation25_spill] sm:$0xff]  ;;  %v4968_v52 = vld [vmem:[#allocation23_spill] sm:$0xff] }
 0x1ca   : > { %v1646_v30 = vsel %vm1630_vm8, %v1614_v2, %v1534_v38  ;;  %v1693_v45 = vunpack.c.l.bf16 %v1645_v36  ;;  %v1089_v27 = vpack.c.bf16 %v1073_v5, %v1073_v5  ;;  %v1090_v7 = vpack.c.bf16 %v1074_v33, %v1074_v33  ;;  %v4964_v38 = vld [vmem:[#allocation18_spill] sm:$0xff]  ;;  %v4970_v5 = vld [vmem:[#allocation24_spill] sm:$0xff] }
 0x1cb   : > { %v1694_v35 = vunpack.c.l.bf16 %v1646_v30  ;;  %v1232_v29 = vpack.c.bf16 %v1216_v58, %v1216_v58  ;;  %v1247_v43 = vunpack.c.l.bf16 %v1231_v34  ;;  %v2996_v13 = vadd.f32 -1.453125, %v915_v57  ;;  %v4142_v21 = vpop.eup %3235  ;;  %v4969_v2 = vld [vmem:[#allocation26_spill] sm:$0xff] }
 0x1cc   : > { %v1709_v56 = vadd.f32 1.0, %v1693_v45  ;;  %v1105_v44 = vunpack.c.l.bf16 %v1089_v27  ;;  %v1106_v17 = vunpack.c.l.bf16 %v1090_v7  ;;  %v1252_v23 = vunpack.c.l.bf16 %v1236_v42 }
 0x1cd   : > { %v1710_v50 = vadd.f32 1.0, %v1694_v35  ;;  %v1248_v28 = vunpack.c.l.bf16 %v1232_v29  ;;  %v1263_v6 = vmul.f32 %v1247_v43, %v3823_v37  ;;  %v947_v47 = vpack.c.bf16 %v2996_v13, %v2996_v13  ;;  %3085 = vmatmul.msk.bf16.vlgmr.msra.gmra.mxu3 %vm1820_vm10, %v2715_v0 }
 0x1ce   : > { %v1725_v26 = vpack.c.bf16 %v1709_v56, %v1709_v56  ;;  %v3010_v22 = vadd.f32 -0.28515625, %v1105_v44  ;;  %v3011_v3 = vadd.f32 -0.28515625, %v1106_v17  ;;  %v4965_v41 = vpack.c.bf16 %v4964_v38, %v4964_v38 }
 0x1cf   : > { %v1726_v61 = vpack.c.bf16 %v1710_v50, %v1710_v50  ;;  %v1264_v53 = vmul.f32 %v1248_v28, %v3825_v63  ;;  %v1279_v11 = vpack.c.bf16 %v1263_v6, %v1263_v6  ;;  %v963_v20 = vunpack.c.l.bf16 %v947_v47 }
 0x1d0   : > { %v1742_v39 = vunpack.c.l.bf16 %v4965_v41  ;;  %v1757_v15 = vunpack.c.l.bf16 %v1725_v26  ;;  %v1137_v1 = vpack.c.bf16 %v3010_v22, %v3010_v22  ;;  %v1138_v62 = vpack.c.bf16 %v3011_v3, %v3011_v3  ;;  %v4974_v3 = vld [vmem:[#allocation10_spill] sm:$0xff] }
 0x1d1   : > { %v1758_v37 = vunpack.c.l.bf16 %v1726_v61  ;;  %v1280_v55 = vpack.c.bf16 %v1264_v53, %v1264_v53  ;;  %v1439_v51 = vunpack.c.l.bf16 %v1279_v11  ;;  %v979_v46 = vmul.f32 %v963_v20, %v3924_v16 }
 0x1d2   : > { %v1268_v18 = vmul.f32 %v1252_v23, %v3878_v54  ;;  %v1773_v32 = vmul.f32 %v1757_v15, %v1741_v48  ;;  %v1153_v4 = vunpack.c.l.bf16 %v1137_v1  ;;  %v1154_v9 = vunpack.c.l.bf16 %v1138_v62 }
 0x1d3   : > { %v1774_v63 = vmul.f32 %v1758_v37, %v1742_v39  ;;  %v1440_v14 = vunpack.c.l.bf16 %v1280_v55  ;;  %v1471_v31 = vmul.f32 %v3841_v59, %v1439_v51  ;;  %v995_v40 = vpack.c.bf16 %v979_v46, %v979_v46 }
 0x1d4   : > { %v1551_v24 = vunpack.c.l.bf16 %v4966_v19  ;;  %3237 = vpow2.f32 %v4967_v10  ;;  %v1169_v60 = vmul.f32 %v1153_v4, %v3858_v49  ;;  %v1170_v12 = vmul.f32 %v1154_v9, %v3880_v25 }
 0x1d5   : > { %v1787_v8 = vpack.c.bf16 %v1774_v63, %v1773_v32  ;;  %v1472_v42 = vmul.f32 %v4968_v52, %v1440_v14  ;;  %v1487_v54 = vpack.c.bf16 %v1471_v31, %v1471_v31  ;;  %v1011_v48 = vunpack.c.l.bf16 %v995_v40 }
 0x1d6   : > { %3239 = vpow2.f32 %v4969_v2  ;;  %v4971_v33 = vpack.c.bf16 %v4970_v5, %v4970_v5  ;;  %v1185_v36 = vpack.c.bf16 %v1169_v60, %v1169_v60  ;;  %v1186_v58 = vpack.c.bf16 %v1170_v12, %v1170_v12 }
 0x1d7   : > { %v1284_v34 = vpack.c.bf16 %v1268_v18, %v1268_v18  ;;  %3036 = vmatmul.msk.bf16.gmra.mxu1 %vm1820_vm10, %v1787_v8  ;;  %v1488_v57 = vpack.c.bf16 %v1472_v42, %v1472_v42  ;;  %v1503_v30 = vunpack.c.l.bf16 %v1487_v54  ;;  %v1027_v45 = vadd.f32 1.421875, %v1011_v48 }
 0x1d8   : > { %v1331_v59 = vunpack.c.l.bf16 %v4971_v33  ;;  %v1201_v27 = vunpack.c.l.bf16 %v1185_v36  ;;  %v1202_v7 = vunpack.c.l.bf16 %v1186_v58  ;;  %v1428_v35 = vpack.c.bf16 %v4142_v21, %v4142_v21 }
 0x1d9   : > { %v1504_v29 = vunpack.c.l.bf16 %v1488_v57  ;;  %v1519_v43 = vsub.f32 1.0, %v1503_v30  ;;  %v1043_v13 = vpack.c.bf16 %v1027_v45, %v1027_v45  ;;  %vm4165_vm9 = vcmp.lt.f32.partialorder %v1551_v24, 0.0 }
 0x1da   : > { %v3238_v0 = vpop.eup %3237  ;;  %v1347_v44 = vsub.f32 0.0, %v1331_v59  ;;  %v1217_v17 = vadd.f32 0.25390625, %v1201_v27  ;;  %v1218_v50 = vadd.f32 0.25390625, %v1202_v7  ;;  %v1444_v28 = vunpack.c.l.bf16 %v1284_v34  ;;  %vm1631_vm12 = vmpackc.low %vm4165_vm9, %vm4165_vm9 }
 0x1db   : > { %v1520_v6 = vsub.f32 1.0, %v1504_v29  ;;  %v1535_v47 = vpack.c.bf16 %v1519_v43, %v1519_v43  ;;  %v1059_v23 = vunpack.c.l.bf16 %v1043_v13  ;;  %v1663_v22 = vmul.f32 0.5, %v1551_v24 }
 0x1dc   : > { %v3240_v26 = vpop.eup %3239  ;;  %v1552_v61 = vunpack.c.l.bf16 %v4974_v3  ;;  %v1233_v21 = vpack.c.bf16 %v1217_v17, %v1217_v17  ;;  %v1234_v53 = vpack.c.bf16 %v1218_v50, %v1218_v50  ;;  %v1460_v11 = vunpack.c.l.bf16 %v1428_v35  ;;  %v4977_v3 = vld [vmem:[#allocation14_spill] sm:$0xff] }
 0x1dd   : > { %v1536_v20 = vpack.c.bf16 %v1520_v6, %v1520_v6  ;;  %v1583_v38 = vunpack.c.l.bf16 %v1535_v47  ;;  %v1075_v41 = vmul.f32 %v1059_v23, %v3924_v16  ;;  %v1425_v39 = vpack.c.bf16 %v3238_v0, %v3238_v0 }
 0x1de   : > { %v1363_v15 = vpack.c.bf16 %v1347_v44, %v1347_v44  ;;  %v1249_v1 = vunpack.c.l.bf16 %v1233_v21  ;;  %v1250_v62 = vunpack.c.l.bf16 %v1234_v53  ;;  %v1476_v37 = vmul.f32 %v1460_v11, %v1444_v28  ;;  %v4978_v21 = vld [vmem:[#allocation17_spill] sm:$0xff] }
 0x1df   : > { %v1584_v55 = vunpack.c.l.bf16 %v1536_v20  ;;  %v1599_v51 = vsub.f32 0.0, %v1583_v38  ;;  %v1091_v46 = vpack.c.bf16 %v1075_v41, %v1075_v41  ;;  %vm4171_vm11 = vcmp.lt.f32.partialorder %v1552_v61, 0.0 }
 0x1e0   : > { %v1426_v32 = vpack.c.bf16 %v3240_v26, %v3240_v26  ;;  %v1265_v4 = vmul.f32 %v1249_v1, %v3858_v49  ;;  %v1266_v9 = vmul.f32 %v1250_v62, %v3880_v25  ;;  %v1664_v63 = vmul.f32 0.5, %v1552_v61  ;;  %vm1632_vm13 = vmpackc.low %vm4171_vm11, %vm4171_vm11 }
 0x1e1   : > { %v1600_v14 = vsub.f32 0.0, %v1584_v55  ;;  %v1615_v31 = vpack.c.bf16 %v1599_v51, %v1599_v51  ;;  %v1107_v40 = vunpack.c.l.bf16 %v1091_v46  ;;  %v1457_v19 = vunpack.c.l.bf16 %v1425_v39  ;;  %v4208_v46 = vld [vmem:[%s4833_s6] ss:$0 sm:$0xff] }
 0x1e2   : > { %v1379_v24 = vunpack.c.l.bf16 %v1363_v15  ;;  %v1281_v10 = vpack.c.bf16 %v1265_v4, %v1265_v4  ;;  %v1282_v60 = vpack.c.bf16 %v1266_v9, %v1266_v9  ;;  %v1492_v12 = vpack.c.bf16 %v1476_v37, %v1476_v37 }
 0x1e3   : > { %v1616_v8 = vpack.c.bf16 %v1600_v14, %v1600_v14  ;;  %v1647_v52 = vsel %vm1631_vm12, %v1615_v31, %v1535_v47  ;;  %v3012_v42 = vadd.f32 -0.28515625, %v1107_v40  ;;  %v1458_v49 = vunpack.c.l.bf16 %v1426_v32 }
 0x1e4   : > { %v1695_v25 = vunpack.c.l.bf16 %v1647_v52  ;;  %v1441_v54 = vunpack.c.l.bf16 %v1281_v10  ;;  %v1442_v48 = vunpack.c.l.bf16 %v1282_v60  ;;  %v1679_v2 = vpack.c.bf16 %v1663_v22, %v1663_v22 }
 0x1e5   : > { %v1648_v5 = vsel %vm1632_vm13, %v1616_v8, %v1536_v20  ;;  %v1139_v33 = vpack.c.bf16 %v3012_v42, %v3012_v42  ;;  %v1680_v57 = vpack.c.bf16 %v1664_v63, %v1664_v63  ;;  %v1405_v30 = vmul.f32 1.442695, %v1379_v24 }
 0x1e6   : > { %v1696_v59 = vunpack.c.l.bf16 %v1648_v5  ;;  %v1711_v36 = vadd.f32 1.0, %v1695_v25  ;;  %v1473_v58 = vmul.f32 %v1457_v19, %v1441_v54  ;;  %v1474_v34 = vmul.f32 %v1458_v49, %v1442_v48 }
 0x1e7   : > { %v1508_v45 = vunpack.c.l.bf16 %v1492_v12  ;;  %v1155_v27 = vunpack.c.l.bf16 %v1139_v33  ;;  %3241 = vpow2.f32 %v1405_v30  ;;  %v1743_v28 = vunpack.c.l.bf16 %v1679_v2  ;;  %v4983_v12 = vld [vmem:[#allocation20_spill] sm:$0xff] }
 0x1e8   : > { %v1712_v7 = vadd.f32 1.0, %v1696_v59  ;;  %v1727_v35 = vpack.c.bf16 %v1711_v36, %v1711_v36  ;;  %v1489_v29 = vpack.c.bf16 %v1473_v58, %v1473_v58  ;;  %v1490_v43 = vpack.c.bf16 %v1474_v34, %v1474_v34 }
 0x1e9   : > { %v1171_v13 = vmul.f32 %v1155_v27, %v3924_v16  ;;  %v1524_v50 = vsub.f32 1.0, %v1508_v45  ;;  %v1744_v47 = vunpack.c.l.bf16 %v1680_v57  ;;  %v1553_v61 = vunpack.c.l.bf16 %v4977_v3 }
 0x1ea   : > { %v1728_v0 = vpack.c.bf16 %v1712_v7, %v1712_v7  ;;  %v1759_v56 = vunpack.c.l.bf16 %v1727_v35  ;;  %v1505_v44 = vunpack.c.l.bf16 %v1489_v29  ;;  %v1506_v17 = vunpack.c.l.bf16 %v1490_v43 }
 0x1eb   : > { %v1187_v6 = vpack.c.bf16 %v1171_v13, %v1171_v13  ;;  %v1554_v53 = vunpack.c.l.bf16 %v4978_v21  ;;  %v1540_v15 = vpack.c.bf16 %v1524_v50, %v1524_v50  ;;  %vm4186_vm14 = vcmp.lt.f32.partialorder %v1553_v61, 0.0 }
 0x1ec   : > { %v1760_v23 = vunpack.c.l.bf16 %v1728_v0  ;;  %v1521_v26 = vsub.f32 1.0, %v1505_v44  ;;  %v1522_v22 = vsub.f32 1.0, %v1506_v17  ;;  %v1775_v20 = vmul.f32 %v1759_v56, %v1743_v28  ;;  %vm1633_vm1 = vmpackc.low %vm4186_vm14, %vm4186_vm14  ;;  %v4984_v28 = vld [vmem:[#allocation19_spill] sm:$0xff] }
 0x1ed   : > { %v1203_v11 = vunpack.c.l.bf16 %v1187_v6  ;;  %v3242_v51 = vpop.eup %3241  ;;  %vm4190_vm15 = vcmp.lt.f32.partialorder %v1554_v53, 0.0  ;;  %v1588_v63 = vunpack.c.l.bf16 %v1540_v15  ;;  %v1665_v31 = vmul.f32 0.5, %v1553_v61 }
 0x1ee   : > { %v1776_v38 = vmul.f32 %v1760_v23, %v1744_v47  ;;  %v1537_v41 = vpack.c.bf16 %v1521_v26, %v1521_v26  ;;  %v1538_v39 = vpack.c.bf16 %v1522_v22, %v1522_v22  ;;  %v1666_v40 = vmul.f32 0.5, %v1554_v53  ;;  %vm1634_vm2 = vmpackc.low %vm4190_vm15, %vm4190_vm15 }
 0x1ef   : > { %v1219_v1 = vadd.f32 0.25390625, %v1203_v11  ;;  %v1427_v10 = vpack.c.bf16 %v3242_v51, %v3242_v51  ;;  %v1556_v8 = vunpack.c.l.bf16 %v4983_v12  ;;  %v1604_v49 = vsub.f32 0.0, %v1588_v63 }
 0x1f0   : > { %v1788_v62 = vpack.c.bf16 %v1776_v38, %v1775_v20  ;;  %v1585_v37 = vunpack.c.l.bf16 %v1537_v41  ;;  %v1586_v55 = vunpack.c.l.bf16 %v1538_v39  ;;  %v1681_v2 = vpack.c.bf16 %v1665_v31, %v1665_v31 }
 0x1f1   : > { %v1235_v18 = vpack.c.bf16 %v1219_v1, %v1219_v1  ;;  %v1682_v5 = vpack.c.bf16 %v1666_v40, %v1666_v40  ;;  %v1459_v33 = vunpack.c.l.bf16 %v1427_v10  ;;  %vm1572_vm3 = vcmp.lt.f32.partialorder %v1556_v8, 0.0 }
 0x1f2   : > { %3037 = vmatmul.msk.bf16.gmra.mxu1 %vm1820_vm10, %v1788_v62  ;;  %v1601_v4 = vsub.f32 0.0, %v1585_v37  ;;  %v1602_v9 = vsub.f32 0.0, %v1586_v55  ;;  %v1620_v34 = vpack.c.bf16 %v1604_v49, %v1604_v49  ;;  %vm1636_vm4 = vmpackc.low %vm1572_vm3, %vm1572_vm3  ;;  %v1555_v6 = vunpack.c.l.bf16 %v4984_v28 }
 0x1f3   : > { %v1251_v14 = vunpack.c.l.bf16 %v1235_v18  ;;  %v1746_v27 = vunpack.c.l.bf16 %v1682_v5  ;;  %v1668_v3 = vmul.f32 0.5, %v1556_v8 }
 0x1f4   : > { %v1617_v19 = vpack.c.bf16 %v1601_v4, %v1601_v4  ;;  %v1618_v24 = vpack.c.bf16 %v1602_v9, %v1602_v9  ;;  %v1652_v43 = vsel %vm1636_vm4, %v1620_v34, %v1540_v15  ;;  %vm1571_vm5 = vcmp.lt.f32.partialorder %v1555_v6, 0.0 }
 0x1f5   : > { %v1267_v60 = vmul.f32 %v1251_v14, %v3924_v16  ;;  %v1745_v16 = vunpack.c.l.bf16 %v1681_v2  ;;  %v1700_v50 = vunpack.c.l.bf16 %v1652_v43  ;;  %vm1635_vm6 = vmpackc.low %vm1571_vm5, %vm1571_vm5  ;;  %v1667_v21 = vmul.f32 0.5, %v1555_v6 }
 0x1f6   : > { %v1649_v52 = vsel %vm1633_vm1, %v1617_v19, %v1537_v41  ;;  %v1650_v42 = vsel %vm1634_vm2, %v1618_v24, %v1538_v39  ;;  %v1684_v20 = vpack.c.bf16 %v1668_v3, %v1668_v3 }
 0x1f7   : > { %v1697_v25 = vunpack.c.l.bf16 %v1649_v52  ;;  %v1698_v54 = vunpack.c.l.bf16 %v1650_v42  ;;  %v1283_v48 = vpack.c.bf16 %v1267_v60, %v1267_v60  ;;  %v1716_v26 = vadd.f32 1.0, %v1700_v50 }
 0x1f8   : > { %v1683_v41 = vpack.c.bf16 %v1667_v21, %v1667_v21  ;;  %v1748_v1 = vunpack.c.l.bf16 %v1684_v20 }
 0x1f9   : > { %v1713_v59 = vadd.f32 1.0, %v1697_v25  ;;  %v1714_v36 = vadd.f32 1.0, %v1698_v54  ;;  %v1443_v58 = vunpack.c.l.bf16 %v1283_v48  ;;  %v1732_v53 = vpack.c.bf16 %v1716_v26, %v1716_v26 }
 0x1fa   : > { %v1747_v37 = vunpack.c.l.bf16 %v1683_v41 }
 0x1fb   : > { %v1729_v57 = vpack.c.bf16 %v1713_v59, %v1713_v59  ;;  %v1730_v30 = vpack.c.bf16 %v1714_v36, %v1714_v36  ;;  %v1475_v45 = vmul.f32 %v1459_v33, %v1443_v58  ;;  %v1764_v15 = vunpack.c.l.bf16 %v1732_v53 }
 0x1fd   : > { %v1761_v7 = vunpack.c.l.bf16 %v1729_v57  ;;  %v1762_v35 = vunpack.c.l.bf16 %v1730_v30  ;;  %v1491_v29 = vpack.c.bf16 %v1475_v45, %v1475_v45  ;;  %v1780_v51 = vmul.f32 %v1764_v15, %v1748_v1 }
 0x1ff   : > { %v1777_v13 = vmul.f32 %v1761_v7, %v1745_v16  ;;  %v1778_v0 = vmul.f32 %v1762_v35, %v1746_v27  ;;  %v1507_v56 = vunpack.c.l.bf16 %v1491_v29 }
 0x201   : > { %v1789_v44 = vpack.c.bf16 %v1778_v0, %v1777_v13  ;;  %v1523_v17 = vsub.f32 1.0, %v1507_v56 }
 0x203   : > { %3038 = vmatmul.msk.bf16.gmra.mxu1 %vm1820_vm10, %v1789_v44  ;;  %v1539_v47 = vpack.c.bf16 %v1523_v17, %v1523_v17 }
 0x205   : > { %v1587_v23 = vunpack.c.l.bf16 %v1539_v47 }
 0x207   : > { %v1603_v22 = vsub.f32 0.0, %v1587_v23 }
 0x209   : > { %v1619_v61 = vpack.c.bf16 %v1603_v22, %v1603_v22 }
 0x20b   : > { %v1651_v11 = vsel %vm1635_vm6, %v1619_v61, %v1539_v47 }
 0x20c   : > { %v1699_v38 = vunpack.c.l.bf16 %v1651_v11 }
 0x20e   : > { %v1715_v39 = vadd.f32 1.0, %v1699_v38  ;;  %v4227_v12 = vpop.f32.mrf.mxu1  ;;  %v3338_v38 = vmov 32.0  }
 0x20f   : > { %3243 = vrcp.f32 %v3338_v38 }
 0x210   : > { %v1731_v62 = vpack.c.bf16 %v1715_v39, %v1715_v39  ;;  %v1884_v32 = vpop.f32.mrf.mxu3 }
 0x211   : > { %v4211_v4 = vadd.f32 %v4208_v46, %v1884_v32 }
 0x212   : > { %v1763_v55 = vunpack.c.l.bf16 %v1731_v62 }
 0x213   : > { %v1930_v63 = vsel %vm439_vm0, %v4211_v4, 0.0  ;;  %v1977_v14 = vmul.f32 %v4211_v4, %v4211_v4 }
 0x214   : > { %v1779_v18 = vmul.f32 %v1763_v55, %v1747_v37  ;;  %1931 = vadd.xlane.f32.xlu2 %v1930_v63 }
 0x215   : > { %v2017_v31 = vsel %vm439_vm0, %v1977_v14, 0.0  ;;  %v3244_v15 = vpop.eup %3243 }
 0x216   : > { %v1790_v9 = vpack.c.bf16 %v1780_v51, %v1779_v18  ;;  %2018 = vadd.xlane.f32.xlu0 %v2017_v31  ;;  %v4229_v8 = vpop.f32.mrf.mxu1  ;;  %v1943_v55 = vmul.f32 32.0, %v3244_v15 }
 0x218   : > { %3039 = vmatmul.msk.bf16.gmra.mxu1 %vm1820_vm10, %v1790_v9  ;;  %v1886_v40 = vpop.f32.mrf.mxu3  ;;  %v1944_v18 = vsub.f32 1.0, %v1943_v55  ;;  %vm1947_vm10 = vweird.f32 %v3244_v15 }
 0x219   : > { %v4220_v19 = vadd.f32 %v4208_v46, %v1886_v40 }
 0x21a   : > { %v1945_v9 = vmul.f32 %v3244_v15, %v1944_v18 }
 0x21b   : > { %v1933_v24 = vsel %vm439_vm0, %v4220_v19, 0.0  ;;  %v1978_v10 = vmul.f32 %v4220_v19, %v4220_v19 }
 0x21c   : > { %1934 = vadd.xlane.f32.xlu2 %v1933_v24  ;;  %v1946_v31 = vadd.f32 %v3244_v15, %v1945_v9 }
 0x21d   : > { %v2020_v60 = vsel %vm439_vm0, %v1978_v10, 0.0 }
 0x21e   : > { %2021 = vadd.xlane.f32.xlu1 %v2020_v60 }
 0x233   : > { %v4238_v54 = vpop.f32.mrf.mxu1 }
 0x23b   : > { %v4249_v58 = vpop.f32.mrf.mxu1 }
 0x240   : > { %v1889_v52 = vpop.f32.mrf.mxu3 }
 0x241   : > { %v4232_v42 = vadd.f32 %v4208_v46, %v1889_v52 }
 0x243   : > { %v1936_v49 = vsel %vm439_vm0, %v4232_v42, 0.0  ;;  %v1979_v25 = vmul.f32 %v4232_v42, %v4232_v42 }
 0x244   : > { %1937 = vadd.xlane.f32.xlu0 %v1936_v49  ;;  %v4312_v49 = vsel %vm1947_vm10, %v3244_v15, %v1946_v31 }
 0x245   : > { %v2023_v48 = vsel %vm439_vm0, %v1979_v25, 0.0 }
 0x246   : > { %2024 = vadd.xlane.f32.xlu1 %v2023_v48 }
 0x248   : > { %v1891_v2 = vpop.f32.mrf.mxu3 }
 0x249   : > { %v4242_v5 = vadd.f32 %v4208_v46, %v1891_v2  ;;  %v4320_v2 = vadd.f32 %v4208_v46, %v4249_v58 }
 0x24b   : > { %v1939_v33 = vsel %vm439_vm0, %v4242_v5, 0.0  ;;  %v1980_v59 = vmul.f32 %v4242_v5, %v4242_v5  ;;  %v1903_v58 = vsel %vm439_vm0, %v4320_v2, 0.0 }
 0x24c   : > { %1940 = vadd.xlane.f32.xlu0 %v1939_v33 }
 0x24d   : > { %v2026_v36 = vsel %vm439_vm0, %v1980_v59, 0.0 }
 0x24e   : > { %2027 = vadd.xlane.f32.xlu1 %v2026_v36 }
 0x250   : > { %v4251_v34 = vpop.f32.mrf.mxu3 }
 0x254   : > { %v1864_v30 = vpop.f32.mrf.mxu1 }
 0x255   : > { %v4296_v1 = vadd.f32 %v4208_v46, %v1864_v30  ;;  %v4330_v30 = vadd.f32 %v4208_v46, %v4238_v54 }
 0x257   : > { %v1969_v32 = vmul.f32 %v4296_v1, %v4296_v1  ;;  %v1906_v52 = vsel %vm439_vm0, %v4296_v1, 0.0 }
 0x258   : > { %v2757_v57 = vpop.f32.mrf.mxu3 }
 0x259   : > { %v1993_v60 = vsel %vm439_vm0, %v1969_v32, 0.0 }
 0x25c   : > { %v1866_v45 = vpop.f32.mrf.mxu1 }
 0x25d   : > { %v4307_v10 = vadd.f32 %v4208_v46, %v1866_v45 }
 0x25f   : > { %v1970_v33 = vmul.f32 %v4307_v10, %v4307_v10  ;;  %v1909_v36 = vsel %vm439_vm0, %v4307_v10, 0.0 }
 0x26f   : > { %v1869_v16 = vpop.f32.mrf.mxu1 }
 0x270   : > { %v4275_v26 = vadd.f32 %v4208_v46, %v1869_v16  ;;  %v1996_v16 = vsel %vm439_vm0, %v1970_v33, 0.0 }
 0x272   : > { %v1912_v53 = vsel %vm439_vm0, %v4275_v26, 0.0  ;;  %v1971_v51 = vmul.f32 %v4275_v26, %v4275_v26 }
 0x274   : > { %v1999_v63 = vsel %vm439_vm0, %v1971_v51, 0.0 }
 0x277   : > { %v1871_v27 = vpop.f32.mrf.mxu1 }
 0x278   : > { %v4285_v21 = vadd.f32 %v4208_v46, %v1871_v27 }
 0x27a   : > { %v1972_v41 = vmul.f32 %v4285_v21, %v4285_v21  ;;  %v1915_v37 = vsel %vm439_vm0, %v4285_v21, 0.0 }
 0x27c   : > { %v2002_v62 = vsel %vm439_vm0, %v1972_v41, 0.0  ;;  %v1968_v41 = vmul.f32 %v4320_v2, %v4320_v2 }
 0x27e   : > { %v1990_v51 = vsel %vm439_vm0, %v1968_v41, 0.0 }
 0x280   : > { %v1874_v7 = vpop.f32.mrf.mxu1 }
 0x281   : > { %v4254_v35 = vadd.f32 %v4208_v46, %v1874_v7 }
 0x283   : > { %v1918_v29 = vsel %vm439_vm0, %v4254_v35, 0.0  ;;  %v1973_v43 = vmul.f32 %v4254_v35, %v4254_v35 }
 0x284   : > { %1919 = vadd.xlane.f32.xlu0 %v1918_v29 }
 0x285   : > { %v2005_v13 = vsel %vm439_vm0, %v1973_v43, 0.0 }
 0x286   : > { %2006 = vadd.xlane.f32.xlu2 %v2005_v13  ;;  %v4343_v13 = vadd.f32 %v4208_v46, %v4227_v12  ;;  %v4356_v12 = vadd.f32 %v4208_v46, %v4229_v8 }
 0x287   : > { %v1932_v14 = vpop.xlane.xlu2 %1931 }
 0x288   : > { %v1876_v0 = vpop.f32.mrf.mxu1  ;;  %v4315_v25 = vmul.f32 %v4312_v49, %v1932_v14  ;;  %v1966_v15 = vmul.f32 %v4356_v12, %v4356_v12  ;;  %v1897_v31 = vsel %vm439_vm0, %v4356_v12, 0.0 }
 0x289   : > { %v4262_v56 = vadd.f32 %v4208_v46, %v1876_v0  ;;  %v2019_v40 = vpop.xlane.xlu0 %2018  ;;  %v1967_v0 = vmul.f32 %v4330_v30, %v4330_v30 }
 0x28a   : > { %v2041_v48 = vmul.f32 %v2019_v40, %v4312_v49  ;;  %v2057_v59 = vmul.f32 %v4315_v25, %v4315_v25  ;;  %v1984_v14 = vsel %vm439_vm0, %v1966_v15, 0.0 }
 0x28b   : > { %v1921_v44 = vsel %vm439_vm0, %v4262_v56, 0.0  ;;  %v1974_v20 = vmul.f32 %v4262_v56, %v4262_v56 }
 0x28c   : > { %1922 = vadd.xlane.f32.xlu1 %v1921_v44  ;;  %v2073_v57 = vsub.f32 %v2041_v48, %v2057_v59  ;;  %v1965_v48 = vmul.f32 %v4343_v13, %v4343_v13 }
 0x28d   : > { %v2008_v39 = vsel %vm439_vm0, %v1974_v20, 0.0 }
 0x28e   : > { %v2089_v27 = vadd.f32 1e-05, %v2073_v57 }
 0x28f   : > { %v1935_v44 = vpop.xlane.xlu2 %1934 }
 0x290   : > { %3245 = vrsqrt.f32 %v2089_v27  ;;  %vm2219_vm8 = vweird.f32 %v2089_v27 }
 0x291   : > { %v2022_v24 = vpop.xlane.xlu1 %2021 }
 0x292   : > { %v2042_v8 = vmul.f32 %v2022_v24, %v4312_v49 }
 0x295   : > { %v1879_v17 = vpop.f32.mrf.mxu1 }
 0x296   : > { %v4267_v50 = vadd.f32 %v4208_v46, %v1879_v17 }
 0x298   : > { %v1924_v28 = vsel %vm439_vm0, %v4267_v50, 0.0  ;;  %v1975_v6 = vmul.f32 %v4267_v50, %v4267_v50 }
 0x299   : > { %1925 = vadd.xlane.f32.xlu2 %v1924_v28  ;;  %v1900_v28 = vsel %vm439_vm0, %v4330_v30, 0.0 }
 0x29a   : > { %v2011_v47 = vsel %vm439_vm0, %v1975_v6, 0.0  ;;  %v4350_v6 = vmul.f32 %v4312_v49, %v1935_v44 }
 0x29b   : > { %2012 = vadd.xlane.f32.xlu1 %v2011_v47 }
 0x29d   : > { %v1881_v23 = vpop.f32.mrf.mxu1 }
 0x29e   : > { %v4278_v22 = vadd.f32 %v4208_v46, %v1881_v23  ;;  %v2058_v46 = vmul.f32 %v4350_v6, %v4350_v6 }
 0x2a0   : > { %v1927_v3 = vsel %vm439_vm0, %v4278_v22, 0.0  ;;  %v1976_v61 = vmul.f32 %v4278_v22, %v4278_v22  ;;  %v2074_v9 = vsub.f32 %v2042_v8, %v2058_v46 }
 0x2a1   : > { %1928 = vadd.xlane.f32.xlu0 %v1927_v3  ;;  %v3246_v3 = vpop.eup %3245 }
 0x2a2   : > { %v2014_v11 = vsel %vm439_vm0, %v1976_v61, 0.0  ;;  %v1894_v61 = vsel %vm439_vm0, %v4343_v13, 0.0  ;;  %v2214_v20 = vmul.f32 %v3246_v3, %v2089_v27  ;;  %vm2220_vm7 = vweird.f32 %v3246_v3 }
 0x2a3   : > { %1913 = vadd.xlane.f32.xlu1 %v1912_v53  ;;  %2015 = vadd.xlane.f32.xlu2 %v2014_v11  ;;  %v1987_v53 = vsel %vm439_vm0, %v1967_v0, 0.0  ;;  %vm2221_vm9 = vmor %vm2219_vm8, %vm2220_vm7  ;;  %v2090_v59 = vadd.f32 1e-05, %v2074_v9  ;;  %v1981_v27 = vsel %vm439_vm0, %v1965_v48, 0.0 }
 0x2a5   : > { %vm2229_vm1 = vweird.f32 %v2090_v59 }
 0x2a9   : > { %2009 = vadd.xlane.f32.xlu0 %v2008_v39  ;;  %v2215_v39 = vmul.f32 %v3246_v3, %v2214_v20 }
 0x2ab   : > { %2003 = vadd.xlane.f32.xlu1 %v2002_v62  ;;  %1916 = vadd.xlane.f32.xlu2 %v1915_v37  ;;  %v2216_v55 = vmul.f32 0.5, %v2215_v39 }
 0x2ad   : > { %v2217_v32 = vsub.f32 1.5, %v2216_v55 }
 0x2b1   : > { %2000 = vadd.xlane.f32.xlu0 %v1999_v63  ;;  %v3135_v63 = vld [vmem:[%s4833_s6 + $0x1] ss:$0 sm:$0xff] }
 0x2b2   : > { %v4391_v57 = vadd.f32 %v3135_v63, %v4251_v34  ;;  %v4402_v34 = vld [vmem:[%s4835_s8] ss:$0 sm:$0xff] }
 0x2b3   : > { %1994 = vadd.xlane.f32.xlu1 %v1993_v60  ;;  %1907 = vadd.xlane.f32.xlu2 %v1906_v52  ;;  %v4386_v60 = vld [vmem:[%s4834_s7] ss:$0 sm:$0xff]  ;;  %v2218_v52 = vmul.f32 %v3246_v3, %v2217_v32 }
 0x2b4   : > { %v2763_v44 = vmul.f32 %v4391_v57, %v4391_v57 }
 0x2b7   : > { %v1938_v45 = vpop.xlane.xlu0 %1937 }
 0x2b8   : > { %v4336_v7 = vmul.f32 %v4312_v49, %v1938_v45 }
 0x2b9   : > { %1910 = vadd.xlane.f32.xlu0 %v1909_v36  ;;  %v2025_v29 = vpop.xlane.xlu1 %2024  ;;  %v2222_v36 = vsel %vm2221_vm9, %v3246_v3, %v2218_v52 }
 0x2ba   : > { %v2059_v43 = vmul.f32 %v4336_v7, %v4336_v7  ;;  %v2043_v54 = vmul.f32 %v2025_v29, %v4312_v49  ;;  %v2265_v29 = vsub.f32 %v4211_v4, %v4315_v25  ;;  %v2267_v20 = vsub.f32 %v4232_v42, %v4336_v7 }
 0x2bb   : > { %1904 = vadd.xlane.f32.xlu1 %v1903_v58  ;;  %1997 = vadd.xlane.f32.xlu2 %v1996_v16  ;;  %v2284_v16 = vmul.f32 %v4386_v60, %v2222_v36 }
 0x2bc   : > { %v2075_v17 = vsub.f32 %v2043_v54, %v2059_v43  ;;  %v2759_v43 = vsel %vm439_vm0, %v4391_v57, 0.0 }
 0x2bd   : > { %v2300_v0 = vmul.f32 %v2284_v16, %v2265_v29 }
 0x2be   : > { %v4352_v47 = vadd.f32 1e-05, %v2075_v17 }
 0x2bf   : > { %v1941_v23 = vpop.xlane.xlu0 %1940  ;;  %v4407_v25 = vadd.f32 %v4402_v34, %v2300_v0 }
 0x2c0   : > { %v4362_v11 = vmul.f32 %v4312_v49, %v1941_v23  ;;  %3247 = vrsqrt.f32 %v4352_v47  ;;  %v2764_v23 = vsel %vm439_vm0, %v2763_v44, 0.0  ;;  %vm2239_vm12 = vweird.f32 %v4352_v47 }
 0x2c1   : > { %1901 = vadd.xlane.f32.xlu0 %v1900_v28  ;;  %v2028_v38 = vpop.xlane.xlu1 %2027  ;;  %3249 = vrsqrt.f32 %v2090_v59  ;;  %v2335_v3 = vmul.f32 %v4407_v25, %v4407_v25 }
 0x2c2   : > { %v2060_v62 = vmul.f32 %v4362_v11, %v4362_v11  ;;  %v2044_v37 = vmul.f32 %v2028_v38, %v4312_v49 }
 0x2c3   : > { %1895 = vadd.xlane.f32.xlu1 %v1894_v61  ;;  %1988 = vadd.xlane.f32.xlu2 %v1987_v53  ;;  %v2375_v46 = vsel %vm439_vm0, %v2335_v3, 0.0 }
 0x2c4   : > { %v2076_v24 = vsub.f32 %v2044_v37, %v2060_v62 }
 0x2c6   : > { %v3248_v18 = vpop.eup %3247  ;;  %v2092_v58 = vadd.f32 1e-05, %v2076_v24 }
 0x2c7   : > { %v2234_v40 = vmul.f32 %v3248_v18, %v4352_v47  ;;  %vm2240_vm11 = vweird.f32 %v3248_v18  ;;  %v3250_v17 = vpop.eup %3249 }
 0x2c8   : > { %3251 = vrsqrt.f32 %v2092_v58  ;;  %vm2241_vm13 = vmor %vm2239_vm12, %vm2240_vm11  ;;  %v2224_v53 = vmul.f32 %v3250_v17, %v2090_v59  ;;  %vm2230_vm14 = vweird.f32 %v3250_v17  ;;  %vm2249_vm3 = vweird.f32 %v2092_v58 }
 0x2c9   : > { %1991 = vadd.xlane.f32.xlu0 %v1990_v51  ;;  %v2235_v33 = vmul.f32 %v3248_v18, %v2234_v40  ;;  %vm2231_vm2 = vmor %vm2229_vm1, %vm2230_vm14 }
 0x2ca   : > { %v2225_v8 = vmul.f32 %v3250_v17, %v2224_v53 }
 0x2cb   : > { %1985 = vadd.xlane.f32.xlu1 %v1984_v14  ;;  %1898 = vadd.xlane.f32.xlu2 %v1897_v31  ;;  %v2236_v45 = vmul.f32 0.5, %v2235_v33  ;;  %v2266_v14 = vsub.f32 %v4220_v19, %v4350_v6  ;;  %v2268_v31 = vsub.f32 %v4242_v5, %v4362_v11 }
 0x2cc   : > { %v2226_v37 = vmul.f32 0.5, %v2225_v8 }
 0x2cd   : > { %v2237_v54 = vsub.f32 1.5, %v2236_v45 }
 0x2ce   : > { %v3252_v28 = vpop.eup %3251  ;;  %v2227_v42 = vsub.f32 1.5, %v2226_v37 }
 0x2cf   : > { %v2238_v4 = vmul.f32 %v3248_v18, %v2237_v54  ;;  %v2244_v38 = vmul.f32 %v3252_v28, %v2092_v58  ;;  %vm2250_vm15 = vweird.f32 %v3252_v28 }
 0x2d0   : > { %vm2251_vm4 = vmor %vm2249_vm3, %vm2250_vm15 }
 0x2d1   : > { %1982 = vadd.xlane.f32.xlu0 %v1981_v27  ;;  %v2242_v61 = vsel %vm2241_vm13, %v3248_v18, %v2238_v4  ;;  %v2245_v15 = vmul.f32 %v3252_v28, %v2244_v38  ;;  %v2228_v18 = vmul.f32 %v3250_v17, %v2227_v42 }
 0x2d2   : > { %v2286_v41 = vmul.f32 %v4386_v60, %v2242_v61 }
 0x2d3   : > { %2760 = vadd.xlane.f32.xlu2 %v2759_v43  ;;  %v2246_v55 = vmul.f32 0.5, %v2245_v15  ;;  %v2232_v9 = vsel %vm2231_vm2, %v3250_v17, %v2228_v18 }
 0x2d4   : > { %v2302_v39 = vmul.f32 %v2286_v41, %v2267_v20  ;;  %v2285_v40 = vmul.f32 %v4386_v60, %v2232_v9 }
 0x2d5   : > { %v2247_v7 = vsub.f32 1.5, %v2246_v55 }
 0x2d6   : > { %v4418_v47 = vadd.f32 %v4402_v34, %v2302_v39  ;;  %v2301_v52 = vmul.f32 %v2285_v40, %v2266_v14 }
 0x2d7   : > { %v2248_v32 = vmul.f32 %v3252_v28, %v2247_v7 }
 0x2d8   : > { %v2337_v62 = vmul.f32 %v4418_v47, %v4418_v47  ;;  %v4430_v33 = vadd.f32 %v4402_v34, %v2301_v52 }
 0x2d9   : > { %2765 = vadd.xlane.f32.xlu0 %v2764_v23  ;;  %v2252_v63 = vsel %vm2251_vm4, %v3252_v28, %v2248_v32 }
 0x2da   : > { %v2381_v51 = vsel %vm439_vm0, %v2337_v62, 0.0  ;;  %v2287_v24 = vmul.f32 %v4386_v60, %v2252_v63  ;;  %v2336_v36 = vmul.f32 %v4430_v33, %v4430_v33 }
 0x2db   : > { %2382 = vadd.xlane.f32.xlu1 %v2381_v51 }
 0x2dc   : > { %v2303_v48 = vmul.f32 %v2287_v24, %v2268_v31  ;;  %v2378_v11 = vsel %vm439_vm0, %v2336_v36, 0.0 }
 0x2de   : > { %v4433_v59 = vadd.f32 %v4402_v34, %v2303_v48 }
 0x2e0   : > { %v2338_v19 = vmul.f32 %v4433_v59, %v4433_v59 }
 0x2e1   : > { %2376 = vadd.xlane.f32.xlu0 %v2375_v46 }
 0x2e2   : > { %v2384_v45 = vsel %vm439_vm0, %v2338_v19, 0.0 }
 0x2e3   : > { %2379 = vadd.xlane.f32.xlu1 %v2378_v11  ;;  %2385 = vadd.xlane.f32.xlu2 %v2384_v45 }
 0x2f7   : > { %v1920_v6 = vpop.xlane.xlu0 %1919 }
 0x2f8   : > { %v1957_v5 = vmul.f32 %v4312_v49, %v1920_v6 }
 0x2f9   : > { %v2007_v58 = vpop.xlane.xlu2 %2006 }
 0x2fa   : > { %v2053_v16 = vmul.f32 %v1957_v5, %v1957_v5  ;;  %v2037_v29 = vmul.f32 %v2007_v58, %v4312_v49  ;;  %v2261_v9 = vsub.f32 %v4254_v35, %v1957_v5 }
 0x2fc   : > { %v2069_v27 = vsub.f32 %v2037_v29, %v2053_v16 }
 0x2fe   : > { %v2085_v43 = vadd.f32 1e-05, %v2069_v27 }
 0x2ff   : > { %v1923_v0 = vpop.xlane.xlu1 %1922 }
 0x300   : > { %3253 = vrsqrt.f32 %v2085_v43  ;;  %vm2179_vm6 = vweird.f32 %v2085_v43  ;;  %v4456_v51 = vmul.f32 %v4312_v49, %v1923_v0 }
 0x302   : > { %v2054_v40 = vmul.f32 %v4456_v51, %v4456_v51 }
 0x306   : > { %v3254_v54 = vpop.eup %3253 }
 0x307   : > { %v2174_v44 = vmul.f32 %v3254_v54, %v2085_v43  ;;  %vm2180_vm5 = vweird.f32 %v3254_v54 }
 0x308   : > { %vm2181_vm10 = vmor %vm2179_vm6, %vm2180_vm5 }
 0x309   : > { %v2175_v4 = vmul.f32 %v3254_v54, %v2174_v44 }
 0x30b   : > { %v2176_v3 = vmul.f32 0.5, %v2175_v4 }
 0x30c   : > { %v1926_v17 = vpop.xlane.xlu2 %1925 }
 0x30d   : > { %v4444_v28 = vmul.f32 %v4312_v49, %v1926_v17  ;;  %v2177_v38 = vsub.f32 1.5, %v2176_v3 }
 0x30e   : > { %v2013_v23 = vpop.xlane.xlu1 %2012 }
 0x30f   : > { %v2055_v61 = vmul.f32 %v4444_v28, %v4444_v28  ;;  %v2039_v53 = vmul.f32 %v2013_v23, %v4312_v49  ;;  %v2178_v62 = vmul.f32 %v3254_v54, %v2177_v38 }
 0x311   : > { %v2071_v20 = vsub.f32 %v2039_v53, %v2055_v61  ;;  %v2182_v32 = vsel %vm2181_vm10, %v3254_v54, %v2178_v62 }
 0x312   : > { %v2280_v31 = vmul.f32 %v4386_v60, %v2182_v32 }
 0x313   : > { %v2087_v41 = vadd.f32 1e-05, %v2071_v20 }
 0x314   : > { %v1929_v39 = vpop.xlane.xlu0 %1928  ;;  %v2296_v19 = vmul.f32 %v2280_v31, %v2261_v9 }
 0x315   : > { %3255 = vrsqrt.f32 %v2087_v41  ;;  %v4450_v46 = vmul.f32 %v4312_v49, %v1929_v39  ;;  %vm2199_vm8 = vweird.f32 %v2087_v41 }
 0x316   : > { %v1914_v8 = vpop.xlane.xlu1 %1913  ;;  %v2016_v15 = vpop.xlane.xlu2 %2015  ;;  %v4470_v5 = vadd.f32 %v4402_v34, %v2296_v19 }
 0x317   : > { %v2056_v37 = vmul.f32 %v4450_v46, %v4450_v46  ;;  %v2040_v55 = vmul.f32 %v2016_v15, %v4312_v49  ;;  %v4473_v45 = vmul.f32 %v4312_v49, %v1914_v8 }
 0x318   : > { %v2331_v43 = vmul.f32 %v4470_v5, %v4470_v5 }
 0x319   : > { %v2072_v42 = vsub.f32 %v2040_v55, %v2056_v37  ;;  %v2051_v3 = vmul.f32 %v4473_v45, %v4473_v45 }
 0x31a   : > { %v2363_v17 = vsel %vm439_vm0, %v2331_v43, 0.0 }
 0x31b   : > { %v3256_v7 = vpop.eup %3255  ;;  %v4458_v18 = vadd.f32 1e-05, %v2072_v42  ;;  %2364 = vadd.xlane.f32.xlu1 %v2363_v17  ;;  %v2263_v42 = vsub.f32 %v4267_v50, %v4444_v28  ;;  %v2262_v28 = vsub.f32 %v4262_v56, %v4456_v51  ;;  %v2264_v51 = vsub.f32 %v4278_v22, %v4450_v46 }
 0x31c   : > { %v2194_v63 = vmul.f32 %v3256_v7, %v2087_v41  ;;  %v2010_v14 = vpop.xlane.xlu0 %2009  ;;  %vm2200_vm7 = vweird.f32 %v3256_v7 }
 0x31d   : > { %3257 = vrsqrt.f32 %v4458_v18  ;;  %v2038_v24 = vmul.f32 %v2010_v14, %v4312_v49  ;;  %vm2201_vm9 = vmor %vm2199_vm8, %vm2200_vm7  ;;  %vm2209_vm13 = vweird.f32 %v4458_v18 }
 0x31e   : > { %v2195_v52 = vmul.f32 %v3256_v7, %v2194_v63  ;;  %v2004_v48 = vpop.xlane.xlu1 %2003  ;;  %v1917_v36 = vpop.xlane.xlu2 %1916 }
 0x31f   : > { %v2070_v6 = vsub.f32 %v2038_v24, %v2054_v40  ;;  %v4467_v11 = vmul.f32 %v4312_v49, %v1917_v36  ;;  %v2036_v16 = vmul.f32 %v2004_v48, %v4312_v49 }
 0x320   : > { %v2196_v35 = vmul.f32 0.5, %v2195_v52 }
 0x321   : > { %v4475_v58 = vadd.f32 1e-05, %v2070_v6  ;;  %v2052_v29 = vmul.f32 %v4467_v11, %v4467_v11 }
 0x322   : > { %v2197_v27 = vsub.f32 1.5, %v2196_v35 }
 0x323   : > { %v4482_v54 = vpop.eup %3257  ;;  %3259 = vrsqrt.f32 %v4475_v58  ;;  %v2068_v0 = vsub.f32 %v2036_v16, %v2052_v29  ;;  %vm2189_vm15 = vweird.f32 %v4475_v58 }
 0x324   : > { %v2198_v44 = vmul.f32 %v3256_v7, %v2197_v27  ;;  %v2204_v4 = vmul.f32 %v4482_v54, %v4458_v18  ;;  %v2001_v23 = vpop.xlane.xlu0 %2000  ;;  %vm2210_vm11 = vweird.f32 %v4482_v54 }
 0x325   : > { %v4490_v61 = vadd.f32 1e-05, %v2068_v0  ;;  %v2035_v53 = vmul.f32 %v2001_v23, %v4312_v49  ;;  %vm2211_vm14 = vmor %vm2209_vm13, %vm2210_vm11 }
 0x326   : > { %v2205_v20 = vmul.f32 %v4482_v54, %v2204_v4  ;;  %v1995_v38 = vpop.xlane.xlu1 %1994  ;;  %v1908_v39 = vpop.xlane.xlu2 %1907  ;;  %v2202_v41 = vsel %vm2201_vm9, %v3256_v7, %v2198_v44 }
 0x327   : > { %3261 = vrsqrt.f32 %v4490_v61  ;;  %v2067_v8 = vsub.f32 %v2035_v53, %v2051_v3  ;;  %v4496_v62 = vmul.f32 %v4312_v49, %v1908_v39  ;;  %v2282_v37 = vmul.f32 %v4386_v60, %v2202_v41 }
 0x328   : > { %v2206_v15 = vmul.f32 0.5, %v2205_v20  ;;  %v2033_v63 = vmul.f32 %v1995_v38, %v4312_v49  ;;  %vm2169_vm3 = vweird.f32 %v4490_v61 }
 0x329   : > { %v3260_v55 = vpop.eup %3259  ;;  %v4501_v32 = vadd.f32 1e-05, %v2067_v8  ;;  %v2049_v7 = vmul.f32 %v4496_v62, %v4496_v62  ;;  %v2298_v31 = vmul.f32 %v2282_v37, %v2263_v42 }
 0x32a   : > { %v2184_v9 = vmul.f32 %v3260_v55, %v4475_v58  ;;  %v2207_v14 = vsub.f32 1.5, %v2206_v15  ;;  %vm2190_vm12 = vweird.f32 %v3260_v55 }
 0x32b   : > { %3263 = vrsqrt.f32 %v4501_v32  ;;  %v2065_v24 = vsub.f32 %v2033_v63, %v2049_v7  ;;  %v4512_v50 = vadd.f32 %v4402_v34, %v2298_v31  ;;  %vm2191_vm1 = vmor %vm2189_vm15, %vm2190_vm12  ;;  %vm2159_vm6 = vweird.f32 %v4501_v32 }
 0x32c   : > { %v2185_v40 = vmul.f32 %v3260_v55, %v2184_v9  ;;  %v1911_v52 = vpop.xlane.xlu0 %1910  ;;  %v2208_v27 = vmul.f32 %v4482_v54, %v2207_v14 }
 0x32d   : > { %v3262_v48 = vpop.eup %3261  ;;  %v4509_v36 = vmul.f32 %v4312_v49, %v1911_v52  ;;  %v4517_v35 = vadd.f32 1e-05, %v2065_v24  ;;  %v2333_v23 = vmul.f32 %v4512_v50, %v4512_v50 }
 0x32e   : > { %v2186_v19 = vmul.f32 0.5, %v2185_v40  ;;  %v2164_v6 = vmul.f32 %v3262_v48, %v4490_v61  ;;  %v1905_v16 = vpop.xlane.xlu1 %1904  ;;  %v1998_v29 = vpop.xlane.xlu2 %1997  ;;  %vm2170_vm2 = vweird.f32 %v3262_v48  ;;  %v2212_v46 = vsel %vm2211_vm14, %v4482_v54, %v2208_v27 }
 0x32f   : > { %v2050_v43 = vmul.f32 %v4509_v36, %v4509_v36  ;;  %v2034_v0 = vmul.f32 %v1998_v29, %v4312_v49  ;;  %3265 = vrsqrt.f32 %v4517_v35  ;;  %v2369_v22 = vsel %vm439_vm0, %v2333_v23, 0.0  ;;  %vm2171_vm4 = vmor %vm2169_vm3, %vm2170_vm2 }
 0x330   : > { %v2187_v44 = vsub.f32 1.5, %v2186_v19  ;;  %v2165_v4 = vmul.f32 %v3262_v48, %v2164_v6  ;;  %2370 = vadd.xlane.f32.xlu2 %v2369_v22  ;;  %v2283_v8 = vmul.f32 %v4386_v60, %v2212_v46  ;;  %v4548_v63 = vmul.f32 %v4312_v49, %v1905_v16 }
 0x331   : > { %v4525_v56 = vpop.eup %3263  ;;  %v2066_v17 = vsub.f32 %v2034_v0, %v2050_v43  ;;  %v2260_v61 = vsub.f32 %v4285_v21, %v4467_v11  ;;  %v2257_v46 = vsub.f32 %v4296_v1, %v4496_v62  ;;  %vm2139_vm8 = vweird.f32 %v4517_v35 }
 0x332   : > { %v2188_v3 = vmul.f32 %v3260_v55, %v2187_v44  ;;  %v2166_v53 = vmul.f32 0.5, %v2165_v4  ;;  %v2154_v20 = vmul.f32 %v4525_v56, %v4501_v32  ;;  %v2299_v31 = vmul.f32 %v2283_v8, %v2264_v51 }
 0x333   : > { %v4535_v38 = vadd.f32 1e-05, %v2066_v17  ;;  %vm2160_vm5 = vweird.f32 %v4525_v56  ;;  %v2048_v11 = vmul.f32 %v4548_v63, %v4548_v63 }
 0x334   : > { %v2167_v18 = vsub.f32 1.5, %v2166_v53  ;;  %v2155_v39 = vmul.f32 %v4525_v56, %v2154_v20  ;;  %v1902_v41 = vpop.xlane.xlu0 %1901  ;;  %v2192_v58 = vsel %vm2191_vm1, %v3260_v55, %v2188_v3  ;;  %v2259_v55 = vsub.f32 %v4275_v26, %v4473_v45  ;;  %vm4570_vm10 = vmor %vm2159_vm6, %vm2160_vm5 }
 0x335   : > { %3267 = vrsqrt.f32 %v4535_v38  ;;  %v4544_v15 = vmul.f32 %v4312_v49, %v1902_v41  ;;  %v2281_v37 = vmul.f32 %v4386_v60, %v2192_v58  ;;  %v3266_v42 = vpop.eup %3265  ;;  %v4562_v26 = vadd.f32 %v4402_v34, %v2299_v31 }
 0x336   : > { %v2168_v9 = vmul.f32 %v3262_v48, %v2167_v18  ;;  %v2156_v54 = vmul.f32 0.5, %v2155_v39  ;;  %v1896_v7 = vpop.xlane.xlu1 %1895  ;;  %v1989_v14 = vpop.xlane.xlu2 %1988  ;;  %v2134_v40 = vmul.f32 %v3266_v42, %v4517_v35  ;;  %vm2140_vm7 = vweird.f32 %v3266_v42 }
 0x337   : > { %v2047_v24 = vmul.f32 %v4544_v15, %v4544_v15  ;;  %v2031_v6 = vmul.f32 %v1989_v14, %v4312_v49  ;;  %v2297_v45 = vmul.f32 %v2281_v37, %v2262_v28  ;;  %v2334_v4 = vmul.f32 %v4562_v26, %v4562_v26  ;;  %vm2141_vm9 = vmor %vm2139_vm8, %vm2140_vm7 }
 0x338   : > { %v2172_v52 = vsel %vm2171_vm4, %v3262_v48, %v2168_v9  ;;  %v2157_v19 = vsub.f32 1.5, %v2156_v54  ;;  %v2135_v29 = vmul.f32 %v3266_v42, %v2134_v40  ;;  %v4608_v35 = vmul.f32 %v4312_v49, %v1896_v7 }
 0x339   : > { %v2279_v16 = vmul.f32 %v4386_v60, %v2172_v52  ;;  %v2063_v48 = vsub.f32 %v2031_v6, %v2047_v24  ;;  %v4577_v28 = vadd.f32 %v4402_v34, %v2297_v45  ;;  %v2372_v53 = vsel %vm439_vm0, %v2334_v4, 0.0 }
 0x33a   : > { %v2158_v21 = vmul.f32 %v4525_v56, %v2157_v19  ;;  %v2136_v44 = vmul.f32 0.5, %v2135_v29  ;;  %2373 = vadd.xlane.f32.xlu0 %v2372_v53  ;;  %vm2149_vm12 = vweird.f32 %v4535_v38 }
 0x33b   : > { %v4568_v27 = vpop.eup %3267  ;;  %v2295_v43 = vmul.f32 %v2279_v16, %v2260_v61  ;;  %v4581_v51 = vadd.f32 1e-05, %v2063_v48  ;;  %v2332_v22 = vmul.f32 %v4577_v28, %v4577_v28 }
 0x33c   : > { %v2144_v32 = vmul.f32 %v4568_v27, %v4535_v38  ;;  %v1992_v17 = vpop.xlane.xlu0 %1991  ;;  %v2162_v23 = vsel %vm4570_vm10, %v4525_v56, %v2158_v21  ;;  %v2137_v3 = vsub.f32 1.5, %v2136_v44  ;;  %vm2150_vm11 = vweird.f32 %v4568_v27 }
 0x33d   : > { %v2032_v20 = vmul.f32 %v1992_v17, %v4312_v49  ;;  %3269 = vrsqrt.f32 %v4581_v51  ;;  %v4595_v41 = vadd.f32 %v4402_v34, %v2295_v43  ;;  %v2366_v37 = vsel %vm439_vm0, %v2332_v22, 0.0  ;;  %vm2151_vm13 = vmor %vm2149_vm12, %vm2150_vm11 }
 0x33e   : > { %v2145_v18 = vmul.f32 %v4568_v27, %v2144_v32  ;;  %v1899_v39 = vpop.xlane.xlu2 %1898  ;;  %v2138_v56 = vmul.f32 %v3266_v42, %v2137_v3  ;;  %v1986_v58 = vpop.xlane.xlu1 %1985  ;;  %2367 = vadd.xlane.f32.xlu2 %v2366_v37  ;;  %v2278_v54 = vmul.f32 %v4386_v60, %v2162_v23  ;;  %v2045_v21 = vmul.f32 %v4608_v35, %v4608_v35 }
 0x33f   : > { %v2064_v8 = vsub.f32 %v2032_v20, %v2048_v11  ;;  %v4601_v1 = vmul.f32 %v4312_v49, %v1899_v39  ;;  %v2330_v62 = vmul.f32 %v4595_v41, %v4595_v41  ;;  %v2030_v24 = vmul.f32 %v1986_v58, %v4312_v49 }
 0x340   : > { %v2146_v9 = vmul.f32 0.5, %v2145_v18  ;;  %v2142_v14 = vsel %vm2141_vm9, %v3266_v42, %v2138_v56  ;;  %v2294_v42 = vmul.f32 %v2278_v54, %v2259_v55  ;;  %v2258_v23 = vsub.f32 %v4307_v10, %v4509_v36 }
 0x341   : > { %v4610_v31 = vadd.f32 1e-05, %v2064_v8  ;;  %v2276_v61 = vmul.f32 %v4386_v60, %v2142_v14  ;;  %v2046_v52 = vmul.f32 %v4601_v1, %v4601_v1  ;;  %v2360_v19 = vsel %vm439_vm0, %v2330_v62, 0.0 }
 0x342   : > { %v2147_v40 = vsub.f32 1.5, %v2146_v9  ;;  %2361 = vadd.xlane.f32.xlu1 %v2360_v19  ;;  %v4627_v55 = vadd.f32 %v4402_v34, %v2294_v42  ;;  %vm2119_vm15 = vweird.f32 %v4581_v51  ;;  %v2255_v19 = vsub.f32 %v4330_v30, %v4544_v15 }
 0x343   : > { %3271 = vrsqrt.f32 %v4610_v31  ;;  %v3270_v6 = vpop.eup %3269  ;;  %v2292_v16 = vmul.f32 %v2276_v61, %v2257_v46  ;;  %v2062_v29 = vsub.f32 %v2030_v24, %v2046_v52  ;;  %vm2129_vm3 = vweird.f32 %v4610_v31 }
 0x344   : > { %v2148_v7 = vmul.f32 %v4568_v27, %v2147_v40  ;;  %v1983_v45 = vpop.xlane.xlu0 %1982  ;;  %v2114_v11 = vmul.f32 %v3270_v6, %v4581_v51  ;;  %v2329_v17 = vmul.f32 %v4627_v55, %v4627_v55  ;;  %vm2120_vm14 = vweird.f32 %v3270_v6 }
 0x345   : > { %v2029_v48 = vmul.f32 %v1983_v45, %v4312_v49  ;;  %v4629_v43 = vadd.f32 1e-05, %v2062_v29  ;;  %v4632_v38 = vadd.f32 %v4402_v34, %v2292_v16  ;;  %vm2121_vm1 = vmor %vm2119_vm15, %vm2120_vm14  ;;  %v2256_v15 = vsub.f32 %v4320_v2, %v4548_v63 }
 0x346   : > { %v2761_v0 = vpop.xlane.xlu2 %2760  ;;  %v2152_v44 = vsel %vm2151_vm13, %v4568_v27, %v2148_v7  ;;  %v2115_v4 = vmul.f32 %v3270_v6, %v2114_v11  ;;  %v2357_v27 = vsel %vm439_vm0, %v2329_v17, 0.0 }
 0x347   : > { %v2061_v32 = vsub.f32 %v2029_v48, %v2045_v21  ;;  %3273 = vrsqrt.f32 %v4629_v43  ;;  %v2327_v3 = vmul.f32 %v4632_v38, %v4632_v38  ;;  %v2277_v53 = vmul.f32 %v4386_v60, %v2152_v44  ;;  %2358 = vadd.xlane.f32.xlu0 %v2357_v27 }
 0x348   : > { %v2116_v22 = vmul.f32 0.5, %v2115_v4  ;;  %v4647_v18 = vmul.f32 %v2761_v0, %v4312_v49  ;;  %vm2109_vm6 = vweird.f32 %v4629_v43 }
 0x349   : > { %v3272_v20 = vpop.eup %3271  ;;  %v4643_v46 = vadd.f32 1e-05, %v2061_v32  ;;  %v2351_v10 = vsel %vm439_vm0, %v2327_v3, 0.0  ;;  %v2293_v56 = vmul.f32 %v2277_v53, %v2258_v23 }
 0x34a   : > { %v2124_v39 = vmul.f32 %v3272_v20, %v4610_v31  ;;  %v2117_v36 = vsub.f32 1.5, %v2116_v22  ;;  %2352 = vadd.xlane.f32.xlu2 %v2351_v10  ;;  %v2768_v9 = vmul.f32 %v4647_v18, %v4647_v18  ;;  %vm2130_vm2 = vweird.f32 %v3272_v20 }
 0x34b   : > { %3275 = vrsqrt.f32 %v4643_v46  ;;  %v4656_v54 = vadd.f32 %v4402_v34, %v2293_v56  ;;  %vm2131_vm4 = vmor %vm2129_vm3, %vm2130_vm2  ;;  %vm2099_vm8 = vweird.f32 %v4643_v46 }
 0x34c   : > { %v2125_v8 = vmul.f32 %v3272_v20, %v2124_v39  ;;  %v2766_v58 = vpop.xlane.xlu0 %2765  ;;  %v2118_v37 = vmul.f32 %v3270_v6, %v2117_v36 }
 0x34d   : > { %v2767_v62 = vmul.f32 %v2766_v58, %v4312_v49  ;;  %v3274_v14 = vpop.eup %3273  ;;  %v2328_v52 = vmul.f32 %v4656_v54, %v4656_v54 }
 0x34e   : > { %v2126_v61 = vmul.f32 0.5, %v2125_v8  ;;  %v2104_v40 = vmul.f32 %v3274_v14, %v4629_v43  ;;  %v2122_v49 = vsel %vm2121_vm1, %v3270_v6, %v2118_v37  ;;  %vm2110_vm5 = vweird.f32 %v3274_v14  ;;  %v2383_v56 = vpop.xlane.xlu1 %2382 }
 0x34f   : > { %v2769_v24 = vsub.f32 %v2767_v62, %v2768_v9  ;;  %v2354_v45 = vsel %vm439_vm0, %v2328_v52, 0.0  ;;  %v2274_v51 = vmul.f32 %v4386_v60, %v2122_v49  ;;  %vm2111_vm10 = vmor %vm2109_vm6, %vm2110_vm5 }
 0x350   : > { %v2127_v42 = vsub.f32 1.5, %v2126_v61  ;;  %v2105_v7 = vmul.f32 %v3274_v14, %v2104_v40  ;;  %2355 = vadd.xlane.f32.xlu0 %v2354_v45 }
 0x351   : > { %v3276_v16 = vpop.eup %3275  ;;  %v2770_v29 = vadd.f32 1e-05, %v2769_v24  ;;  %v2290_v30 = vmul.f32 %v2274_v51, %v2255_v19 }
 0x352   : > { %v2128_v21 = vmul.f32 %v3272_v20, %v2127_v42  ;;  %v2094_v11 = vmul.f32 %v3276_v16, %v4643_v46  ;;  %v2106_v48 = vmul.f32 0.5, %v2105_v7  ;;  %vm2100_vm7 = vweird.f32 %v3276_v16 }
 0x353   : > { %3277 = vrsqrt.f32 %v2770_v29  ;;  %v4671_v4 = vadd.f32 %v4402_v34, %v2290_v30  ;;  %vm2101_vm9 = vmor %vm2099_vm8, %vm2100_vm7  ;;  %vm2777_vm12 = vweird.f32 %v2770_v29 }
 0x354   : > { %v2095_v6 = vmul.f32 %v3276_v16, %v2094_v11  ;;  %v2132_v0 = vsel %vm2131_vm4, %v3272_v20, %v2128_v21  ;;  %v2107_v44 = vsub.f32 1.5, %v2106_v48  ;;  %v2254_v20 = vsub.f32 %v4356_v12, %v4601_v1  ;;  %v2377_v42 = vpop.xlane.xlu0 %2376 }
 0x355   : > { %v2275_v32 = vmul.f32 %v4386_v60, %v2132_v0  ;;  %v2325_v23 = vmul.f32 %v4671_v4, %v4671_v4  ;;  %v2253_v1 = vsub.f32 %v4343_v13, %v4608_v35  ;;  %v3138_v13 = vld [vmem:[%s4834_s7 + $0x1] ss:$0 sm:$0xff]  ;;  %v2399_v45 = vmax.f32 %v2377_v42, 1e-24 }
 0x356   : > { %v2096_v31 = vmul.f32 0.5, %v2095_v6  ;;  %v2108_v17 = vmul.f32 %v3274_v14, %v2107_v44 }
 0x357   : > { %v2291_v3 = vmul.f32 %v2275_v32, %v2256_v15  ;;  %v2345_v22 = vsel %vm439_vm0, %v2325_v23, 0.0  ;;  %v2380_v15 = vpop.xlane.xlu1 %2379  ;;  %vm2529_vm6 = vweird.f32 %v2399_v45 }
 0x358   : > { %v2097_v53 = vsub.f32 1.5, %v2096_v31  ;;  %v2112_v63 = vsel %vm2111_vm10, %v3274_v14, %v2108_v17  ;;  %2346 = vadd.xlane.f32.xlu1 %v2345_v22  ;;  %v2401_v14 = vmax.f32 %v2383_v56, 1e-24  ;;  %v2400_v6 = vmax.f32 %v2380_v15, 1e-24 }
 0x359   : > { %v3278_v2 = vpop.eup %3277  ;;  %v4681_v27 = vadd.f32 %v4402_v34, %v2291_v3  ;;  %v2273_v39 = vmul.f32 %v4386_v60, %v2112_v63 }
 0x35a   : > { %v2098_v43 = vmul.f32 %v3276_v16, %v2097_v53  ;;  %v2772_v10 = vmul.f32 %v3278_v2, %v2770_v29  ;;  %vm2778_vm11 = vweird.f32 %v3278_v2  ;;  %3279 = vrsqrt.f32 %v2401_v14  ;;  %v3139_v29 = vld [vmem:[%s4835_s8 + $0x1] ss:$0 sm:$0xff] }
 0x35b   : > { %v2326_v36 = vmul.f32 %v4681_v27, %v4681_v27  ;;  %v2289_v8 = vmul.f32 %v2273_v39, %v2254_v20  ;;  %vm2779_vm13 = vmor %vm2777_vm12, %vm2778_vm11  ;;  %3281 = vrsqrt.f32 %v2399_v45  ;;  %vm2549_vm15 = vweird.f32 %v2401_v14 }
 0x35c   : > { %v2773_v58 = vmul.f32 %v3278_v2, %v2772_v10  ;;  %v2102_v12 = vsel %vm2101_vm9, %v3276_v16, %v2098_v43  ;;  %3283 = vrsqrt.f32 %v2400_v6  ;;  %vm2539_vm8 = vweird.f32 %v2400_v6 }
 0x35d   : > { %v2348_v37 = vsel %vm439_vm0, %v2326_v36, 0.0  ;;  %v2272_v9 = vmul.f32 %v4386_v60, %v2102_v12  ;;  %v4692_v46 = vadd.f32 %v4402_v34, %v2289_v8 }
 0x35e   : > { %v2774_v62 = vmul.f32 0.5, %v2773_v58  ;;  %2349 = vadd.xlane.f32.xlu2 %v2348_v37 }
 0x35f   : > { %v2288_v61 = vmul.f32 %v2272_v9, %v2253_v1  ;;  %v2324_v24 = vmul.f32 %v4692_v46, %v4692_v46 }
 0x360   : > { %v2775_v40 = vsub.f32 1.5, %v2774_v62  ;;  %v3280_v21 = vpop.eup %3279 }
 0x361   : > { %v4697_v52 = vadd.f32 %v4402_v34, %v2288_v61  ;;  %v2342_v35 = vsel %vm439_vm0, %v2324_v24, 0.0  ;;  %v2781_v34 = vsub.f32 %v4391_v57, %v4647_v18  ;;  %v2544_v30 = vmul.f32 %v3280_v21, %v2401_v14  ;;  %v2386_v57 = vpop.xlane.xlu2 %2385  ;;  %v3282_v32 = vpop.eup %3281 }
 0x362   : > { %v2776_v60 = vmul.f32 %v3278_v2, %v2775_v40  ;;  %2343 = vadd.xlane.f32.xlu1 %v2342_v35  ;;  %v2402_v0 = vmax.f32 %v2386_v57, 1e-24  ;;  %v2524_v17 = vmul.f32 %v3282_v32, %v2399_v45  ;;  %v3284_v23 = vpop.eup %3283  ;;  %vm2550_vm14 = vweird.f32 %v3280_v21 }
 0x363   : > { %v2323_v19 = vmul.f32 %v4697_v52, %v4697_v52  ;;  %v2545_v44 = vmul.f32 %v3280_v21, %v2544_v30  ;;  %v2534_v20 = vmul.f32 %v3284_v23, %v2400_v6  ;;  %vm2551_vm2 = vmor %vm2549_vm15, %vm2550_vm14  ;;  %vm2530_vm5 = vweird.f32 %v3282_v32 }
 0x364   : > { %v2780_v49 = vsel %vm2779_vm13, %v3278_v2, %v2776_v60  ;;  %3285 = vrsqrt.f32 %v2402_v0  ;;  %v2525_v63 = vmul.f32 %v3282_v32, %v2524_v17  ;;  %vm2559_vm3 = vweird.f32 %v2402_v0  ;;  %vm2531_vm7 = vmor %vm2529_vm6, %vm2530_vm5 }
 0x365   : > { %v2339_v16 = vsel %vm439_vm0, %v2323_v19, 0.0  ;;  %v2785_v7 = vmul.f32 %v3138_v13, %v2780_v49  ;;  %v2546_v31 = vmul.f32 0.5, %v2545_v44  ;;  %v2535_v36 = vmul.f32 %v3284_v23, %v2534_v20 }
 0x366   : > { %2340 = vadd.xlane.f32.xlu0 %v2339_v16  ;;  %v2526_v10 = vmul.f32 0.5, %v2525_v63  ;;  %vm2540_vm10 = vweird.f32 %v3284_v23 }
 0x367   : > { %v2786_v51 = vmul.f32 %v2785_v7, %v2781_v34  ;;  %v2547_v53 = vsub.f32 1.5, %v2546_v31  ;;  %v2536_v1 = vmul.f32 0.5, %v2535_v36  ;;  %vm2541_vm9 = vmor %vm2539_vm8, %vm2540_vm10 }
 0x368   : > { %v2527_v12 = vsub.f32 1.5, %v2526_v10 }
 0x369   : > { %v4711_v11 = vadd.f32 %v3139_v29, %v2786_v51  ;;  %v2548_v43 = vmul.f32 %v3280_v21, %v2547_v53  ;;  %v2537_v61 = vsub.f32 1.5, %v2536_v1 }
 0x36a   : > { %v3286_v3 = vpop.eup %3285  ;;  %v2528_v24 = vmul.f32 %v3282_v32, %v2527_v12 }
 0x36b   : > { %v2791_v48 = vmul.f32 %v4711_v11, %v4711_v11  ;;  %v2554_v2 = vmul.f32 %v3286_v3, %v2402_v0  ;;  %vm2560_vm1 = vweird.f32 %v3286_v3  ;;  %v2552_v8 = vsel %vm2551_vm2, %v3280_v21, %v2548_v43 }
 0x36c   : > { %vm2561_vm4 = vmor %vm2559_vm3, %vm2560_vm1  ;;  %v2577_v9 = vmul.f32 %v2552_v8, %v4418_v47  ;;  %v2532_v13 = vsel %vm2531_vm7, %v3282_v32, %v2528_v24  ;;  %v2538_v60 = vmul.f32 %v3284_v23, %v2537_v61 }
 0x36d   : > { %v2792_v18 = vsel %vm439_vm0, %v2791_v48, 0.0  ;;  %v2555_v22 = vmul.f32 %v3286_v3, %v2554_v2  ;;  %v2575_v19 = vmul.f32 %v2532_v13, %v4407_v25 }
 0x36e   : > { %2793 = vadd.xlane.f32.xlu2 %v2792_v18  ;;  %v2542_v35 = vsel %vm2541_vm9, %v3284_v23, %v2538_v60 }
 0x36f   : > { %v2556_v39 = vmul.f32 0.5, %v2555_v22  ;;  %v2576_v47 = vmul.f32 %v2542_v35, %v4430_v33 }
 0x371   : > { %v2557_v56 = vsub.f32 1.5, %v2556_v39 }
 0x373   : > { %v2558_v58 = vmul.f32 %v3286_v3, %v2557_v56 }
 0x375   : > { %v2562_v37 = vsel %vm2561_vm4, %v3286_v3, %v2558_v58 }
 0x376   : > { %v2578_v62 = vmul.f32 %v2562_v37, %v4433_v59  ;;  %v2814_v59 = vpack.c.bf16 %v2576_v47, %v2575_v19 }
 0x378   : > { %v2815_v40 = vpack.c.bf16 %v2578_v62, %v2577_v9  ;;  %v2838_v42 = vsel %vm439_vm0, %v2814_v59, 0 }
 0x37a   : > { %v2841_v14 = vsel %vm439_vm0, %v2815_v40, 0 }
 0x37b   : > { %2843 = vmatpush.bf16.xpose.msrb.mxu2 %v2841_v14 }
 0x383   : > { %2844 = vmatpush.bf16.xpose.msrb.mxu2 %v2838_v42 }
 0x38e   : > { %v2365_v49 = vpop.xlane.xlu1 %2364 }
 0x38f   : > { %v4722_v34 = vmax.f32 %v2365_v49, 1e-24 }
 0x391   : > { %vm2489_vm6 = vweird.f32 %v4722_v34 }
 0x3a3   : > { %v2371_v16 = vpop.xlane.xlu2 %2370 }
 0x3a4   : > { %v2397_v7 = vmax.f32 %v2371_v16, 1e-24 }
 0x3a6   : > { %3287 = vrsqrt.f32 %v2397_v7  ;;  %vm2509_vm12 = vweird.f32 %v2397_v7 }
 0x3a7   : > { %3289 = vrsqrt.f32 %v4722_v34 }
 0x3ac   : > { %v3288_v29 = vpop.eup %3287 }
 0x3ad   : > { %v4725_v45 = vpop.eup %3289  ;;  %v2504_v51 = vmul.f32 %v3288_v29, %v2397_v7  ;;  %v2374_v21 = vpop.xlane.xlu0 %2373  ;;  %vm2510_vm11 = vweird.f32 %v3288_v29 }
 0x3ae   : > { %v2398_v25 = vmax.f32 %v2374_v21, 1e-24  ;;  %v2484_v30 = vmul.f32 %v4725_v45, %v4722_v34  ;;  %vm4740_vm13 = vmor %vm2509_vm12, %vm2510_vm11  ;;  %vm2490_vm2 = vweird.f32 %v4725_v45 }
 0x3af   : > { %v2505_v48 = vmul.f32 %v3288_v29, %v2504_v51  ;;  %vm2491_vm10 = vmor %vm2489_vm6, %vm2490_vm2 }
 0x3b0   : > { %3291 = vrsqrt.f32 %v2398_v25  ;;  %v2485_v6 = vmul.f32 %v4725_v45, %v2484_v30  ;;  %vm2519_vm15 = vweird.f32 %v2398_v25 }
 0x3b1   : > { %v2368_v33 = vpop.xlane.xlu2 %2367  ;;  %v2506_v57 = vmul.f32 0.5, %v2505_v48 }
 0x3b2   : > { %v2396_v15 = vmax.f32 %v2368_v33, 1e-24  ;;  %v2486_v23 = vmul.f32 0.5, %v2485_v6 }
 0x3b3   : > { %v2507_v32 = vsub.f32 1.5, %v2506_v57 }
 0x3b4   : > { %3293 = vrsqrt.f32 %v2396_v15  ;;  %v2487_v56 = vsub.f32 1.5, %v2486_v23  ;;  %vm2499_vm4 = vweird.f32 %v2396_v15 }
 0x3b5   : > { %v2362_v18 = vpop.xlane.xlu1 %2361  ;;  %v2508_v22 = vmul.f32 %v3288_v29, %v2507_v32 }
 0x3b6   : > { %v4730_v0 = vmax.f32 %v2362_v18, 1e-24  ;;  %v3292_v44 = vpop.eup %3291  ;;  %v2488_v40 = vmul.f32 %v4725_v45, %v2487_v56 }
 0x3b7   : > { %v2514_v31 = vmul.f32 %v3292_v44, %v2398_v25  ;;  %vm2520_vm14 = vweird.f32 %v3292_v44  ;;  %v2512_v37 = vsel %vm4740_vm13, %v3288_v29, %v2508_v22 }
 0x3b8   : > { %3295 = vrsqrt.f32 %v4730_v0  ;;  %vm2521_vm3 = vmor %vm2519_vm15, %vm2520_vm14  ;;  %v2573_v59 = vmul.f32 %v2512_v37, %v4512_v50  ;;  %vm2479_vm9 = vweird.f32 %v4730_v0 }
 0x3b9   : > { %v2515_v3 = vmul.f32 %v3292_v44, %v2514_v31 }
 0x3ba   : > { %v3294_v17 = vpop.eup %3293  ;;  %v2359_v2 = vpop.xlane.xlu0 %2358 }
 0x3bb   : > { %v2494_v53 = vmul.f32 %v3294_v17, %v2396_v15  ;;  %v4733_v63 = vmax.f32 %v2359_v2, 1e-24  ;;  %v2516_v39 = vmul.f32 0.5, %v2515_v3  ;;  %vm2500_vm1 = vweird.f32 %v3294_v17 }
 0x3bc   : > { %vm4752_vm5 = vmor %vm2499_vm4, %vm2500_vm1 }
 0x3bd   : > { %v2353_v20 = vpop.xlane.xlu2 %2352  ;;  %v2495_v43 = vmul.f32 %v3294_v17, %v2494_v53  ;;  %3297 = vrsqrt.f32 %v4733_v63  ;;  %v2517_v58 = vsub.f32 1.5, %v2516_v39  ;;  %vm2469_vm12 = vweird.f32 %v4733_v63 }
 0x3be   : > { %v4735_v10 = vmax.f32 %v2353_v20, 1e-24  ;;  %v4737_v36 = vpop.eup %3295 }
 0x3bf   : > { %v2496_v12 = vmul.f32 0.5, %v2495_v43  ;;  %v2474_v1 = vmul.f32 %v4737_v36, %v4730_v0  ;;  %v2518_v61 = vmul.f32 %v3292_v44, %v2517_v58  ;;  %vm2480_vm7 = vweird.f32 %v4737_v36 }
 0x3c0   : > { %3299 = vrsqrt.f32 %v4735_v10  ;;  %vm4776_vm11 = vmor %vm2479_vm9, %vm2480_vm7  ;;  %vm2449_vm15 = vweird.f32 %v4735_v10 }
 0x3c1   : > { %v2497_v9 = vsub.f32 1.5, %v2496_v12  ;;  %v2475_v62 = vmul.f32 %v4737_v36, %v2474_v1  ;;  %v2522_v13 = vsel %vm2521_vm3, %v3292_v44, %v2518_v61 }
 0x3c2   : > { %v2574_v42 = vmul.f32 %v2522_v13, %v4562_v26  ;;  %v2492_v26 = vsel %vm2491_vm10, %v4725_v45, %v2488_v40 }
 0x3c3   : > { %v2476_v24 = vmul.f32 0.5, %v2475_v62  ;;  %v2356_v14 = vpop.xlane.xlu0 %2355  ;;  %v2498_v60 = vmul.f32 %v3294_v17, %v2497_v9  ;;  %v3298_v35 = vpop.eup %3297  ;;  %v2571_v30 = vmul.f32 %v2492_v26, %v4470_v5 }
 0x3c4   : > { %v2392_v47 = vmax.f32 %v2356_v14, 1e-24  ;;  %v2464_v49 = vmul.f32 %v3298_v35, %v4733_v63  ;;  %v2813_v29 = vpack.c.bf16 %v2574_v42, %v2573_v59  ;;  %vm2470_vm8 = vweird.f32 %v3298_v35 }
 0x3c5   : > { %v2502_v16 = vsel %vm4752_vm5, %v3294_v17, %v2498_v60  ;;  %v2477_v51 = vsub.f32 1.5, %v2476_v24  ;;  %vm2471_vm13 = vmor %vm2469_vm12, %vm2470_vm8 }
 0x3c6   : > { %v4762_v7 = vpop.eup %3299  ;;  %3301 = vrsqrt.f32 %v2392_v47  ;;  %v2465_v21 = vmul.f32 %v3298_v35, %v2464_v49  ;;  %v2835_v34 = vsel %vm439_vm0, %v2813_v29, 0  ;;  %v2572_v25 = vmul.f32 %v2502_v16, %v4577_v28 }
 0x3c7   : > { %v2444_v50 = vmul.f32 %v4762_v7, %v4735_v10  ;;  %2845 = vmatpush.bf16.xpose.msrb.mxu2 %v2835_v34  ;;  %v2478_v6 = vmul.f32 %v4737_v36, %v2477_v51  ;;  %vm2450_vm14 = vweird.f32 %v4762_v7  ;;  %vm2459_vm3 = vweird.f32 %v2392_v47 }
 0x3c8   : > { %v2466_v48 = vmul.f32 0.5, %v2465_v21  ;;  %v2812_v32 = vpack.c.bf16 %v2572_v25, %v2571_v30  ;;  %vm4790_vm2 = vmor %vm2449_vm15, %vm2450_vm14 }
 0x3c9   : > { %v2445_v33 = vmul.f32 %v4762_v7, %v2444_v50  ;;  %v2482_v0 = vsel %vm4776_vm11, %v4737_v36, %v2478_v6  ;;  %v2864_v36 = vlaneseq }
 0x3ca   : > { %v2467_v15 = vsub.f32 1.5, %v2466_v48  ;;  %v2832_v2 = vsel %vm439_vm0, %v2812_v32, 0  ;;  %v2570_v43 = vmul.f32 %v2482_v0, %v4595_v41 }
 0x3cb   : > { %v2446_v57 = vmul.f32 0.5, %v2445_v33  ;;  %v2347_v18 = vpop.xlane.xlu1 %2346 }
 0x3cc   : > { %v3302_v44 = vpop.eup %3301  ;;  %v2389_v45 = vmax.f32 %v2347_v18, 1e-24  ;;  %v2468_v5 = vmul.f32 %v3298_v35, %v2467_v15 }
 0x3cd   : > { %v2447_v31 = vsub.f32 1.5, %v2446_v57  ;;  %v2454_v17 = vmul.f32 %v3302_v44, %v2392_v47  ;;  %vm2460_vm1 = vweird.f32 %v3302_v44 }
 0x3ce   : > { %3303 = vrsqrt.f32 %v2389_v45  ;;  %v2472_v53 = vsel %vm2471_vm13, %v3298_v35, %v2468_v5  ;;  %vm2461_vm4 = vmor %vm2459_vm3, %vm2460_vm1  ;;  %vm2429_vm6 = vweird.f32 %v2389_v45 }
 0x3cf   : > { %v2455_v23 = vmul.f32 %v3302_v44, %v2454_v17  ;;  %v2569_v22 = vmul.f32 %v2472_v53, %v4627_v55  ;;  %2846 = vmatpush.bf16.xpose.msrb.mxu2 %v2832_v2  ;;  %v2448_v39 = vmul.f32 %v4762_v7, %v2447_v31 }
 0x3d1   : > { %v2350_v3 = vpop.xlane.xlu2 %2349  ;;  %v2456_v63 = vmul.f32 0.5, %v2455_v23  ;;  %v2811_v58 = vpack.c.bf16 %v2570_v43, %v2569_v22  ;;  %v2452_v37 = vsel %vm4790_vm2, %v4762_v7, %v2448_v39  ;;  %v3140_v39 = vld [vmem:[%s4829_s2] ss:$0 sm:$0xff] }
 0x3d2   : > { %v2390_v20 = vmax.f32 %v2350_v3, 1e-24  ;;  %v2567_v14 = vmul.f32 %v2452_v37, %v4632_v38 }
 0x3d3   : > { %v2457_v56 = vsub.f32 1.5, %v2456_v63  ;;  %v2829_v40 = vsel %vm439_vm0, %v2811_v58, 0 }
 0x3d4   : > { %3305 = vrsqrt.f32 %v2390_v20  ;;  %v3304_v8 = vpop.eup %3303  ;;  %vm2439_vm8 = vweird.f32 %v2390_v20 }
 0x3d5   : > { %v2344_v55 = vpop.xlane.xlu1 %2343  ;;  %v2424_v12 = vmul.f32 %v3304_v8, %v2389_v45  ;;  %v2458_v9 = vmul.f32 %v3302_v44, %v2457_v56  ;;  %vm2430_vm5 = vweird.f32 %v3304_v8 }
 0x3d6   : > { %v2388_v1 = vmax.f32 %v2344_v55, 1e-24  ;;  %vm2431_vm7 = vmor %vm2429_vm6, %vm2430_vm5  ;;  %v2865_v55 = vand.u32 127, %v2864_v36 }
 0x3d7   : > { %v2425_v41 = vmul.f32 %v3304_v8, %v2424_v12  ;;  %v2462_v62 = vsel %vm2461_vm4, %v3302_v44, %v2458_v9  ;;  %2847 = vmatpush.bf16.xpose.msrb.mxu2 %v2829_v40 }
 0x3d8   : > { %3307 = vrsqrt.f32 %v2388_v1  ;;  %v2568_v13 = vmul.f32 %v2462_v62, %v4656_v54  ;;  %vm2419_vm12 = vweird.f32 %v2388_v1  ;;  %vm2869_vm5 = vcmp.eq.s32.totalorder %v2865_v55, 16 }
 0x3d9   : > { %v2341_v10 = vpop.xlane.xlu0 %2340  ;;  %v2426_v60 = vmul.f32 0.5, %v2425_v41 }
 0x3da   : > { %v3306_v61 = vpop.eup %3305  ;;  %v2387_v24 = vmax.f32 %v2341_v10, 1e-24  ;;  %v2810_v19 = vpack.c.bf16 %v2568_v13, %v2567_v14 }
 0x3db   : > { %v2434_v35 = vmul.f32 %v3306_v61, %v2390_v20  ;;  %v2427_v47 = vsub.f32 1.5, %v2426_v60  ;;  %vm2440_vm10 = vweird.f32 %v3306_v61 }
 0x3dc   : > { %3309 = vrsqrt.f32 %v2387_v24  ;;  %v2826_v29 = vsel %vm439_vm0, %v2810_v19, 0  ;;  %vm2441_vm9 = vmor %vm2439_vm8, %vm2440_vm10  ;;  %vm2409_vm15 = vweird.f32 %v2387_v24 }
 0x3dd   : > { %v2435_v59 = vmul.f32 %v3306_v61, %v2434_v35  ;;  %v2428_v16 = vmul.f32 %v3304_v8, %v2427_v47 }
 0x3de   : > { %v3308_v42 = vpop.eup %3307 }
 0x3df   : > { %v2436_v49 = vmul.f32 0.5, %v2435_v59  ;;  %v2414_v7 = vmul.f32 %v3308_v42, %v2388_v1  ;;  %2848 = vmatpush.bf16.xpose.msrb.mxu2 %v2826_v29  ;;  %v2432_v34 = vsel %vm2431_vm7, %v3304_v8, %v2428_v16  ;;  %vm2420_vm11 = vweird.f32 %v3308_v42 }
 0x3e0   : > { %v2565_v57 = vmul.f32 %v2432_v34, %v4671_v4  ;;  %vm2421_vm14 = vmor %vm2419_vm12, %vm2420_vm11 }
 0x3e1   : > { %v2437_v51 = vsub.f32 1.5, %v2436_v49  ;;  %v2794_v38 = vpop.xlane.xlu2 %2793  ;;  %v2415_v54 = vmul.f32 %v3308_v42, %v2414_v7 }
 0x3e2   : > { %v3310_v21 = vpop.eup %3309  ;;  %v2795_v50 = vmax.f32 %v2794_v38, 1e-24 }
 0x3e3   : > { %v2404_v26 = vmul.f32 %v3310_v21, %v2387_v24  ;;  %v2438_v25 = vmul.f32 %v3306_v61, %v2437_v51  ;;  %v2416_v48 = vmul.f32 0.5, %v2415_v54  ;;  %vm2410_vm13 = vweird.f32 %v3310_v21 }
 0x3e4   : > { %3311 = vrsqrt.f32 %v2795_v50  ;;  %vm2411_vm1 = vmor %vm2409_vm15, %vm2410_vm13  ;;  %vm2802_vm3 = vweird.f32 %v2795_v50 }
 0x3e5   : > { %v2405_v33 = vmul.f32 %v3310_v21, %v2404_v26  ;;  %v2442_v30 = vsel %vm2441_vm9, %v3306_v61, %v2438_v25  ;;  %v2417_v15 = vsub.f32 1.5, %v2416_v48 }
 0x3e6   : > { %v2566_v18 = vmul.f32 %v2442_v30, %v4681_v27 }
 0x3e7   : > { %v2406_v6 = vmul.f32 0.5, %v2405_v33  ;;  %v2418_v44 = vmul.f32 %v3308_v42, %v2417_v15 }
 0x3e8   : > { %v2809_v45 = vpack.c.bf16 %v2566_v18, %v2565_v57 }
 0x3e9   : > { %v2407_v32 = vsub.f32 1.5, %v2406_v6  ;;  %v2422_v23 = vsel %vm2421_vm14, %v3308_v42, %v2418_v44 }
 0x3ea   : > { %v3312_v28 = vpop.eup %3311  ;;  %v2823_v31 = vsel %vm439_vm0, %v2809_v45, 0  ;;  %v2564_v53 = vmul.f32 %v2422_v23, %v4692_v46 }
 0x3eb   : > { %v2797_v17 = vmul.f32 %v3312_v28, %v2795_v50  ;;  %2849 = vmatpush.bf16.xpose.msrb.mxu2 %v2823_v31  ;;  %v2408_v5 = vmul.f32 %v3310_v21, %v2407_v32  ;;  %vm2803_vm2 = vweird.f32 %v3312_v28 }
 0x3ec   : > { %vm2804_vm4 = vmor %vm2802_vm3, %vm2803_vm2 }
 0x3ed   : > { %v2798_v4 = vmul.f32 %v3312_v28, %v2797_v17  ;;  %v2412_v3 = vsel %vm2411_vm1, %v3310_v21, %v2408_v5 }
 0x3ee   : > { %v2563_v27 = vmul.f32 %v2412_v3, %v4697_v52 }
 0x3ef   : > { %v2799_v0 = vmul.f32 0.5, %v2798_v4 }
 0x3f0   : > { %v2808_v2 = vpack.c.bf16 %v2564_v53, %v2563_v27 }
 0x3f1   : > { %v2800_v20 = vsub.f32 1.5, %v2799_v0 }
 0x3f2   : > { %v2820_v22 = vsel %vm439_vm0, %v2808_v2, 0 }
 0x3f3   : > { %v2801_v63 = vmul.f32 %v3312_v28, %v2800_v20  ;;  %2850 = vmatpush.bf16.xpose.msrb.mxu2 %v2820_v22 }
 0x3f5   : > { %v2805_v43 = vsel %vm2804_vm4, %v3312_v28, %v2801_v63 }
 0x3f6   : > { %v2806_v52 = vmul.f32 %v2805_v43, %v4711_v11 }
 0x3f8   : > { %v2807_v56 = vpack.c.bf16 %v2806_v52, %v2806_v52  ;;  %v2860_v46 = vmul.f32 %v3140_v39, %v2806_v52 }
 0x3fa   : > { %3086 = vmatmul.msk.bf16.vlgmr.msrb.gmra.mxu2 %vm439_vm0, %v2807_v56  ;;  %v2861_v8 = vsel %vm439_vm0, %v2860_v46, 0.0 }
 0x3fb   : > { %2862 = vadd.xlane.f32.xlu0 %v2861_v8 }
 0x46e   : > { %v2863_v58 = vpop.xlane.xlu0 %2862 }
 0x47d   : > { %v2852_v12 = vpop.f32.mrf.mxu2 }
 0x47e   : > { %v2870_v1 = vsel %vm2869_vm5, %v2863_v58, %v2852_v12 }
 0x47f   : > { %2871 = vst [vmem:[%s383_s16] sm:$0xff] %v2870_v1 }
 0x485   : > { %v2854_v11 = vpop.f32.mrf.mxu2 }
 0x486 PF: > { %s19_s11 = sadd.s32 1, %s3335_s11   ;;  %s4995_s30 = smov %s3331_s10 }
 0x487   : > { %p16_p5 = scmp.ge.s32.totalorder %s19_s11, 4   ;;  %s4996_s10 = smov %s4998_s12 }
 0x489   :  { %18 = sbr.rel (!%p16_p5) target bundleno = 2 (0x2), region = 95 }

</bundles_post_ra>
